<compile_context>
chip_gen: v7x
topology: tpu7x:2x2x1
jax: 0.10.0
libtpu: 0.0.40
codegen_flags: <defaults>
</compile_context>

<pallas_src>
import jax
import jax.numpy as jnp
from jax.experimental import pallas as pl
from jax.experimental.pallas import tpu as pltpu


_SQRT_2_OVER_PI = 0.7978845608028654


def _gelu_new(h):
    # GPT-2 "gelu_new" (tanh approximation), f32 in / f32 out.
    h2 = h * h
    return 0.5 * h * (1.0 + jnp.tanh(_SQRT_2_OVER_PI * h * (1.0 + 0.044715 * h2)))


# --------------------------------------------------------------------------
# Kernel bodies
# --------------------------------------------------------------------------

def gpt2_mlp_resident_kernel(x_ref, wfc_ref, bfc_ref, wproj_ref, bproj_ref,
                             o_ref):
    # x_ref:     (tm, H)
    # wfc_ref:   (H, I)    bfc_ref:   (1, I)     (resident across the grid)
    # wproj_ref: (I, H)    bproj_ref: (1, H)     (resident across the grid)
    # o_ref:     (tm, H)
    h = jnp.dot(x_ref[...], wfc_ref[...], preferred_element_type=jnp.float32)
    h = h + bfc_ref[...].astype(jnp.float32)
    h = _gelu_new(h)
    # Post-GELU activation is cast to the weight dtype before the MXU matmul
    # (standard bf16 inference behaviour); accumulation stays f32.
    out = jnp.dot(h.astype(wproj_ref.dtype), wproj_ref[...],
                  preferred_element_type=jnp.float32)
    o_ref[...] = (out + bproj_ref[...].astype(jnp.float32)).astype(o_ref.dtype)


def gpt2_mlp_tiled_kernel(x_ref, wfc_ref, bfc_ref, wproj_ref, bproj_ref,
                          o_ref, acc_ref):
    # x_ref:     (tm, H)
    # wfc_ref:   (H, ti)    bfc_ref:   (1, ti)
    # wproj_ref: (ti, H)    bproj_ref: (1, H)
    # o_ref:     (tm, H)    acc_ref:   (tm, H) f32 VMEM scratch
    k = pl.program_id(1)

    @pl.when(k == 0)
    def _init():
        acc_ref[...] = jnp.zeros_like(acc_ref)

    # c_fc partial: x @ W_fc[:, k*ti:(k+1)*ti] + b_fc tile.  The H reduction
    # is complete inside this matmul, so GELU per I-tile is exact.
    h = jnp.dot(x_ref[...], wfc_ref[...], preferred_element_type=jnp.float32)
    h = h + bfc_ref[...].astype(jnp.float32)
    h = _gelu_new(h)

    # c_proj partial: accumulate h_k @ W_proj[k*ti:(k+1)*ti, :] in f32.
    acc_ref[...] += jnp.dot(h.astype(wproj_ref.dtype), wproj_ref[...],
                            preferred_element_type=jnp.float32)

    @pl.when(k == pl.num_programs(1) - 1)
    def _finalize():
        o_ref[...] = (acc_ref[...]
                      + bproj_ref[...].astype(jnp.float32)).astype(o_ref.dtype)


# --------------------------------------------------------------------------
# Tiling / budget helpers
# --------------------------------------------------------------------------

def _pick_tile(n, preferred, align):
    """Largest preferred tile that divides n and respects dtype alignment."""
    for t in preferred:
        if t <= n and n % t == 0 and t % align == 0:
            return t
    # Fallback: largest aligned divisor of n.
    best = None
    t = align
    while t <= n:
        if n % t == 0:
            best = t
        t += align
    if best is not None:
        return best
    return n  # block == full dim is always legal, even if unaligned


def _vmem_budget_bytes():
    """Physical VMEM minus headroom for compiler-internal scratch.

    ~112 MiB on v5e/v6e (128 MiB physical), ~56 MiB on v7x (64 MiB physical).
    """
    try:
        phys = int(pltpu.get_tpu_info().vmem_capacity_bytes)
    except Exception:
        phys = 64 << 20  # conservative default (v7x-sized)
    return phys - max(8 << 20, phys // 8)


# --------------------------------------------------------------------------
# Wrapper
# --------------------------------------------------------------------------

def gpt2_mlp(x, w_fc, b_fc, w_proj, b_proj, *, tm=None, ti=None,
             force_tiled=False):
    """GPT2MLP forward: c_proj(gelu_new(c_fc(x))).

    x:      (T, H)
    w_fc:   (H, I), b_fc:   (1, I)
    w_proj: (I, H), b_proj: (1, H)
    """
    T, H = x.shape
    I = w_fc.shape[1]

    x_b = jnp.dtype(x.dtype).itemsize
    w_b = jnp.dtype(w_fc.dtype).itemsize
    o_b = x_b
    align = 16 if x_b == 2 else 8  # bf16 needs 16-row vreg packing

    budget = _vmem_budget_bytes()

    if tm is None:
        # Largest first: big token tiles maximize arithmetic intensity in the
        # k-tiled path and amortize the ~0.35us per-grid-step overhead.
        tm = _pick_tile(T, (1024, 512, 256, 128, 64, 32, 16, 8), align)
    assert T % tm == 0, f"tm={tm} must divide T={T}"

    def resident_need(tm_):
        # 2x on pipelined buffers (conservative: constant-index blocks may
        # still be double-buffer allocated) + f32 intermediate + margin.
        return (2 * tm_ * H * (x_b + o_b)
                + 2 * w_b * (H * I + I + I * H + H)
                + tm_ * I * 4
                + (2 << 20))

    def tiled_need(tm_, ti_):
        return (2 * (tm_ * H * x_b + H * ti_ * w_b + ti_ * w_b
                     + ti_ * H * w_b + H * w_b + tm_ * H * o_b)
                + tm_ * H * 4            # f32 accumulator scratch
                + tm_ * ti_ * 4          # f32 post-GELU intermediate
                + (2 << 20))

    use_resident = ((not force_tiled) and ti is None
                    and resident_need(tm) <= budget)

    flops = 4 * T * H * I            # two matmuls, 2*T*H*I flops each
    transcendentals = T * I          # tanh in gelu_new

    if use_resident:
        grid = (T // tm,)
        need = resident_need(tm)
        vmem_limit = int(min(budget, need + (4 << 20)))
        bytes_accessed = (x.size * x_b + w_fc.size * w_b + b_fc.size * w_b
                          + w_proj.size * w_b + b_proj.size * w_b + T * H * o_b)
        cost = pl.CostEstimate(flops=flops, transcendentals=transcendentals,
                               bytes_accessed=int(bytes_accessed))
        return pl.pallas_call(
            gpt2_mlp_resident_kernel,
            out_shape=jax.ShapeDtypeStruct((T, H), x.dtype),
            grid_spec=pltpu.PrefetchScalarGridSpec(
                num_scalar_prefetch=0,
                grid=grid,
                in_specs=[
                    pl.BlockSpec((tm, H), lambda i: (i, 0)),   # x token tile
                    pl.BlockSpec((H, I), lambda i: (0, 0)),    # W_fc (resident)
                    pl.BlockSpec((1, I), lambda i: (0, 0)),    # b_fc (resident)
                    pl.BlockSpec((I, H), lambda i: (0, 0)),    # W_proj (resident)
                    pl.BlockSpec((1, H), lambda i: (0, 0)),    # b_proj (resident)
                ],
                out_specs=pl.BlockSpec((tm, H), lambda i: (i, 0)),
            ),
            compiler_params=pltpu.CompilerParams(
                dimension_semantics=("parallel",),
                vmem_limit_bytes=vmem_limit,
            ),
            cost_estimate=cost,
        )(x, w_fc, b_fc, w_proj, b_proj)

    # ---------------- k-tiled fallback path ----------------
    if ti is None:
        # Multiples of 256 fill the 2x256x256 MXU on v6e/v7x.
        ti = _pick_tile(I, (2048, 1024, 512, 256), 128)
    assert I % ti == 0, f"ti={ti} must divide I={I}"

    # Shrink ti, then tm, until the working set fits the per-gen budget.
    while (tiled_need(tm, ti) > budget and ti % 2 == 0 and ti // 2 >= 256
           and (ti // 2) % 128 == 0 and I % (ti // 2) == 0):
        ti //= 2
    while (tiled_need(tm, ti) > budget and tm % 2 == 0 and tm // 2 >= align
           and (tm // 2) % align == 0 and T % (tm // 2) == 0):
        tm //= 2

    grid = (T // tm, I // ti)
    need = tiled_need(tm, ti)
    vmem_limit = int(min(budget, max(need + (4 << 20), 16 << 20)))

    # Weights are re-streamed once per token tile in this path.
    n_token_tiles = T // tm
    bytes_accessed = (x.size * x_b + T * H * o_b
                      + n_token_tiles * (w_fc.size + w_proj.size) * w_b
                      + n_token_tiles * (b_fc.size + b_proj.size) * w_b)
    cost = pl.CostEstimate(flops=flops, transcendentals=transcendentals,
                           bytes_accessed=int(bytes_accessed))

    return pl.pallas_call(
        gpt2_mlp_tiled_kernel,
        out_shape=jax.ShapeDtypeStruct((T, H), x.dtype),
        grid_spec=pltpu.PrefetchScalarGridSpec(
            num_scalar_prefetch=0,
            grid=grid,
            in_specs=[
                pl.BlockSpec((tm, H), lambda i, k: (i, 0)),   # x (resident over k)
                pl.BlockSpec((H, ti), lambda i, k: (0, k)),   # W_fc column tile
                pl.BlockSpec((1, ti), lambda i, k: (0, k)),   # b_fc tile
                pl.BlockSpec((ti, H), lambda i, k: (k, 0)),   # W_proj row tile
                pl.BlockSpec((1, H), lambda i, k: (0, 0)),    # b_proj (constant)
            ],
            out_specs=pl.BlockSpec((tm, H), lambda i, k: (i, 0)),
            scratch_shapes=[pltpu.VMEM((tm, H), jnp.float32)],
        ),
        compiler_params=pltpu.CompilerParams(
            dimension_semantics=("parallel", "arbitrary"),
            vmem_limit_bytes=vmem_limit,
        ),
        cost_estimate=cost,
    )(x, w_fc, b_fc, w_proj, b_proj)


def gpt2_mlp_ref(x, w_fc, b_fc, w_proj, b_proj):
    h = x @ w_fc + b_fc
    h = 0.5 * h * (1.0 + jnp.tanh(_SQRT_2_OVER_PI * (h + 0.044715 * h ** 3)))
    return h @ w_proj + b_proj


if __name__ == "__main__":
    # Small GPT-2-like config: hidden=128, intermediate=4*hidden=512, 256 tokens.
    # TODO(synk): tensor-parallel sharding (ColumnParallelLinear/RowParallelLinear
    # + the implicit all-reduce in RowParallelLinear) is not modeled; this is the
    # single-device forward pass.
    T, H = 256, 128
    I = 4 * H

    key = jax.random.PRNGKey(0)
    kx, k1, k2, k3, k4 = jax.random.split(key, 5)

    x = jax.random.normal(kx, (T, H), dtype=jnp.float32)
    w_fc = jax.random.normal(k1, (H, I), dtype=jnp.float32) * 0.02
    b_fc = jax.random.normal(k2, (1, I), dtype=jnp.float32) * 0.02
    w_proj = jax.random.normal(k3, (I, H), dtype=jnp.float32) * 0.02
    b_proj = jax.random.normal(k4, (1, H), dtype=jnp.float32) * 0.02

    ref = gpt2_mlp_ref(x, w_fc, b_fc, w_proj, b_proj)

    # 1) Default path: weights-resident (they easily fit VMEM at demo sizes).
    out_res = gpt2_mlp(x, w_fc, b_fc, w_proj, b_proj)
    out_res = jax.block_until_ready(out_res)
    assert out_res.shape == (T, H)
    assert jnp.allclose(out_res, ref, atol=1e-3, rtol=1e-3), \
        "resident-path mismatch vs reference"

    # 2) Forced k-tiled path (exercises both grid axes + the f32 accumulator).
    out_tiled = gpt2_mlp(x, w_fc, b_fc, w_proj, b_proj,
                         tm=128, ti=256, force_tiled=True)
    out_tiled = jax.block_until_ready(out_tiled)
    assert out_tiled.shape == (T, H)
    assert jnp.allclose(out_tiled, ref, atol=1e-3, rtol=1e-3), \
        "tiled-path mismatch vs reference"

    print("KERNEL_OK")
</pallas_src>

<mosaic_0001>
module attributes {stable_mosaic.version = 11 : i64} {
  func.func @gpt2_mlp_resident_kernel(%arg0: i32, %arg1: memref<256x128xf32, #tpu.memory_space<vmem>>, %arg2: memref<128x512xf32, #tpu.memory_space<vmem>>, %arg3: memref<1x512xf32, #tpu.memory_space<vmem>>, %arg4: memref<512x128xf32, #tpu.memory_space<vmem>>, %arg5: memref<1x128xf32, #tpu.memory_space<vmem>>, %arg6: memref<256x128xf32, #tpu.memory_space<vmem>>) attributes {dimension_semantics = [#tpu.dimension_semantics<parallel>], iteration_bounds = array<i64: 1>, scalar_prefetch = 0 : i64, scratch_operands = 0 : i64, tpu.core_type = #tpu.core_type<tc>, window_params = [{transform_indices = @transform_0, window_bounds = array<i64: 256, 128>}, {pipeline_mode = #tpu.pipeline_mode<synchronous>, transform_indices = @transform_1, window_bounds = array<i64: 128, 512>}, {pipeline_mode = #tpu.pipeline_mode<synchronous>, transform_indices = @transform_2, window_bounds = array<i64: 1, 512>}, {pipeline_mode = #tpu.pipeline_mode<synchronous>, transform_indices = @transform_3, window_bounds = array<i64: 512, 128>}, {pipeline_mode = #tpu.pipeline_mode<synchronous>, transform_indices = @transform_4, window_bounds = array<i64: 1, 128>}, {transform_indices = @transform_5, window_bounds = array<i64: 256, 128>}]} {
    %c0 = arith.constant 0 : index
    %c0_0 = arith.constant 0 : index
    %0 = vector.load %arg1[%c0, %c0_0] : memref<256x128xf32, #tpu.memory_space<vmem>>, vector<256x128xf32>
    %c0_1 = arith.constant 0 : index
    %c0_2 = arith.constant 0 : index
    %1 = vector.load %arg2[%c0_1, %c0_2] : memref<128x512xf32, #tpu.memory_space<vmem>>, vector<128x512xf32>
    %cst = arith.constant dense<0.000000e+00> : vector<256x512xf32>
    %2 = tpu.matmul %0, %1, %cst {dimension_numbers = #tpu.dot_dimension_numbers<[1], [0], [0], [1], [0, 0, 1, 1], [], []>} : vector<256x128xf32>, vector<128x512xf32>, vector<256x512xf32> -> vector<256x512xf32>
    %c0_3 = arith.constant 0 : index
    %c0_4 = arith.constant 0 : index
    %3 = vector.load %arg3[%c0_3, %c0_4] : memref<1x512xf32, #tpu.memory_space<vmem>>, vector<1x512xf32>
    %4 = vector.broadcast %3 : vector<1x512xf32> to vector<256x512xf32>
    %5 = arith.addf %2, %4 : vector<256x512xf32>
    %6 = arith.mulf %5, %5 : vector<256x512xf32>
    %cst_5 = arith.constant 5.000000e-01 : f32
    %7 = vector.broadcast %cst_5 : f32 to vector<256x512xf32>
    %8 = arith.mulf %7, %5 : vector<256x512xf32>
    %cst_6 = arith.constant 0.797884583 : f32
    %9 = vector.broadcast %cst_6 : f32 to vector<256x512xf32>
    %10 = arith.mulf %9, %5 : vector<256x512xf32>
    %cst_7 = arith.constant 4.471500e-02 : f32
    %11 = vector.broadcast %cst_7 : f32 to vector<256x512xf32>
    %12 = arith.mulf %11, %6 : vector<256x512xf32>
    %cst_8 = arith.constant 1.000000e+00 : f32
    %13 = vector.broadcast %cst_8 : f32 to vector<256x512xf32>
    %14 = arith.addf %13, %12 : vector<256x512xf32>
    %15 = arith.mulf %10, %14 : vector<256x512xf32>
    %16 = math.tanh %15 : vector<256x512xf32>
    %cst_9 = arith.constant 1.000000e+00 : f32
    %17 = vector.broadcast %cst_9 : f32 to vector<256x512xf32>
    %18 = arith.addf %17, %16 : vector<256x512xf32>
    %19 = arith.mulf %8, %18 : vector<256x512xf32>
    %c0_10 = arith.constant 0 : index
    %c0_11 = arith.constant 0 : index
    %20 = vector.load %arg4[%c0_10, %c0_11] : memref<512x128xf32, #tpu.memory_space<vmem>>, vector<512x128xf32>
    %cst_12 = arith.constant dense<0.000000e+00> : vector<256x128xf32>
    %21 = tpu.matmul %19, %20, %cst_12 {dimension_numbers = #tpu.dot_dimension_numbers<[1], [0], [0], [1], [0, 0, 1, 1], [], []>} : vector<256x512xf32>, vector<512x128xf32>, vector<256x128xf32> -> vector<256x128xf32>
    %c0_13 = arith.constant 0 : index
    %c0_14 = arith.constant 0 : index
    %22 = vector.load %arg5[%c0_13, %c0_14] : memref<1x128xf32, #tpu.memory_space<vmem>>, vector<1x128xf32>
    %23 = vector.broadcast %22 : vector<1x128xf32> to vector<256x128xf32>
    %24 = arith.addf %21, %23 : vector<256x128xf32>
    %c0_15 = arith.constant 0 : index
    %c0_16 = arith.constant 0 : index
    %25 = vector.load %arg6[%c0_15, %c0_16] : memref<256x128xf32, #tpu.memory_space<vmem>>, vector<256x128xf32>
    tpu.vector_store %arg6[%c0_15, %c0_16], %24 {strides = array<i32>} : memref<256x128xf32, #tpu.memory_space<vmem>>, vector<256x128xf32>,
    return
  }
  func.func @transform_0(%arg0: i32) -> (i32, i32) {
    %c0_i32 = arith.constant 0 : i32
    %c0_i32_0 = arith.constant 0 : i32
    return %arg0, %c0_i32 : i32, i32
  }
  func.func @transform_1(%arg0: i32) -> (i32, i32) {
    %c0_i32 = arith.constant 0 : i32
    %c0_i32_0 = arith.constant 0 : i32
    %c0_i32_1 = arith.constant 0 : i32
    return %c0_i32, %c0_i32_0 : i32, i32
  }
  func.func @transform_2(%arg0: i32) -> (i32, i32) {
    %c0_i32 = arith.constant 0 : i32
    %c0_i32_0 = arith.constant 0 : i32
    %c0_i32_1 = arith.constant 0 : i32
    return %c0_i32, %c0_i32_0 : i32, i32
  }
  func.func @transform_3(%arg0: i32) -> (i32, i32) {
    %c0_i32 = arith.constant 0 : i32
    %c0_i32_0 = arith.constant 0 : i32
    %c0_i32_1 = arith.constant 0 : i32
    return %c0_i32, %c0_i32_0 : i32, i32
  }
  func.func @transform_4(%arg0: i32) -> (i32, i32) {
    %c0_i32 = arith.constant 0 : i32
    %c0_i32_0 = arith.constant 0 : i32
    %c0_i32_1 = arith.constant 0 : i32
    return %c0_i32, %c0_i32_0 : i32, i32
  }
  func.func @transform_5(%arg0: i32) -> (i32, i32) {
    %c0_i32 = arith.constant 0 : i32
    %c0_i32_0 = arith.constant 0 : i32
    return %arg0, %c0_i32 : i32, i32
  }
}

</mosaic_0001>

<bundles_post_ra>
// kernel: tpu_custom_call.1
= control target key start
LH: loop header
LB: loop body
LE: loop exit
PB: predicated region body
PF: predicated region fallthrough
CT: control target
= control target key end

     0   :  { %10 = vsyncpa [#allocation3], 0  ;;  %s4820_s0 = inlined_call_operand.hbm [shape: f32[256,128], index: 0, kind: input, shape index: {}]   ;;  %s4821_s1 = inlined_call_operand.hbm [shape: f32[128,512], index: 1, kind: input, shape index: {}]   ;;  %s4822_s2 = inlined_call_operand.vmem [shape: f32[1,512], index: 2, kind: input, shape index: {}]   ;;  %s4823_s3 = inlined_call_operand.hbm [shape: f32[512,128], index: 3, kind: input, shape index: {}]   ;;  %s4824_s4 = inlined_call_operand.vmem [shape: f32[1,128], index: 4, kind: input, shape index: {}]   ;;  %s4825_s5 = inlined_call_operand.hbm [shape: f32[256,128], index: 5, kind: output, shape index: {}]  }
   0x1   :  { %11 = vsyncpa [#allocation6], 0 }
   0x2   :  { %12 = vsyncpa [#allocation4], 0  ;;  %s3002_s18 = smov [#allocation5]   ;;  %s2908_s22 = scalar_lea.hbm %s4821_s1, 8192 }
   0x3   :  { %s30_s19 = sshll.u32 %s3002_s18, 4  ;;  %p2909_p0 = scmp.ne.s32.totalorder %s4821_s1, %s2908_s22  ;;  %s31_s19 = int_to_ptr.vmem [resolvable:$true] %s30_s19 }
   0x4   :  { %p2912_p1 = scmp.lt.u32.totalorder %s2908_s22, %s4821_s1 }
   0x6   :  { %p2914_p2 = pnand %p2912_p1, %p2909_p0 }
   0x8   :  { %2917 = shalt.err (!%p2914_p2)
}
   0x9   :  { %s2918_s27 = scalar_lea.vmem %s31_s19, 8192  ;;  %p2923_p4 = scmp.lt.s32.totalorder %s31_s19, %s31_s19 }
   0xa   :  { %p2919_p3 = scmp.ne.s32.totalorder %s31_s19, %s2918_s27  ;;  %p2924_p5 = scmp.lt.s32.totalorder %s2918_s27, %s2918_s27 }
   0xc   :  { %p2925_p6 = por %p2924_p5, %p2923_p4 }
   0xe   :  { %p2926_p7 = pnand %p2925_p6, %p2919_p3 }
  0x10   :  { %2929 = shalt.err (!%p2926_p7)
}
  0x11   :  { %s3003_s28 = smov 512   ;;  %s3004_s29 = smov 32  }
  0x12   :  { %36 = dma.hbm_to_vmem [thread:$0]  %s4821_s1, 8192, %s31_s19, [#allocation6], %s3003_s28, %s3003_s28, %s3004_s29  }
  0x13   :  { %s3005_s7 = smov [#allocation2]   ;;  %s2930_s11 = scalar_lea.hbm %s4820_s0, 4096 }
  0x14   :  { %s18_s8 = sshll.u32 %s3005_s7, 4  ;;  %p2931_p8 = scmp.ne.s32.totalorder %s4820_s0, %s2930_s11  ;;  %s19_s8 = int_to_ptr.vmem [resolvable:$true] %s18_s8 }
  0x15   :  { %p2934_p9 = scmp.lt.u32.totalorder %s2930_s11, %s4820_s0 }
  0x17   :  { %p2936_p10 = pnand %p2934_p9, %p2931_p8 }
  0x19   :  { %2939 = shalt.err (!%p2936_p10)
}
  0x1a   :  { %s2940_s16 = scalar_lea.vmem %s19_s8, 4096  ;;  %p2945_p12 = scmp.lt.s32.totalorder %s19_s8, %s19_s8 }
  0x1b   :  { %p2941_p11 = scmp.ne.s32.totalorder %s19_s8, %s2940_s16  ;;  %p2946_p13 = scmp.lt.s32.totalorder %s2940_s16, %s2940_s16 }
  0x1d   :  { %p2947_p0 = por %p2946_p13, %p2945_p12 }
  0x1f   :  { %p2948_p1 = pnand %p2947_p0, %p2941_p11 }
  0x21   :  { %2951 = shalt.err (!%p2948_p1)
}
  0x22   :  { %s3006_s1 = smov 128   ;;  %s3007_s17 = smov 8  }
  0x23   :  { %24 = dma.hbm_to_vmem [thread:$0]  %s4820_s0, 4096, %s19_s8, [#allocation3], %s3006_s1, %s3006_s1, %s3007_s17  }
  0x24   :  { %s3008_s20 = smov [#allocation7]   ;;  %s2952_s24 = scalar_lea.hbm %s4823_s3, 8192 }
  0x25   :  { %s44_s21 = sshll.u32 %s3008_s20, 4  ;;  %p2953_p2 = scmp.ne.s32.totalorder %s4823_s3, %s2952_s24  ;;  %s45_s21 = int_to_ptr.vmem [resolvable:$true] %s44_s21 }
  0x26   :  { %p2956_p3 = scmp.lt.u32.totalorder %s2952_s24, %s4823_s3 }
  0x28   :  { %p2958_p4 = pnand %p2956_p3, %p2953_p2 }
  0x2a   :  { %2961 = shalt.err (!%p2958_p4)
}
  0x2b   :  { %s2962_s29 = scalar_lea.vmem %s45_s21, 8192  ;;  %p2967_p6 = scmp.lt.s32.totalorder %s45_s21, %s45_s21 }
  0x2c   :  { %p2963_p5 = scmp.ne.s32.totalorder %s45_s21, %s2962_s29  ;;  %p2968_p7 = scmp.lt.s32.totalorder %s2962_s29, %s2962_s29 }
  0x2e   :  { %p2969_p8 = por %p2968_p7, %p2967_p6 }
  0x30   :  { %p2970_p9 = pnand %p2969_p8, %p2963_p5 }
  0x32   :  { %2973 = shalt.err (!%p2970_p9)
}
  0x33   :  { %50 = dma.hbm_to_vmem [thread:$0]  %s4823_s3, 8192, %s45_s21, [#allocation6], %s3006_s1, %s3006_s1, %s3007_s17  }
  0x34   :  { %2996 = dma.done.wait [#allocation3], 4096  }
  0x35   :  { %2997 = vsyncadd [#allocation3], 4294963200 }
  0x36   :  { %2998 = dma.done.wait [#allocation6], 16384  }
  0x37   :  { %2999 = vsyncadd [#allocation6], 4294950912  ;;  %v3009_v0 = vmov 0.0   ;;  %v95_v1 = vld [vmem:[#allocation5 + $0x8] sm:$0xff]  ;;  %v97_v3 = vld [vmem:[#allocation5 + $0x18] sm:$0xff] }
  0x38   :  { %244 = vmatprep.mubr.f32.mxu0 %v3009_v0  ;;  %501 = vmatprep.mubr.f32.mxu1 %v3009_v0  ;;  %v99_v2 = vld [vmem:[#allocation5 + $0x28] sm:$0xff]  ;;  %v101_v5 = vld [vmem:[#allocation5 + $0x38] sm:$0xff]  ;;  %v94_v6 = vld [vmem:[#allocation5] sm:$0xff] }
  0x39   :  { %v2418_v4 = vpack.c.bf16 %v99_v2, %v95_v1  ;;  %v98_v7 = vld [vmem:[#allocation5 + $0x20] sm:$0xff]  ;;  %v2450_v8 = vpack.c.bf16 %v101_v5, %v97_v3  ;;  %v96_v10 = vld [vmem:[#allocation5 + $0x10] sm:$0xff]  ;;  %v103_v12 = vld [vmem:[#allocation5 + $0x48] sm:$0xff] }
  0x3a   :  { %v2420_v9 = vpack.c.bf16 %v98_v7, %v94_v6  ;;  %v100_v11 = vld [vmem:[#allocation5 + $0x30] sm:$0xff]  ;;  %v107_v14 = vld [vmem:[#allocation5 + $0x68] sm:$0xff]  ;;  %v105_v15 = vld [vmem:[#allocation5 + $0x58] sm:$0xff] }
  0x3b   :  { %2419 = vmatprep.subr.bf16.mxu0 %v2418_v4  ;;  %v2452_v13 = vpack.c.bf16 %v100_v11, %v96_v10  ;;  %v109_v16 = vld [vmem:[#allocation5 + $0x78] sm:$0xff]  ;;  %2451 = vmatprep.subr.bf16.mxu1 %v2450_v8  ;;  %v2422_v17 = vpack.c.bf16 %v107_v14, %v103_v12  ;;  %v102_v19 = vld [vmem:[#allocation5 + $0x40] sm:$0xff]  ;;  %v104_v21 = vld [vmem:[#allocation5 + $0x50] sm:$0xff] }
  0x3c   :  { %2421 = vmatpush1.bf16.msra.mxu0 %v2420_v9  ;;  %v2454_v18 = vpack.c.bf16 %v109_v16, %v105_v15  ;;  %v106_v20 = vld [vmem:[#allocation5 + $0x60] sm:$0xff]  ;;  %v108_v23 = vld [vmem:[#allocation5 + $0x70] sm:$0xff]  ;;  %v111_v24 = vld [vmem:[#allocation5 + $0x88] sm:$0xff] }
  0x3d   :  { %2453 = vmatpush1.bf16.msra.mxu1 %v2452_v13  ;;  %v2424_v22 = vpack.c.bf16 %v106_v20, %v102_v19  ;;  %v115_v25 = vld [vmem:[#allocation5 + $0xa8] sm:$0xff]  ;;  %2423 = vmatprep.subr.bf16.mxu0 %v2422_v17  ;;  %v2456_v26 = vpack.c.bf16 %v108_v23, %v104_v21  ;;  %v113_v28 = vld [vmem:[#allocation5 + $0x98] sm:$0xff]  ;;  %v110_v30 = vld [vmem:[#allocation5 + $0x80] sm:$0xff] }
  0x3e   :  { %2455 = vmatprep.subr.bf16.mxu1 %v2454_v18  ;;  %v2426_v27 = vpack.c.bf16 %v115_v25, %v111_v24  ;;  %v117_v29 = vld [vmem:[#allocation5 + $0xb8] sm:$0xff]  ;;  %v114_v32 = vld [vmem:[#allocation5 + $0xa0] sm:$0xff]  ;;  %v112_v33 = vld [vmem:[#allocation5 + $0x90] sm:$0xff] }
  0x3f   :  { %v2458_v31 = vpack.c.bf16 %v117_v29, %v113_v28  ;;  %v116_v34 = vld [vmem:[#allocation5 + $0xb0] sm:$0xff]  ;;  %v2428_v35 = vpack.c.bf16 %v114_v32, %v110_v30  ;;  %v119_v36 = vld [vmem:[#allocation5 + $0xc8] sm:$0xff]  ;;  %v121_v38 = vld [vmem:[#allocation5 + $0xd8] sm:$0xff] }
  0x40   :  { %2425 = vmatpush1.bf16.msra.mxu0 %v2424_v22  ;;  %v123_v37 = vld [vmem:[#allocation5 + $0xe8] sm:$0xff]  ;;  %v2460_v39 = vpack.c.bf16 %v116_v34, %v112_v33  ;;  %v125_v41 = vld [vmem:[#allocation5 + $0xf8] sm:$0xff]  ;;  %v118_v42 = vld [vmem:[#allocation5 + $0xc0] sm:$0xff] }
  0x41   :  { %2457 = vmatpush1.bf16.msra.mxu1 %v2456_v26  ;;  %2427 = vmatprep.subr.bf16.mxu0 %v2426_v27  ;;  %v2430_v40 = vpack.c.bf16 %v123_v37, %v119_v36  ;;  %v122_v43 = vld [vmem:[#allocation5 + $0xe0] sm:$0xff]  ;;  %v2462_v44 = vpack.c.bf16 %v125_v41, %v121_v38  ;;  %v120_v45 = vld [vmem:[#allocation5 + $0xd0] sm:$0xff]  ;;  %v127_v47 = vld [vmem:[#allocation5 + $0x108] sm:$0xff] }
  0x42   :  { %2459 = vmatprep.subr.bf16.mxu1 %v2458_v31  ;;  %v124_v46 = vld [vmem:[#allocation5 + $0xf0] sm:$0xff]  ;;  %v131_v48 = vld [vmem:[#allocation5 + $0x128] sm:$0xff]  ;;  %v129_v49 = vld [vmem:[#allocation5 + $0x118] sm:$0xff]  ;;  %v2432_v51 = vpack.c.bf16 %v122_v43, %v118_v42 }
  0x43   :  { %v133_v50 = vld [vmem:[#allocation5 + $0x138] sm:$0xff]  ;;  %v2464_v52 = vpack.c.bf16 %v124_v46, %v120_v45  ;;  %v2434_v53 = vpack.c.bf16 %v131_v48, %v127_v47  ;;  %v126_v54 = vld [vmem:[#allocation5 + $0x100] sm:$0xff]  ;;  %v128_v56 = vld [vmem:[#allocation5 + $0x110] sm:$0xff] }
  0x44   :  { %2429 = vmatpush1.bf16.msra.mxu0 %v2428_v35  ;;  %v130_v55 = vld [vmem:[#allocation5 + $0x120] sm:$0xff]  ;;  %v2466_v57 = vpack.c.bf16 %v133_v50, %v129_v49  ;;  %v132_v58 = vld [vmem:[#allocation5 + $0x130] sm:$0xff]  ;;  %v135_v59 = vld [vmem:[#allocation5 + $0x148] sm:$0xff] }
  0x45   :  { %2461 = vmatpush1.bf16.msra.mxu1 %v2460_v39  ;;  %2431 = vmatprep.subr.bf16.mxu0 %v2430_v40  ;;  %v139_v60 = vld [vmem:[#allocation5 + $0x168] sm:$0xff]  ;;  %v137_v61 = vld [vmem:[#allocation5 + $0x158] sm:$0xff]  ;;  %v2436_v63 = vpack.c.bf16 %v130_v55, %v126_v54  ;;  %v2468_v1 = vpack.c.bf16 %v132_v58, %v128_v56  ;;  %v134_v3 = vld [vmem:[#allocation5 + $0x140] sm:$0xff]  ;;  %v3010_v40 = vmov 0.0|0.0  }
  0x46   :  { %2463 = vmatprep.subr.bf16.mxu1 %v2462_v44  ;;  %v141_v62 = vld [vmem:[#allocation5 + $0x178] sm:$0xff]  ;;  %v2438_v2 = vpack.c.bf16 %v139_v60, %v135_v59  ;;  %v138_v4 = vld [vmem:[#allocation5 + $0x160] sm:$0xff]  ;;  %v136_v5 = vld [vmem:[#allocation5 + $0x150] sm:$0xff] }
  0x47   :  { %v2470_v6 = vpack.c.bf16 %v141_v62, %v137_v61  ;;  %v140_v7 = vld [vmem:[#allocation5 + $0x170] sm:$0xff]  ;;  %v143_v8 = vld [vmem:[#allocation5 + $0x188] sm:$0xff]  ;;  %v145_v10 = vld [vmem:[#allocation5 + $0x198] sm:$0xff]  ;;  %v2440_v12 = vpack.c.bf16 %v138_v4, %v134_v3 }
  0x48   :  { %2433 = vmatpush1.bf16.msra.mxu0 %v2432_v51  ;;  %v147_v9 = vld [vmem:[#allocation5 + $0x1a8] sm:$0xff]  ;;  %v149_v11 = vld [vmem:[#allocation5 + $0x1b8] sm:$0xff]  ;;  %v2472_v13 = vpack.c.bf16 %v140_v7, %v136_v5  ;;  %v142_v15 = vld [vmem:[#allocation5 + $0x180] sm:$0xff] }
  0x49   :  { %2465 = vmatpush1.bf16.msra.mxu1 %v2464_v52  ;;  %2435 = vmatprep.subr.bf16.mxu0 %v2434_v53  ;;  %v2442_v14 = vpack.c.bf16 %v147_v9, %v143_v8  ;;  %v146_v16 = vld [vmem:[#allocation5 + $0x1a0] sm:$0xff]  ;;  %v144_v17 = vld [vmem:[#allocation5 + $0x190] sm:$0xff]  ;;  %v2474_v18 = vpack.c.bf16 %v149_v11, %v145_v10  ;;  %v151_v20 = vld [vmem:[#allocation5 + $0x1c8] sm:$0xff] }
  0x4a   :  { %2467 = vmatprep.subr.bf16.mxu1 %v2466_v57  ;;  %v148_v19 = vld [vmem:[#allocation5 + $0x1b0] sm:$0xff]  ;;  %v155_v21 = vld [vmem:[#allocation5 + $0x1e8] sm:$0xff]  ;;  %v153_v22 = vld [vmem:[#allocation5 + $0x1d8] sm:$0xff]  ;;  %v2444_v24 = vpack.c.bf16 %v146_v16, %v142_v15 }
  0x4b   :  { %v157_v23 = vld [vmem:[#allocation5 + $0x1f8] sm:$0xff]  ;;  %v2476_v25 = vpack.c.bf16 %v148_v19, %v144_v17  ;;  %v2446_v26 = vpack.c.bf16 %v155_v21, %v151_v20  ;;  %v150_v27 = vld [vmem:[#allocation5 + $0x1c0] sm:$0xff]  ;;  %v152_v30 = vld [vmem:[#allocation5 + $0x1d0] sm:$0xff] }
  0x4c   :  { %2437 = vmatpush1.bf16.msra.mxu0 %v2436_v63  ;;  %v154_v28 = vld [vmem:[#allocation5 + $0x1e0] sm:$0xff]  ;;  %v2478_v29 = vpack.c.bf16 %v157_v23, %v153_v22  ;;  %v156_v31 = vld [vmem:[#allocation5 + $0x1f0] sm:$0xff]  ;;  %v1847_v35 = vld [vmem:[#allocation7 + $0x8] sm:$0xff] }
  0x4d   :  { %2469 = vmatpush1.bf16.msra.mxu1 %v2468_v1  ;;  %2439 = vmatprep.subr.bf16.mxu0 %v2438_v2  ;;  %v2448_v32 = vpack.c.bf16 %v154_v28, %v150_v27  ;;  %v2480_v33 = vpack.c.bf16 %v156_v31, %v152_v30  ;;  %v1846_v34 = vld [vmem:[#allocation7] sm:$0xff]  ;;  %v1879_v38 = vld [vmem:[#allocation7 + $0x108] sm:$0xff]  ;;  %v1848_v42 = vld [vmem:[#allocation7 + $0x10] sm:$0xff] }
  0x4e   :  { %2471 = vmatprep.subr.bf16.mxu1 %v2470_v6  ;;  %v1878_v36 = vld [vmem:[#allocation7 + $0x100] sm:$0xff]  ;;  %v2483_v39 = vpack.c.bf16 %v1847_v35, %v1846_v34  ;;  %v1849_v43 = vld [vmem:[#allocation7 + $0x18] sm:$0xff]  ;;  %v1880_v44 = vld [vmem:[#allocation7 + $0x110] sm:$0xff] }
  0x4f   :  { %v62_v37 = vld [vmem:[#allocation2] sm:$0xff]  ;;  %v2531_v41 = vpack.c.bf16 %v1879_v38, %v1878_v36  ;;  %v1881_v45 = vld [vmem:[#allocation7 + $0x118] sm:$0xff]  ;;  %v63_v46 = vld [vmem:[#allocation2 + $0x8] sm:$0xff]  ;;  %v2486_v47 = vpack.c.bf16 %v1849_v43, %v1848_v42 }
  0x50   :  { %2441 = vmatpush1.bf16.msra.mxu0 %v2440_v12  ;;  %v2534_v48 = vpack.c.bf16 %v1881_v45, %v1880_v44  ;;  %v1850_v49 = vld [vmem:[#allocation7 + $0x20] sm:$0xff]  ;;  %v1851_v50 = vld [vmem:[#allocation7 + $0x28] sm:$0xff]  ;;  %v64_v53 = vld [vmem:[#allocation2 + $0x10] sm:$0xff] }
  0x51   :  { %2473 = vmatpush1.bf16.msra.mxu1 %v2472_v13  ;;  %2443 = vmatprep.subr.bf16.mxu0 %v2442_v14  ;;  %v1882_v51 = vld [vmem:[#allocation7 + $0x120] sm:$0xff]  ;;  %v1883_v52 = vld [vmem:[#allocation7 + $0x128] sm:$0xff]  ;;  %v2489_v54 = vpack.c.bf16 %v1851_v50, %v1850_v49  ;;  %v1852_v56 = vld [vmem:[#allocation7 + $0x30] sm:$0xff] }
  0x52   :  { %2475 = vmatprep.subr.bf16.mxu1 %v2474_v18  ;;  %v2537_v55 = vpack.c.bf16 %v1883_v52, %v1882_v51  ;;  %v1853_v57 = vld [vmem:[#allocation7 + $0x38] sm:$0xff]  ;;  %v1884_v58 = vld [vmem:[#allocation7 + $0x130] sm:$0xff]  ;;  %v1854_v63 = vld [vmem:[#allocation7 + $0x40] sm:$0xff] }
  0x53   :  { %v1885_v59 = vld [vmem:[#allocation7 + $0x138] sm:$0xff]  ;;  %v2492_v61 = vpack.c.bf16 %v1853_v57, %v1852_v56  ;;  %v1855_v1 = vld [vmem:[#allocation7 + $0x48] sm:$0xff]  ;;  %v1886_v2 = vld [vmem:[#allocation7 + $0x140] sm:$0xff] }
  0x54   :  { %2445 = vmatpush1.bf16.msra.mxu0 %v2444_v24  ;;  %v65_v60 = vld [vmem:[#allocation2 + $0x18] sm:$0xff]  ;;  %v2540_v62 = vpack.c.bf16 %v1885_v59, %v1884_v58  ;;  %v1887_v3 = vld [vmem:[#allocation7 + $0x148] sm:$0xff]  ;;  %v66_v4 = vld [vmem:[#allocation2 + $0x20] sm:$0xff]  ;;  %v2495_v5 = vpack.c.bf16 %v1855_v1, %v1854_v63 }
  0x55   :  { %2477 = vmatpush1.bf16.msra.mxu1 %v2476_v25  ;;  %2447 = vmatprep.subr.bf16.mxu0 %v2446_v26  ;;  %v2543_v6 = vpack.c.bf16 %v1887_v3, %v1886_v2  ;;  %v1856_v7 = vld [vmem:[#allocation7 + $0x50] sm:$0xff]  ;;  %v1857_v8 = vld [vmem:[#allocation7 + $0x58] sm:$0xff]  ;;  %v67_v11 = vld [vmem:[#allocation2 + $0x28] sm:$0xff] }
  0x56   :  { %2479 = vmatprep.subr.bf16.mxu1 %v2478_v29  ;;  %v1888_v9 = vld [vmem:[#allocation7 + $0x150] sm:$0xff]  ;;  %v1889_v10 = vld [vmem:[#allocation7 + $0x158] sm:$0xff]  ;;  %v2498_v12 = vpack.c.bf16 %v1857_v8, %v1856_v7  ;;  %v1858_v14 = vld [vmem:[#allocation7 + $0x60] sm:$0xff] }
  0x57   :  { %v2546_v13 = vpack.c.bf16 %v1889_v10, %v1888_v9  ;;  %v1859_v15 = vld [vmem:[#allocation7 + $0x68] sm:$0xff]  ;;  %v1890_v16 = vld [vmem:[#allocation7 + $0x160] sm:$0xff]  ;;  %v68_v18 = vld [vmem:[#allocation2 + $0x30] sm:$0xff] }
  0x58   :  { %2449 = vmatpush1.bf16.msra.mxu0 %v2448_v32  ;;  %v1891_v17 = vld [vmem:[#allocation7 + $0x168] sm:$0xff]  ;;  %v2501_v19 = vpack.c.bf16 %v1859_v15, %v1858_v14  ;;  %v1860_v21 = vld [vmem:[#allocation7 + $0x70] sm:$0xff]  ;;  %v1861_v22 = vld [vmem:[#allocation7 + $0x78] sm:$0xff] }
  0x59   :  { %2481 = vmatpush1.bf16.msra.mxu1 %v2480_v33  ;;  %2530 = vmatprep.subr.bf16.mxu0 %v3010_v40  ;;  %v2549_v20 = vpack.c.bf16 %v1891_v17, %v1890_v16  ;;  %v1892_v23 = vld [vmem:[#allocation7 + $0x170] sm:$0xff]  ;;  %v1893_v24 = vld [vmem:[#allocation7 + $0x178] sm:$0xff]  ;;  %v2504_v26 = vpack.c.bf16 %v1861_v22, %v1860_v21  ;;  %v1862_v28 = vld [vmem:[#allocation7 + $0x80] sm:$0xff] }
  0x5a   :  { %2482 = vmatprep.subr.bf16.mxu1 %v3010_v40  ;;  %v69_v25 = vld [vmem:[#allocation2 + $0x38] sm:$0xff]  ;;  %v2552_v27 = vpack.c.bf16 %v1893_v24, %v1892_v23  ;;  %v1863_v29 = vld [vmem:[#allocation7 + $0x88] sm:$0xff]  ;;  %v1894_v30 = vld [vmem:[#allocation7 + $0x180] sm:$0xff] }
  0x5b   :  { %245 = vmatmul.mubr.f32.vlgmr.msra.gmra.mrb[0].mxu0 %v62_v37  ;;  %v1895_v31 = vld [vmem:[#allocation7 + $0x188] sm:$0xff]  ;;  %v70_v32 = vld [vmem:[#allocation2 + $0x40] sm:$0xff]  ;;  %v2507_v33 = vpack.c.bf16 %v1863_v29, %v1862_v28  ;;  %v1864_v35 = vld [vmem:[#allocation7 + $0x90] sm:$0xff] }
  0x5c   :  { %502 = vmatmul.mubr.f32.vlgmr.msra.gmra.mrb[0].mxu1 %v62_v37  ;;  %250 = vmatprep.mubr.f32.mxu0 %v3009_v0  ;;  %v2555_v34 = vpack.c.bf16 %v1895_v31, %v1894_v30  ;;  %v1865_v36 = vld [vmem:[#allocation7 + $0x98] sm:$0xff]  ;;  %v1896_v37 = vld [vmem:[#allocation7 + $0x190] sm:$0xff]  ;;  %v1866_v43 = vld [vmem:[#allocation7 + $0xa0] sm:$0xff] }
  0x5d   :  { %507 = vmatprep.mubr.f32.mxu1 %v3009_v0  ;;  %2484 = vmatpush1.bf16.msra.mxu1 %v2483_v39  ;;  %v1897_v38 = vld [vmem:[#allocation7 + $0x198] sm:$0xff]  ;;  %v71_v39 = vld [vmem:[#allocation2 + $0x48] sm:$0xff]  ;;  %v1898_v45 = vld [vmem:[#allocation7 + $0x1a0] sm:$0xff] }
  0x5e   :  { %2532 = vmatpush1.bf16.msra.mxu0 %v2531_v41  ;;  %2485 = vmatprep.subr.bf16.mxu1 %v3010_v40  ;;  %v2510_v41 = vpack.c.bf16 %v1865_v36, %v1864_v35  ;;  %v2558_v42 = vpack.c.bf16 %v1897_v38, %v1896_v37  ;;  %v1867_v44 = vld [vmem:[#allocation7 + $0xa8] sm:$0xff]  ;;  %v1868_v50 = vld [vmem:[#allocation7 + $0xb0] sm:$0xff]  ;;  %v1869_v51 = vld [vmem:[#allocation7 + $0xb8] sm:$0xff]  ;;  %v160_v38 = vlaneseq }
  0x5f   :  { %251 = vmatmul.mubr.f32.gmra.mrb[2].mxu0 %v63_v46  ;;  %2533 = vmatprep.subr.bf16.mxu0 %v3010_v40  ;;  %v1900_v52 = vld [vmem:[#allocation7 + $0x1b0] sm:$0xff]  ;;  %v1870_v57 = vld [vmem:[#allocation7 + $0xc0] sm:$0xff]  ;;  %v1871_v58 = vld [vmem:[#allocation7 + $0xc8] sm:$0xff] }
  0x60   :  { %508 = vmatmul.mubr.f32.gmra.mrb[2].mxu1 %v63_v46  ;;  %256 = vmatprep.mubr.f32.mxu0 %v3009_v0  ;;  %v1899_v46 = vld [vmem:[#allocation7 + $0x1a8] sm:$0xff]  ;;  %v1902_v59 = vld [vmem:[#allocation7 + $0x1c0] sm:$0xff]  ;;  %v76_v2 = vld [vmem:[#allocation2 + $0x70] sm:$0xff] }
  0x61   :  { %513 = vmatprep.mubr.f32.mxu1 %v3009_v0  ;;  %2487 = vmatpush1.bf16.msra.mxu1 %v2486_v47  ;;  %v72_v47 = vld [vmem:[#allocation2 + $0x50] sm:$0xff]  ;;  %v2561_v49 = vpack.c.bf16 %v1899_v46, %v1898_v45  ;;  %v75_v1 = vld [vmem:[#allocation2 + $0x68] sm:$0xff]  ;;  %v77_v3 = vld [vmem:[#allocation2 + $0x78] sm:$0xff] }
  0x62   :  { %2535 = vmatpush1.bf16.msra.mxu0 %v2534_v48  ;;  %2488 = vmatprep.subr.bf16.mxu1 %v3010_v40  ;;  %v2513_v48 = vpack.c.bf16 %v1867_v44, %v1866_v43  ;;  %v81_v7 = vld [vmem:[#allocation2 + $0x98] sm:$0xff]  ;;  %v82_v8 = vld [vmem:[#allocation2 + $0xa0] sm:$0xff]  ;;  %v83_v9 = vld [vmem:[#allocation2 + $0xa8] sm:$0xff] }
  0x63   :  { %257 = vmatmul.mubr.f32.gmra.mrb[4].mxu0 %v64_v53  ;;  %2536 = vmatprep.subr.bf16.mxu0 %v3010_v40  ;;  %v84_v10 = vld [vmem:[#allocation2 + $0xb0] sm:$0xff]  ;;  %v1873_v15 = vld [vmem:[#allocation7 + $0xd8] sm:$0xff]  ;;  %v90_v22 = vld [vmem:[#allocation2 + $0xe0] sm:$0xff] }
  0x64   :  { %514 = vmatmul.mubr.f32.gmra.mrb[4].mxu1 %v64_v53  ;;  %262 = vmatprep.mubr.f32.mxu0 %v3009_v0  ;;  %v1901_v53 = vld [vmem:[#allocation7 + $0x1b8] sm:$0xff]  ;;  %v1872_v14 = vld [vmem:[#allocation7 + $0xd0] sm:$0xff]  ;;  %v91_v23 = vld [vmem:[#allocation2 + $0xe8] sm:$0xff] }
  0x65   :  { %519 = vmatprep.mubr.f32.mxu1 %v3009_v0  ;;  %2490 = vmatpush1.bf16.msra.mxu1 %v2489_v54  ;;  %v73_v54 = vld [vmem:[#allocation2 + $0x58] sm:$0xff]  ;;  %v2564_v56 = vpack.c.bf16 %v1901_v53, %v1900_v52  ;;  %v2522_v16 = vpack.c.bf16 %v1873_v15, %v1872_v14  ;;  %v88_v17 = vld [vmem:[#allocation2 + $0xd0] sm:$0xff]  ;;  %v1874_v24 = vld [vmem:[#allocation7 + $0xe0] sm:$0xff] }
  0x66   :  { %2538 = vmatpush1.bf16.msra.mxu0 %v2537_v55  ;;  %2491 = vmatprep.subr.bf16.mxu1 %v3010_v40  ;;  %v2516_v55 = vpack.c.bf16 %v1869_v51, %v1868_v50  ;;  %v1907_v28 = vld [vmem:[#allocation7 + $0x1e8] sm:$0xff]  ;;  %v92_v29 = vld [vmem:[#allocation2 + $0xf0] sm:$0xff]  ;;  %v93_v31 = vld [vmem:[#allocation2 + $0xf8] sm:$0xff] }
  0x67   :  { %263 = vmatmul.mubr.f32.gmra.mrb[6].mxu0 %v65_v60  ;;  %2539 = vmatprep.subr.bf16.mxu0 %v3010_v40  ;;  %v1908_v35 = vld [vmem:[#allocation7 + $0x1f0] sm:$0xff]  ;;  %v1909_v36 = vld [vmem:[#allocation7 + $0x1f8] sm:$0xff] }
  0x68   :  { %520 = vmatmul.mubr.f32.gmra.mrb[6].mxu1 %v65_v60  ;;  %268 = vmatprep.mubr.f32.mxu0 %v3009_v0  ;;  %v1903_v60 = vld [vmem:[#allocation7 + $0x1c8] sm:$0xff]  ;;  %v2576_v37 = vpack.c.bf16 %v1909_v36, %v1908_v35 }
  0x69   :  { %525 = vmatprep.mubr.f32.mxu1 %v3009_v0  ;;  %2493 = vmatpush1.bf16.msra.mxu1 %v2492_v61  ;;  %v74_v61 = vld [vmem:[#allocation2 + $0x60] sm:$0xff]  ;;  %v2567_v63 = vpack.c.bf16 %v1903_v60, %v1902_v59 }
  0x6a   :  { %2541 = vmatpush1.bf16.msra.mxu0 %v2540_v62  ;;  %2494 = vmatprep.subr.bf16.mxu1 %v3010_v40  ;;  %v2519_v62 = vpack.c.bf16 %v1871_v58, %v1870_v57 }
  0x6b   :  { %269 = vmatmul.mubr.f32.gmra.mrb[8].mxu0 %v66_v4  ;;  %2542 = vmatprep.subr.bf16.mxu0 %v3010_v40 }
  0x6c   :  { %526 = vmatmul.mubr.f32.gmra.mrb[8].mxu1 %v66_v4  ;;  %274 = vmatprep.mubr.f32.mxu0 %v3009_v0  ;;  %v78_v4 = vld [vmem:[#allocation2 + $0x80] sm:$0xff] }
  0x6d   :  { %531 = vmatprep.mubr.f32.mxu1 %v3009_v0  ;;  %2496 = vmatpush1.bf16.msra.mxu1 %v2495_v5  ;;  %v79_v5 = vld [vmem:[#allocation2 + $0x88] sm:$0xff] }
  0x6e   :  { %2544 = vmatpush1.bf16.msra.mxu0 %v2543_v6  ;;  %2497 = vmatprep.subr.bf16.mxu1 %v3010_v40  ;;  %v80_v6 = vld [vmem:[#allocation2 + $0x90] sm:$0xff] }
  0x6f   :  { %275 = vmatmul.mubr.f32.gmra.mrb[10].mxu0 %v67_v11  ;;  %2545 = vmatprep.subr.bf16.mxu0 %v3010_v40 }
  0x70   :  { %532 = vmatmul.mubr.f32.gmra.mrb[10].mxu1 %v67_v11  ;;  %280 = vmatprep.mubr.f32.mxu0 %v3009_v0  ;;  %v85_v11 = vld [vmem:[#allocation2 + $0xb8] sm:$0xff] }
  0x71   :  { %537 = vmatprep.mubr.f32.mxu1 %v3009_v0  ;;  %2499 = vmatpush1.bf16.msra.mxu1 %v2498_v12  ;;  %v86_v12 = vld [vmem:[#allocation2 + $0xc0] sm:$0xff] }
  0x72   :  { %2547 = vmatpush1.bf16.msra.mxu0 %v2546_v13  ;;  %2500 = vmatprep.subr.bf16.mxu1 %v3010_v40  ;;  %v87_v13 = vld [vmem:[#allocation2 + $0xc8] sm:$0xff] }
  0x73   :  { %281 = vmatmul.mubr.f32.gmra.mrb[12].mxu0 %v68_v18  ;;  %2548 = vmatprep.subr.bf16.mxu0 %v3010_v40 }
  0x74   :  { %538 = vmatmul.mubr.f32.gmra.mrb[12].mxu1 %v68_v18  ;;  %286 = vmatprep.mubr.f32.mxu0 %v3009_v0  ;;  %v1904_v18 = vld [vmem:[#allocation7 + $0x1d0] sm:$0xff] }
  0x75   :  { %543 = vmatprep.mubr.f32.mxu1 %v3009_v0  ;;  %2502 = vmatpush1.bf16.msra.mxu1 %v2501_v19  ;;  %v1905_v19 = vld [vmem:[#allocation7 + $0x1d8] sm:$0xff] }
  0x76   :  { %2550 = vmatpush1.bf16.msra.mxu0 %v2549_v20  ;;  %2503 = vmatprep.subr.bf16.mxu1 %v3010_v40  ;;  %v89_v20 = vld [vmem:[#allocation2 + $0xd8] sm:$0xff]  ;;  %v2570_v21 = vpack.c.bf16 %v1905_v19, %v1904_v18 }
  0x77   :  { %287 = vmatmul.mubr.f32.gmra.mrb[14].mxu0 %v69_v25  ;;  %2551 = vmatprep.subr.bf16.mxu0 %v3010_v40 }
  0x78   :  { %544 = vmatmul.mubr.f32.gmra.mrb[14].mxu1 %v69_v25  ;;  %292 = vmatprep.mubr.f32.mxu0 %v3009_v0  ;;  %v1875_v25 = vld [vmem:[#allocation7 + $0xe8] sm:$0xff] }
  0x79   :  { %549 = vmatprep.mubr.f32.mxu1 %v3009_v0  ;;  %2505 = vmatpush1.bf16.msra.mxu1 %v2504_v26  ;;  %v2525_v26 = vpack.c.bf16 %v1875_v25, %v1874_v24 }
  0x7a   :  { %2553 = vmatpush1.bf16.msra.mxu0 %v2552_v27  ;;  %2506 = vmatprep.subr.bf16.mxu1 %v3010_v40  ;;  %v1906_v27 = vld [vmem:[#allocation7 + $0x1e0] sm:$0xff] }
  0x7b   :  { %293 = vmatmul.mubr.f32.gmra.mrb[16].mxu0 %v70_v32  ;;  %2554 = vmatprep.subr.bf16.mxu0 %v3010_v40  ;;  %v2573_v30 = vpack.c.bf16 %v1907_v28, %v1906_v27 }
  0x7c   :  { %550 = vmatmul.mubr.f32.gmra.mrb[16].mxu1 %v70_v32  ;;  %298 = vmatprep.mubr.f32.mxu0 %v3009_v0  ;;  %v1876_v32 = vld [vmem:[#allocation7 + $0xf0] sm:$0xff] }
  0x7d   :  { %555 = vmatprep.mubr.f32.mxu1 %v3009_v0  ;;  %2508 = vmatpush1.bf16.msra.mxu1 %v2507_v33  ;;  %v1877_v33 = vld [vmem:[#allocation7 + $0xf8] sm:$0xff] }
  0x7e   :  { %2556 = vmatpush1.bf16.msra.mxu0 %v2555_v34  ;;  %2509 = vmatprep.subr.bf16.mxu1 %v3010_v40  ;;  %v2528_v34 = vpack.c.bf16 %v1877_v33, %v1876_v32 }
  0x7f   :  { %299 = vmatmul.mubr.f32.gmra.mrb[18].mxu0 %v71_v39  ;;  %2557 = vmatprep.subr.bf16.mxu0 %v3010_v40 }
  0x80   :  { %556 = vmatmul.mubr.f32.gmra.mrb[18].mxu1 %v71_v39  ;;  %304 = vmatprep.mubr.f32.mxu0 %v3009_v0  ;;  %v161_v39 = vshrl.u32 %v160_v38, 7 }
  0x81   :  { %561 = vmatprep.mubr.f32.mxu1 %v3009_v0  ;;  %2511 = vmatpush1.bf16.msra.mxu1 %v2510_v41 }
  0x82   :  { %2559 = vmatpush1.bf16.msra.mxu0 %v2558_v42  ;;  %2512 = vmatprep.subr.bf16.mxu1 %v3010_v40  ;;  %v162_v41 = vsub.s32 0, %v161_v39  ;;  %v170_v42 = vsub.s32 2, %v161_v39  ;;  %v166_v43 = vsub.s32 1, %v161_v39 }
  0x83   :  { %305 = vmatmul.mubr.f32.gmra.mrb[20].mxu0 %v72_v47  ;;  %2560 = vmatprep.subr.bf16.mxu0 %v3010_v40 }
  0x84   :  { %562 = vmatmul.mubr.f32.gmra.mrb[20].mxu1 %v72_v47  ;;  %310 = vmatprep.mubr.f32.mxu0 %v3009_v0 }
  0x85   :  { %567 = vmatprep.mubr.f32.mxu1 %v3009_v0  ;;  %2514 = vmatpush1.bf16.msra.mxu1 %v2513_v48 }
  0x86   :  { %2562 = vmatpush1.bf16.msra.mxu0 %v2561_v49  ;;  %2515 = vmatprep.subr.bf16.mxu1 %v3010_v40 }
  0x87   :  { %311 = vmatmul.mubr.f32.gmra.mrb[22].mxu0 %v73_v54  ;;  %2563 = vmatprep.subr.bf16.mxu0 %v3010_v40 }
  0x88   :  { %568 = vmatmul.mubr.f32.gmra.mrb[22].mxu1 %v73_v54  ;;  %316 = vmatprep.mubr.f32.mxu0 %v3009_v0 }
  0x89   :  { %573 = vmatprep.mubr.f32.mxu1 %v3009_v0  ;;  %2517 = vmatpush1.bf16.msra.mxu1 %v2516_v55 }
  0x8a   :  { %2565 = vmatpush1.bf16.msra.mxu0 %v2564_v56  ;;  %2518 = vmatprep.subr.bf16.mxu1 %v3010_v40 }
  0x8b   :  { %317 = vmatmul.mubr.f32.gmra.mrb[24].mxu0 %v74_v61  ;;  %2566 = vmatprep.subr.bf16.mxu0 %v3010_v40 }
  0x8c   :  { %574 = vmatmul.mubr.f32.gmra.mrb[24].mxu1 %v74_v61  ;;  %322 = vmatprep.mubr.f32.mxu0 %v3009_v0 }
  0x8d   :  { %579 = vmatprep.mubr.f32.mxu1 %v3009_v0  ;;  %2520 = vmatpush1.bf16.msra.mxu1 %v2519_v62 }
  0x8e   :  { %2568 = vmatpush1.bf16.msra.mxu0 %v2567_v63  ;;  %2521 = vmatprep.subr.bf16.mxu1 %v3010_v40 }
  0x8f   :  { %323 = vmatmul.mubr.f32.gmra.mrb[26].mxu0 %v75_v1  ;;  %2569 = vmatprep.subr.bf16.mxu0 %v3010_v40 }
  0x90   :  { %580 = vmatmul.mubr.f32.gmra.mrb[26].mxu1 %v75_v1  ;;  %328 = vmatprep.mubr.f32.mxu0 %v3009_v0 }
  0x91   :  { %585 = vmatprep.mubr.f32.mxu1 %v3009_v0  ;;  %2523 = vmatpush1.bf16.msra.mxu1 %v2522_v16 }
  0x92   :  { %2524 = vmatprep.subr.bf16.mxu1 %v3010_v40  ;;  %2571 = vmatpush1.bf16.msra.mxu0 %v2570_v21 }
  0x93   :  { %329 = vmatmul.mubr.f32.gmra.mrb[28].mxu0 %v76_v2  ;;  %2572 = vmatprep.subr.bf16.mxu0 %v3010_v40 }
  0x94   :  { %586 = vmatmul.mubr.f32.gmra.mrb[28].mxu1 %v76_v2  ;;  %334 = vmatprep.mubr.f32.mxu0 %v3009_v0 }
  0x95   :  { %591 = vmatprep.mubr.f32.mxu1 %v3009_v0  ;;  %2526 = vmatpush1.bf16.msra.mxu1 %v2525_v26 }
  0x96   :  { %2574 = vmatpush1.bf16.msra.mxu0 %v2573_v30  ;;  %2527 = vmatprep.subr.bf16.mxu1 %v3010_v40 }
  0x97   :  { %335 = vmatmul.mubr.f32.gmra.mrb[30].mxu0 %v77_v3  ;;  %2575 = vmatprep.subr.bf16.mxu0 %v3010_v40  ;;  %v158_v40 = vld [vmem:[%s4822_s2] sm:$0xf] }
  0x98   :  { %592 = vmatmul.mubr.f32.gmra.mrb[30].mxu1 %v77_v3  ;;  %340 = vmatprep.mubr.f32.mxu0 %v3009_v0  ;;  %v3183_v44 = vrot.slane %v158_v40, %v162_v41  ;;  %v3185_v45 = vrot.slane %v158_v40, %v170_v42  ;;  %v3187_v46 = vrot.slane %v158_v40, %v166_v43 }
  0x99   :  { %597 = vmatprep.mubr.f32.mxu1 %v3009_v0  ;;  %2529 = vmatpush1.bf16.msra.mxu1 %v2528_v34 }
  0x9a   :  { %2577 = vmatpush1.bf16.msra.mxu0 %v2576_v37 }
  0x9b   :  { %341 = vmatmul.mubr.f32.gmra.mrb[32].mxu0 %v78_v4 }
  0x9c   :  { %598 = vmatmul.mubr.f32.gmra.mrb[32].mxu1 %v78_v4  ;;  %346 = vmatprep.mubr.f32.mxu0 %v3009_v0 }
  0x9d   :  { %603 = vmatprep.mubr.f32.mxu1 %v3009_v0 }
  0x9f   :  { %347 = vmatmul.mubr.f32.gmra.mrb[34].mxu0 %v79_v5 }
  0xa0   :  { %604 = vmatmul.mubr.f32.gmra.mrb[34].mxu1 %v79_v5  ;;  %352 = vmatprep.mubr.f32.mxu0 %v3009_v0 }
  0xa1   :  { %609 = vmatprep.mubr.f32.mxu1 %v3009_v0 }
  0xa3   :  { %353 = vmatmul.mubr.f32.gmra.mrb[36].mxu0 %v80_v6 }
  0xa4   :  { %610 = vmatmul.mubr.f32.gmra.mrb[36].mxu1 %v80_v6  ;;  %358 = vmatprep.mubr.f32.mxu0 %v3009_v0 }
  0xa5   :  { %615 = vmatprep.mubr.f32.mxu1 %v3009_v0 }
  0xa7   :  { %359 = vmatmul.mubr.f32.gmra.mrb[38].mxu0 %v81_v7 }
  0xa8   :  { %616 = vmatmul.mubr.f32.gmra.mrb[38].mxu1 %v81_v7  ;;  %364 = vmatprep.mubr.f32.mxu0 %v3009_v0 }
  0xa9   :  { %621 = vmatprep.mubr.f32.mxu1 %v3009_v0 }
  0xab   :  { %365 = vmatmul.mubr.f32.gmra.mrb[40].mxu0 %v82_v8 }
  0xac   :  { %622 = vmatmul.mubr.f32.gmra.mrb[40].mxu1 %v82_v8  ;;  %370 = vmatprep.mubr.f32.mxu0 %v3009_v0 }
  0xad   :  { %627 = vmatprep.mubr.f32.mxu1 %v3009_v0 }
  0xaf   :  { %371 = vmatmul.mubr.f32.gmra.mrb[42].mxu0 %v83_v9 }
  0xb0   :  { %628 = vmatmul.mubr.f32.gmra.mrb[42].mxu1 %v83_v9  ;;  %376 = vmatprep.mubr.f32.mxu0 %v3009_v0 }
  0xb1   :  { %633 = vmatprep.mubr.f32.mxu1 %v3009_v0 }
  0xb3   :  { %377 = vmatmul.mubr.f32.gmra.mrb[44].mxu0 %v84_v10 }
  0xb4   :  { %634 = vmatmul.mubr.f32.gmra.mrb[44].mxu1 %v84_v10  ;;  %382 = vmatprep.mubr.f32.mxu0 %v3009_v0 }
  0xb5   :  { %639 = vmatprep.mubr.f32.mxu1 %v3009_v0 }
  0xb7   :  { %383 = vmatmul.mubr.f32.gmra.mrb[46].mxu0 %v85_v11 }
  0xb8   :  { %640 = vmatmul.mubr.f32.gmra.mrb[46].mxu1 %v85_v11  ;;  %388 = vmatprep.mubr.f32.mxu0 %v3009_v0 }
  0xb9   :  { %645 = vmatprep.mubr.f32.mxu1 %v3009_v0 }
  0xbb   :  { %389 = vmatmul.mubr.f32.gmra.mrb[48].mxu0 %v86_v12 }
  0xbc   :  { %646 = vmatmul.mubr.f32.gmra.mrb[48].mxu1 %v86_v12  ;;  %394 = vmatprep.mubr.f32.mxu0 %v3009_v0 }
  0xbd   :  { %651 = vmatprep.mubr.f32.mxu1 %v3009_v0 }
  0xbf   :  { %395 = vmatmul.mubr.f32.gmra.mrb[50].mxu0 %v87_v13 }
  0xc0   :  { %652 = vmatmul.mubr.f32.gmra.mrb[50].mxu1 %v87_v13  ;;  %400 = vmatprep.mubr.f32.mxu0 %v3009_v0 }
  0xc1   :  { %657 = vmatprep.mubr.f32.mxu1 %v3009_v0 }
  0xc3   :  { %401 = vmatmul.mubr.f32.gmra.mrb[52].mxu0 %v88_v17 }
  0xc4   :  { %658 = vmatmul.mubr.f32.gmra.mrb[52].mxu1 %v88_v17  ;;  %406 = vmatprep.mubr.f32.mxu0 %v3009_v0 }
  0xc5   :  { %663 = vmatprep.mubr.f32.mxu1 %v3009_v0 }
  0xc7   :  { %407 = vmatmul.mubr.f32.gmra.mrb[54].mxu0 %v89_v20 }
  0xc8   :  { %664 = vmatmul.mubr.f32.gmra.mrb[54].mxu1 %v89_v20  ;;  %412 = vmatprep.mubr.f32.mxu0 %v3009_v0 }
  0xc9   :  { %669 = vmatprep.mubr.f32.mxu1 %v3009_v0 }
  0xcb   :  { %413 = vmatmul.mubr.f32.gmra.mrb[56].mxu0 %v90_v22 }
  0xcc   :  { %670 = vmatmul.mubr.f32.gmra.mrb[56].mxu1 %v90_v22  ;;  %418 = vmatprep.mubr.f32.mxu0 %v3009_v0 }
  0xcd   :  { %675 = vmatprep.mubr.f32.mxu1 %v3009_v0 }
  0xcf   :  { %419 = vmatmul.mubr.f32.gmra.mrb[58].mxu0 %v91_v23 }
  0xd0   :  { %676 = vmatmul.mubr.f32.gmra.mrb[58].mxu1 %v91_v23  ;;  %424 = vmatprep.mubr.f32.mxu0 %v3009_v0 }
  0xd1   :  { %681 = vmatprep.mubr.f32.mxu1 %v3009_v0 }
  0xd3   :  { %425 = vmatmul.mubr.f32.gmra.mrb[60].mxu0 %v92_v29 }
  0xd4   :  { %682 = vmatmul.mubr.f32.gmra.mrb[60].mxu1 %v92_v29  ;;  %430 = vmatprep.mubr.f32.mxu0 %v3009_v0 }
  0xd5   :  { %687 = vmatprep.mubr.f32.mxu1 %v3009_v0  ;;  %v174_v0 = vsub.s32 3, %v161_v39 }
  0xd7   :  { %431 = vmatmul.mubr.f32.gmra.mrb[62].mxu0 %v93_v31  ;;  %v3189_v47 = vrot.slane %v158_v40, %v174_v0 }
  0xd8   :  { %688 = vmatmul.mubr.f32.gmra.mrb[62].mxu1 %v93_v31 }
 0x12e   :  { %v246_v48 = vpop.f32.mrb[0].mxu0 }
 0x12f   :  { %v247_v49 = vadd.f32 %v246_v48, %v3183_v44  ;;  %v503_v50 = vpop.f32.mrb[0].mxu1  ;;  %v248_v51 = vpop.f32.mrb[1].mxu0 }
 0x130   :  { %v504_v52 = vadd.f32 %v503_v50, %v3185_v45  ;;  %v249_v53 = vadd.f32 %v248_v51, %v3187_v46  ;;  %v505_v54 = vpop.f32.mrb[1].mxu1 }
 0x131   :  { %v694_v55 = vmul.f32 %v247_v49, %v247_v49  ;;  %v506_v56 = vadd.f32 %v505_v54, %v3189_v47  ;;  %v950_v10 = vmul.f32 0.7978846, %v247_v49  ;;  %v3204_v29 = vmul.f32 0.5, %v247_v49 }
 0x132   :  { %v696_v57 = vmul.f32 %v504_v52, %v504_v52  ;;  %v695_v58 = vmul.f32 %v249_v53, %v249_v53  ;;  %v252_v59 = vpop.f32.mrb[2].mxu0  ;;  %v952_v15 = vmul.f32 0.7978846, %v504_v52  ;;  %v951_v30 = vmul.f32 0.7978846, %v249_v53 }
 0x133   :  { %v1078_v60 = vmul.f32 0.044715, %v694_v55  ;;  %v697_v61 = vmul.f32 %v506_v56, %v506_v56  ;;  %v509_v62 = vpop.f32.mrb[2].mxu1  ;;  %v253_v1 = vadd.f32 %v252_v59, %v3183_v44  ;;  %v254_v2 = vpop.f32.mrb[3].mxu0  ;;  %v953_v34 = vmul.f32 0.7978846, %v506_v56 }
 0x134   :  { %v1080_v63 = vmul.f32 0.044715, %v696_v57  ;;  %v510_v4 = vadd.f32 %v509_v62, %v3185_v45  ;;  %v511_v5 = vpop.f32.mrb[3].mxu1  ;;  %v1079_v7 = vmul.f32 0.044715, %v695_v58  ;;  %v255_v21 = vadd.f32 %v254_v2, %v3187_v46 }
 0x135   :  { %v1206_v3 = vadd.f32 1.0, %v1078_v60  ;;  %v698_v8 = vmul.f32 %v253_v1, %v253_v1  ;;  %v1081_v11 = vmul.f32 0.044715, %v697_v61  ;;  %v512_v22 = vadd.f32 %v511_v5, %v3189_v47 }
 0x136   :  { %v1208_v6 = vadd.f32 1.0, %v1080_v63  ;;  %v258_v9 = vpop.f32.mrb[4].mxu0  ;;  %v700_v12 = vmul.f32 %v510_v4, %v510_v4  ;;  %v1207_v20 = vadd.f32 1.0, %v1079_v7  ;;  %v699_v31 = vmul.f32 %v255_v21, %v255_v21 }
 0x137   :  { %v515_v13 = vpop.f32.mrb[4].mxu1  ;;  %v260_v14 = vpop.f32.mrb[5].mxu0  ;;  %v1334_v17 = vmul.f32 %v1206_v3, %v950_v10  ;;  %v1082_v18 = vmul.f32 0.044715, %v698_v8  ;;  %v1209_v24 = vadd.f32 1.0, %v1081_v11  ;;  %v259_v26 = vadd.f32 %v258_v9, %v3183_v44 }
 0x138   :  { %v517_v16 = vpop.f32.mrb[5].mxu1  ;;  %v1336_v19 = vmul.f32 %v1208_v6, %v952_v15  ;;  %v1084_v25 = vmul.f32 0.044715, %v700_v12  ;;  %v516_v32 = vadd.f32 %v515_v13, %v3185_v45  ;;  %v701_v36 = vmul.f32 %v512_v22, %v512_v22 }
 0x139   :  { %2652 = vtanh.f32 %v1334_v17  ;;  %v1210_v35 = vadd.f32 1.0, %v1082_v18  ;;  %v1335_v37 = vmul.f32 %v1207_v20, %v951_v30  ;;  %v1083_v38 = vmul.f32 0.044715, %v699_v31 }
 0x13a   :  { %v264_v23 = vpop.f32.mrb[6].mxu0  ;;  %2654 = vtanh.f32 %v1336_v19  ;;  %v702_v39 = vmul.f32 %v259_v26, %v259_v26  ;;  %v3211_v40 = vmul.f32 0.5, %v504_v52  ;;  %v1337_v42 = vmul.f32 %v1209_v24, %v953_v34 }
 0x13b   :  { %v3200_v27 = vpop.f32.mrb[6].mxu1  ;;  %v3202_v28 = vpop.f32.mrb[7].mxu0  ;;  %v954_v43 = vmul.f32 0.7978846, %v253_v1  ;;  %v1212_v0 = vadd.f32 1.0, %v1084_v25  ;;  %v3215_v49 = vmul.f32 0.5, %v249_v53  ;;  %v704_v54 = vmul.f32 %v516_v32, %v516_v32 }
 0x13c   :  { %v3207_v33 = vpop.f32.mrb[7].mxu1  ;;  %v3217_v50 = vmul.f32 0.5, %v506_v56  ;;  %v1085_v51 = vmul.f32 0.044715, %v701_v36  ;;  %v956_v59 = vmul.f32 0.7978846, %v510_v4  ;;  %v261_v52 = vadd.f32 %v260_v14, %v3187_v46 }
 0x13d   :  { %v1338_v58 = vmul.f32 %v1210_v35, %v954_v43  ;;  %v3225_v60 = vadd.f32 %v517_v16, %v3189_v47  ;;  %2656 = vtanh.f32 %v1335_v37  ;;  %v3227_v61 = vmul.f32 0.5, %v253_v1 }
 0x13e   :  { %v3209_v41 = vpop.f32.mrb[8].mxu0  ;;  %v1211_v53 = vadd.f32 1.0, %v1083_v38  ;;  %v1086_v62 = vmul.f32 0.044715, %v702_v39  ;;  %2658 = vtanh.f32 %v1337_v42  ;;  %v3231_v63 = vmul.f32 0.5, %v510_v4 }
 0x13f   :  { %v3213_v48 = vpop.f32.mrb[8].mxu1  ;;  %v3219_v55 = vpop.f32.mrb[9].mxu0  ;;  %v1340_v2 = vmul.f32 %v1212_v0, %v956_v59  ;;  %v703_v3 = vmul.f32 %v261_v52, %v261_v52  ;;  %v955_v7 = vmul.f32 0.7978846, %v255_v21  ;;  %v1213_v8 = vadd.f32 1.0, %v1085_v51 }
 0x140   :  { %v3221_v57 = vpop.f32.mrb[9].mxu1  ;;  %v1088_v9 = vmul.f32 0.044715, %v704_v54  ;;  %v3238_v10 = vadd.f32 %v264_v23, %v3183_v44  ;;  %2660 = vtanh.f32 %v1338_v58  ;;  %v3242_v11 = vmul.f32 0.5, %v255_v21 }
 0x141   :  { %v3244_v12 = vmul.f32 0.5, %v512_v22  ;;  %v705_v4 = vmul.f32 %v3225_v60, %v3225_v60  ;;  %v1339_v13 = vmul.f32 %v1211_v53, %v955_v7  ;;  %v957_v14 = vmul.f32 0.7978846, %v512_v22 }
 0x142   :  { %v3229_v56 = vpop.f32.mrb[10].mxu0  ;;  %v3248_v15 = vmul.f32 0.5, %v259_v26  ;;  %v1214_v16 = vadd.f32 1.0, %v1086_v62  ;;  %2662 = vtanh.f32 %v1340_v2  ;;  %v958_v19 = vmul.f32 0.7978846, %v259_v26 }
 0x143   :  { %v3233_v5 = vpop.f32.mrb[10].mxu1  ;;  %v3235_v6 = vpop.f32.mrb[11].mxu0  ;;  %v3252_v20 = vmul.f32 0.5, %v516_v32  ;;  %v1087_v23 = vmul.f32 0.044715, %v703_v3  ;;  %v1341_v25 = vmul.f32 %v1213_v8, %v957_v14  ;;  %v1216_v31 = vadd.f32 1.0, %v1088_v9 }
 0x144   :  { %v3240_v1 = vpop.f32.mrb[11].mxu1  ;;  %4830 = vst [vmem:[#allocation12_spill] sm:$0xff] %v3248_v15  ;;  %v2653_v18 = vpop.eup %2652  ;;  %v960_v30 = vmul.f32 0.7978846, %v516_v32  ;;  %v706_v22 = vmul.f32 %v3238_v10, %v3238_v10  ;;  %v3262_v36 = vmul.f32 0.5, %v261_v52  ;;  %v522_v26 = vadd.f32 %v3200_v27, %v3185_v45 }
 0x145   :  { %4831 = vst [vmem:[#allocation13_spill] sm:$0xff] %v3252_v20  ;;  %v2655_v24 = vpop.eup %2654  ;;  %v1089_v37 = vmul.f32 0.044715, %v705_v4  ;;  %v267_v38 = vadd.f32 %v3202_v28, %v3187_v46  ;;  %v1590_v39 = vadd.f32 1.0, %v2653_v18  ;;  %2664 = vtanh.f32 %v1339_v13 }
 0x146   :  { %v3250_v17 = vpop.f32.mrb[12].mxu0  ;;  %v1342_v32 = vmul.f32 %v1214_v16, %v958_v19  ;;  %v3270_v42 = vadd.f32 %v3207_v33, %v3189_v47  ;;  %v1592_v0 = vadd.f32 1.0, %v2655_v24  ;;  %v1215_v51 = vadd.f32 1.0, %v1087_v23 }
 0x147   :  { %v3254_v21 = vpop.f32.mrb[12].mxu1  ;;  %v3258_v34 = vpop.f32.mrb[13].mxu0  ;;  %v708_v54 = vmul.f32 %v522_v26, %v522_v26  ;;  %v3276_v58 = vadd.f32 %v3209_v41, %v3183_v44  ;;  %v1344_v53 = vmul.f32 %v1216_v31, %v960_v30  ;;  %v1090_v62 = vmul.f32 0.044715, %v706_v22 }
 0x148   :  { %v3260_v35 = vpop.f32.mrb[13].mxu1  ;;  %v3282_v28 = vpop.eup %2656  ;;  %v707_v2 = vmul.f32 %v267_v38, %v267_v38  ;;  %v3286_v33 = vadd.f32 %v3213_v48, %v3185_v45  ;;  %2666 = vtanh.f32 %v1341_v25  ;;  %v959_v41 = vmul.f32 0.7978846, %v261_v52 }
 0x149   :  { %v3290_v7 = vpop.eup %2658  ;;  %v1217_v8 = vadd.f32 1.0, %v1089_v37  ;;  %v709_v9 = vmul.f32 %v3270_v42, %v3270_v42  ;;  %v3295_v4 = vmul.f32 %v1590_v39, %v3204_v29  ;;  %2668 = vtanh.f32 %v1342_v32 }
 0x14a   :  { %v3272_v43 = vpop.f32.mrb[14].mxu0  ;;  %v1092_v13 = vmul.f32 0.044715, %v708_v54  ;;  %v1091_v14 = vmul.f32 0.044715, %v707_v2  ;;  %v3299_v48 = vpop.eup %2660  ;;  %v1343_v18 = vmul.f32 %v1215_v51, %v959_v41  ;;  %v3302_v19 = vmul.f32 0.5, %v3225_v60 }
 0x14b   :  { %v3278_v27 = vpop.f32.mrb[14].mxu1  ;;  %v3280_v59 = vpop.f32.mrb[15].mxu0  ;;  %v961_v52 = vmul.f32 0.7978846, %v3225_v60  ;;  %v710_v23 = vmul.f32 %v3276_v58, %v3276_v58  ;;  %v3312_v25 = vmul.f32 %v1592_v0, %v3211_v40  ;;  %2670 = vtanh.f32 %v1344_v53 }
 0x14c   :  { %v3288_v3 = vpop.f32.mrb[15].mxu1  ;;  %4832 = vst [vmem:[#allocation14_spill] sm:$0xff] %v3302_v19  ;;  %v1218_v30 = vadd.f32 1.0, %v1090_v62  ;;  %v712_v31 = vmul.f32 %v3286_v33, %v3286_v33  ;;  %v3318_v37 = vpop.eup %2662  ;;  %v3321_v39 = vmul.f32 0.5, %v3238_v10  ;;  %v962_v32 = vmul.f32 0.7978846, %v3238_v10 }
 0x14d   :  { %v1345_v60 = vmul.f32 %v1217_v8, %v961_v52  ;;  %v1093_v51 = vmul.f32 0.044715, %v709_v9  ;;  %v3324_v54 = vmul.f32 0.5, %v522_v26  ;;  %v1220_v40 = vadd.f32 1.0, %v1092_v13 }
 0x14e   :  { %v3297_v16 = vpop.f32.mrb[16].mxu0  ;;  %4833 = vst [vmem:[#allocation15_spill] sm:$0xff] %v3321_v39  ;;  %v1219_v0 = vadd.f32 1.0, %v1091_v14  ;;  %v273_v53 = vadd.f32 %v3219_v55, %v3187_v46  ;;  %2672 = vtanh.f32 %v1343_v18  ;;  %v964_v2 = vmul.f32 0.7978846, %v522_v26 }
 0x14f   :  { %v3307_v24 = vpop.f32.mrb[16].mxu1  ;;  %v3309_v29 = vpop.f32.mrb[17].mxu0  ;;  %4834 = vst [vmem:[#allocation16_spill] sm:$0xff] %v3324_v54  ;;  %v1094_v41 = vmul.f32 0.044715, %v710_v23  ;;  %v530_v8 = vadd.f32 %v3221_v57, %v3189_v47  ;;  %v1346_v9 = vmul.f32 %v1218_v30, %v962_v32  ;;  %2674 = vtanh.f32 %v1345_v60 }
 0x150   :  { %v3316_v22 = vpop.f32.mrb[17].mxu1  ;;  %v3336_v10 = vpop.eup %2664  ;;  %v963_v13 = vmul.f32 0.7978846, %v267_v38  ;;  %v1096_v14 = vmul.f32 0.044715, %v712_v31  ;;  %v711_v54 = vmul.f32 %v273_v53, %v273_v53  ;;  %v3340_v55 = vmul.f32 0.5, %v267_v38 }
 0x151   :  { %v1221_v26 = vadd.f32 1.0, %v1093_v51  ;;  %v713_v18 = vmul.f32 %v530_v8, %v530_v8  ;;  %v1348_v23 = vmul.f32 %v1220_v40, %v964_v2  ;;  %v3343_v57 = vmul.f32 0.5, %v3270_v42 }
 0x152   :  { %v3328_v62 = vpop.f32.mrb[18].mxu0  ;;  %4837 = vst [vmem:[#allocation19_spill] sm:$0xff] %v3340_v55  ;;  %v1347_v15 = vmul.f32 %v1219_v0, %v963_v13  ;;  %v3348_v30 = vpop.eup %2666  ;;  %v1222_v31 = vadd.f32 1.0, %v1094_v41  ;;  %v1095_v32 = vmul.f32 0.044715, %v711_v54  ;;  %v277_v60 = vadd.f32 %v3229_v56, %v3183_v44 }
 0x153   :  { %v3332_v52 = vpop.f32.mrb[18].mxu1  ;;  %v3334_v39 = vpop.f32.mrb[19].mxu0  ;;  %4838 = vst [vmem:[#allocation20_spill] sm:$0xff] %v3343_v57  ;;  %v534_v38 = vadd.f32 %v3233_v5, %v3185_v45  ;;  %2676 = vtanh.f32 %v1346_v9  ;;  %v1224_v2 = vadd.f32 1.0, %v1096_v14  ;;  %v1097_v13 = vmul.f32 0.044715, %v713_v18 }
 0x154   :  { %4835 = vst [vmem:[#allocation17_spill] sm:$0xff] %v3334_v39  ;;  %v3338_v20 = vpop.f32.mrb[19].mxu1  ;;  %v965_v39 = vmul.f32 0.7978846, %v3270_v42  ;;  %v3358_v0 = vpop.eup %2668  ;;  %v3361_v42 = vmul.f32 0.5, %v3276_v58  ;;  %v279_v5 = vadd.f32 %v3235_v6, %v3187_v46  ;;  %2678 = vtanh.f32 %v1348_v23 }
 0x155   :  { %4836 = vst [vmem:[#allocation18_spill] sm:$0xff] %v3338_v20  ;;  %v966_v56 = vmul.f32 0.7978846, %v3276_v58  ;;  %v716_v9 = vmul.f32 %v534_v38, %v534_v38  ;;  %2680 = vtanh.f32 %v1347_v15  ;;  %v3378_v58 = vmul.f32 0.5, %v3286_v33 }
 0x156   :  { %v3346_v19 = vpop.f32.mrb[20].mxu0  ;;  %4842 = vst [vmem:[#allocation24_spill] sm:$0xff] %v3361_v42  ;;  %v1349_v54 = vmul.f32 %v1221_v26, %v965_v39  ;;  %v3373_v42 = vadd.f32 %v3240_v1, %v3189_v47  ;;  %v1223_v26 = vadd.f32 1.0, %v1095_v32  ;;  %v1225_v57 = vadd.f32 1.0, %v1097_v13 }
 0x157   :  { %4839 = vst [vmem:[#allocation21_spill] sm:$0xff] %v3346_v19  ;;  %v3354_v51 = vpop.f32.mrb[20].mxu1  ;;  %v3356_v40 = vpop.f32.mrb[21].mxu0  ;;  %v714_v19 = vmul.f32 %v277_v60, %v277_v60  ;;  %v1350_v39 = vmul.f32 %v1222_v31, %v966_v56  ;;  %4845 = vst [vmem:[#allocation27_spill] sm:$0xff] %v3378_v58  ;;  %v967_v15 = vmul.f32 0.7978846, %v273_v53  ;;  %v715_v56 = vmul.f32 %v279_v5, %v279_v5 }
 0x158   :  { %4840 = vst [vmem:[#allocation22_spill] sm:$0xff] %v3354_v51  ;;  %4841 = vst [vmem:[#allocation23_spill] sm:$0xff] %v3356_v40  ;;  %v3363_v41 = vpop.f32.mrb[21].mxu1  ;;  %v3368_v51 = vpop.eup %2670  ;;  %v968_v40 = vmul.f32 0.7978846, %v3286_v33  ;;  %2682 = vtanh.f32 %v1349_v54  ;;  %v3390_v33 = vmul.f32 0.5, %v530_v8  ;;  %v717_v58 = vmul.f32 %v3373_v42, %v3373_v42 }
 0x159   :  { %4843 = vst [vmem:[#allocation25_spill] sm:$0xff] %v3363_v41  ;;  %v3384_v41 = vmul.f32 0.5, %v273_v53  ;;  %v1098_v55 = vmul.f32 0.044715, %v714_v19  ;;  %v3388_v1 = vpop.eup %2672  ;;  %v1100_v31 = vmul.f32 0.044715, %v716_v9  ;;  %2684 = vtanh.f32 %v1350_v39 }
 0x15a   :  { %v3375_v14 = vpop.f32.mrb[22].mxu0  ;;  %v1352_v23 = vmul.f32 %v1224_v2, %v968_v40  ;;  %4849 = vst [vmem:[#allocation31_spill] sm:$0xff] %v3390_v33  ;;  %v969_v32 = vmul.f32 0.7978846, %v530_v8  ;;  %v283_v40 = vadd.f32 %v3250_v17, %v3183_v44  ;;  %v3398_v19 = vpop.eup %2674  ;;  %v1351_v13 = vmul.f32 %v1223_v26, %v967_v15 }
 0x15b   :  { %4844 = vst [vmem:[#allocation26_spill] sm:$0xff] %v3375_v14  ;;  %v3380_v18 = vpop.f32.mrb[22].mxu1  ;;  %v3382_v6 = vpop.f32.mrb[23].mxu0  ;;  %v3402_v53 = vadd.f32 %v3254_v21, %v3185_v45  ;;  %v3406_v54 = vadd.f32 %v3258_v34, %v3187_v46  ;;  %v3414_v39 = vmul.f32 0.5, %v277_v60  ;;  %v970_v26 = vmul.f32 0.7978846, %v277_v60 }
 0x15c   :  { %4846 = vst [vmem:[#allocation28_spill] sm:$0xff] %v3380_v18  ;;  %4847 = vst [vmem:[#allocation29_spill] sm:$0xff] %v3382_v6  ;;  %v3386_v20 = vpop.f32.mrb[23].mxu1  ;;  %2686 = vtanh.f32 %v1352_v23  ;;  %v1353_v17 = vmul.f32 %v1225_v57, %v969_v32  ;;  %v1228_v15 = vadd.f32 1.0, %v1100_v31  ;;  %v1099_v21 = vmul.f32 0.044715, %v715_v56 }
 0x15d   :  { %4848 = vst [vmem:[#allocation30_spill] sm:$0xff] %v3386_v20  ;;  %v1226_v20 = vadd.f32 1.0, %v1098_v55  ;;  %4854 = vst [vmem:[#allocation36_spill] sm:$0xff] %v3414_v39  ;;  %v3416_v18 = vpop.eup %2676  ;;  %v3418_v14 = vmul.f32 0.5, %v534_v38  ;;  %v972_v34 = vmul.f32 0.7978846, %v534_v38  ;;  %2688 = vtanh.f32 %v1351_v13 }
 0x15e   :  { %v3396_v2 = vpop.f32.mrb[24].mxu0  ;;  %v1101_v33 = vmul.f32 0.044715, %v717_v58  ;;  %v3424_v55 = vmul.f32 0.5, %v279_v5  ;;  %v719_v60 = vmul.f32 %v3406_v54, %v3406_v54  ;;  %v3432_v32 = vpop.eup %2678  ;;  %2690 = vtanh.f32 %v1353_v17 }
 0x15f   :  { %4850 = vst [vmem:[#allocation32_spill] sm:$0xff] %v3396_v2  ;;  %v3408_v8 = vpop.f32.mrb[24].mxu1  ;;  %v3410_v9 = vpop.f32.mrb[25].mxu0  ;;  %v718_v2 = vmul.f32 %v283_v40, %v283_v40  ;;  %4855 = vst [vmem:[#allocation37_spill] sm:$0xff] %v3418_v14  ;;  %v1354_v38 = vmul.f32 %v1226_v20, %v970_v26  ;;  %v971_v58 = vmul.f32 0.7978846, %v279_v5  ;;  %v3441_v39 = vadd.f32 %v3260_v35, %v3189_v47 }
 0x160   :  { %4851 = vst [vmem:[#allocation33_spill] sm:$0xff] %v3408_v8  ;;  %4852 = vst [vmem:[#allocation34_spill] sm:$0xff] %v3410_v9  ;;  %v3412_v6 = vpop.f32.mrb[25].mxu1  ;;  %v720_v9 = vmul.f32 %v3402_v53, %v3402_v53  ;;  %v3437_v13 = vpop.eup %2680  ;;  %v1593_v17 = vadd.f32 1.0, %v3290_v7  ;;  %v3447_v20 = vadd.f32 %v3272_v43, %v3183_v44  ;;  %v1103_v35 = vmul.f32 0.044715, %v719_v60 }
 0x161   :  { %4853 = vst [vmem:[#allocation35_spill] sm:$0xff] %v3412_v6  ;;  %v1102_v57 = vmul.f32 0.044715, %v718_v2  ;;  %v973_v6 = vmul.f32 0.7978846, %v3373_v42  ;;  %v1227_v2 = vadd.f32 1.0, %v1099_v21  ;;  %2692 = vtanh.f32 %v1354_v38 }
 0x162   :  { %v3422_v23 = vpop.f32.mrb[26].mxu0  ;;  %v1104_v8 = vmul.f32 0.044715, %v720_v9  ;;  %v3451_v26 = vpop.eup %2682  ;;  %v3462_v7 = vmul.f32 0.5, %v283_v40  ;;  %v976_v38 = vmul.f32 0.7978846, %v3402_v53 }
 0x163   :  { %4856 = vst [vmem:[#allocation38_spill] sm:$0xff] %v3422_v23  ;;  %v3428_v31 = vpop.f32.mrb[26].mxu1  ;;  %v3430_v56 = vpop.f32.mrb[27].mxu0  ;;  %v1356_v23 = vmul.f32 %v1228_v15, %v972_v34  ;;  %v3454_v15 = vmul.f32 0.5, %v3373_v42  ;;  %v1230_v21 = vadd.f32 1.0, %v1102_v57  ;;  %v1721_v34 = vmul.f32 %v1593_v17, %v3217_v50 }
 0x164   :  { %4857 = vst [vmem:[#allocation39_spill] sm:$0xff] %v3428_v31  ;;  %4858 = vst [vmem:[#allocation40_spill] sm:$0xff] %v3430_v56  ;;  %v3435_v14 = vpop.f32.mrb[27].mxu1  ;;  %v1591_v31 = vadd.f32 1.0, %v3282_v28  ;;  %v1229_v56 = vadd.f32 1.0, %v1101_v33  ;;  %v721_v28 = vmul.f32 %v3441_v39, %v3441_v39  ;;  %v3472_v57 = vpop.eup %2684  ;;  %v1355_v60 = vmul.f32 %v1227_v2, %v971_v58 }
 0x165   :  { %4859 = vst [vmem:[#allocation41_spill] sm:$0xff] %v3435_v14  ;;  %v974_v14 = vmul.f32 0.7978846, %v283_v40  ;;  %2694 = vtanh.f32 %v1356_v23  ;;  %v3479_v50 = vmul.f32 0.5, %v3402_v53  ;;  %2206 = vmatprep.mubr.f32.mxu0 %v1721_v34  ;;  %v1231_v58 = vadd.f32 1.0, %v1103_v35 }
 0x166   :  { %v3449_v5 = vpop.f32.mrb[28].mxu0  ;;  %v1719_v43 = vmul.f32 %v1591_v31, %v3215_v49  ;;  %v1357_v49 = vmul.f32 %v1229_v56, %v973_v6  ;;  %v1232_v31 = vadd.f32 1.0, %v1104_v8  ;;  %v1105_v40 = vmul.f32 0.044715, %v721_v28  ;;  %2207 = vmatmul.mubr.f32.vlgmr.msra.gmra.mrb[64].mxu0 %v3312_v25 }
 0x167   :  { %4860 = vst [vmem:[#allocation42_spill] sm:$0xff] %v3449_v5  ;;  %v3458_v33 = vpop.f32.mrb[28].mxu1  ;;  %v3460_v9 = vpop.f32.mrb[29].mxu0  ;;  %v3468_v5 = vadd.f32 %v3278_v27, %v3185_v45  ;;  %v1358_v17 = vmul.f32 %v1230_v21, %v974_v14  ;;  %v291_v8 = vadd.f32 %v3280_v59, %v3187_v46  ;;  %v3494_v23 = vadd.f32 %v3288_v3, %v3189_v47 }
 0x168   :  { %4861 = vst [vmem:[#allocation43_spill] sm:$0xff] %v3458_v33  ;;  %4862 = vst [vmem:[#allocation44_spill] sm:$0xff] %v3460_v9  ;;  %v3470_v42 = vpop.f32.mrb[29].mxu1  ;;  %v722_v9 = vmul.f32 %v3447_v20, %v3447_v20  ;;  %v3476_v33 = vpop.eup %2686  ;;  %1981 = vmatprep.mubr.f32.mxu1 %v1719_v43  ;;  %v1595_v14 = vadd.f32 1.0, %v3336_v10  ;;  %2696 = vtanh.f32 %v1355_v60  ;;  %v1597_v21 = vadd.f32 1.0, %v3348_v30 }
 0x169   :  { %1982 = vmatmul.mubr.f32.vlgmr.msra.gmra.mrb[64].mxu1 %v3295_v4  ;;  %v724_v6 = vmul.f32 %v3468_v5, %v3468_v5  ;;  %v3501_v4 = vpop.eup %2688  ;;  %v3506_v35 = vadd.f32 %v3297_v16, %v3183_v44  ;;  %2698 = vtanh.f32 %v1357_v49  ;;  %v1360_v3 = vmul.f32 %v1232_v31, %v976_v38 }
 0x16a   :  { %v3481_v27 = vpop.f32.mrb[30].mxu0  ;;  %v1106_v25 = vmul.f32 0.044715, %v722_v9  ;;  %v3508_v59 = vpop.eup %2690  ;;  %v975_v10 = vmul.f32 0.7978846, %v3406_v54  ;;  %v723_v28 = vmul.f32 %v291_v8, %v291_v8  ;;  %2700 = vtanh.f32 %v1358_v17 }
 0x16b   :  { %4863 = vst [vmem:[#allocation45_spill] sm:$0xff] %v3481_v27  ;;  %v3486_v2 = vpop.f32.mrb[30].mxu1  ;;  %v3497_v53 = vpop.f32.mrb[31].mxu0  ;;  %v3514_v34 = vmul.f32 0.5, %v3406_v54  ;;  %v3517_v9 = vmul.f32 0.5, %v3441_v39  ;;  %v725_v16 = vmul.f32 %v3494_v23, %v3494_v23  ;;  %v1233_v31 = vadd.f32 1.0, %v1105_v40 }
 0x16c   :  { %4864 = vst [vmem:[#allocation46_spill] sm:$0xff] %v3486_v2  ;;  %4865 = vst [vmem:[#allocation47_spill] sm:$0xff] %v3497_v53  ;;  %v3499_v56 = vpop.f32.mrb[31].mxu1  ;;  %v1359_v49 = vmul.f32 %v1231_v58, %v975_v10  ;;  %v1108_v38 = vmul.f32 0.044715, %v724_v6  ;;  %v1234_v17 = vadd.f32 1.0, %v1106_v25  ;;  %v1725_v53 = vmul.f32 %v1597_v21, %v3244_v12 }
 0x16d   :  { %4866 = vst [vmem:[#allocation48_spill] sm:$0xff] %v3499_v56  ;;  %v1723_v56 = vmul.f32 %v1595_v14, %v3242_v11  ;;  %v1107_v54 = vmul.f32 0.044715, %v723_v28  ;;  %v726_v2 = vmul.f32 %v3506_v35, %v3506_v35  ;;  %2702 = vtanh.f32 %v1360_v3  ;;  %v3538_v11 = vpop.eup %2692 }
 0x16e   :  { %v3511_v43 = vpop.f32.mrb[32].mxu0  ;;  %v977_v27 = vmul.f32 0.7978846, %v3441_v39  ;;  %v978_v58 = vmul.f32 0.7978846, %v3447_v20  ;;  %v3541_v6 = vmul.f32 0.5, %v3468_v5  ;;  %2211 = vmatprep.mubr.f32.mxu0 %v1725_v53  ;;  %v552_v14 = vadd.f32 %v3307_v24, %v3185_v45 }
 0x16f   :  { %4867 = vst [vmem:[#allocation49_spill] sm:$0xff] %v3511_v43  ;;  %v3521_v30 = vpop.f32.mrb[32].mxu1  ;;  %v3523_v60 = vpop.f32.mrb[33].mxu0  ;;  %1986 = vmatprep.mubr.f32.mxu1 %v1723_v56  ;;  %v1109_v12 = vmul.f32 0.044715, %v725_v16  ;;  %v1594_v39 = vadd.f32 1.0, %v3299_v48  ;;  %v3555_v28 = vadd.f32 %v3309_v29, %v3187_v46  ;;  %2704 = vtanh.f32 %v1359_v49 }
 0x170   :  { %4868 = vst [vmem:[#allocation50_spill] sm:$0xff] %v3521_v30  ;;  %4869 = vst [vmem:[#allocation51_spill] sm:$0xff] %v3523_v60  ;;  %v3526_v43 = vpop.f32.mrb[33].mxu1  ;;  %v3533_v30 = vmul.f32 0.5, %v3447_v20  ;;  %v3550_v20 = vpop.eup %2694  ;;  %v1361_v56 = vmul.f32 %v1233_v31, %v977_v27  ;;  %v1236_v3 = vadd.f32 1.0, %v1108_v38  ;;  %v1596_v10 = vadd.f32 1.0, %v3318_v37 }
 0x171   :  { %4870 = vst [vmem:[#allocation52_spill] sm:$0xff] %v3526_v43  ;;  %v1362_v24 = vmul.f32 %v1234_v17, %v978_v58  ;;  %v1235_v16 = vadd.f32 1.0, %v1107_v54  ;;  %v1110_v48 = vmul.f32 0.044715, %v726_v2  ;;  %v3564_v27 = vadd.f32 %v3316_v22, %v3189_v47  ;;  %v4914_v60 = vld [vmem:[#allocation26_spill] sm:$0xff] }
 0x172   :  { %v3536_v40 = vpop.f32.mrb[34].mxu0  ;;  %v3568_v29 = vpop.eup %2696  ;;  %v3570_v31 = vmul.f32 0.5, %v291_v8  ;;  %v979_v49 = vmul.f32 0.7978846, %v291_v8  ;;  %v1237_v38 = vadd.f32 1.0, %v1109_v12  ;;  %v728_v17 = vmul.f32 %v552_v14, %v552_v14 }
 0x173   :  { %4871 = vst [vmem:[#allocation53_spill] sm:$0xff] %v3536_v40  ;;  %v3546_v25 = vpop.f32.mrb[34].mxu1  ;;  %v3548_v21 = vpop.f32.mrb[35].mxu0  ;;  %v1724_v40 = vmul.f32 %v1596_v10, %v3231_v63  ;;  %2706 = vtanh.f32 %v1361_v56  ;;  %v981_v22 = vmul.f32 0.7978846, %v3494_v23  ;;  %v727_v54 = vmul.f32 %v3555_v28, %v3555_v28 }
 0x174   :  { %4872 = vst [vmem:[#allocation54_spill] sm:$0xff] %v3546_v25  ;;  %4873 = vst [vmem:[#allocation55_spill] sm:$0xff] %v3548_v21  ;;  %v3557_v53 = vpop.f32.mrb[35].mxu1  ;;  %v980_v25 = vmul.f32 0.7978846, %v3468_v5  ;;  %v1722_v21 = vmul.f32 %v1594_v39, %v3227_v61  ;;  %v3576_v61 = vpop.eup %2698  ;;  %2708 = vtanh.f32 %v1362_v24  ;;  %v1363_v12 = vmul.f32 %v1235_v16, %v979_v49 }
 0x175   :  { %4874 = vst [vmem:[#allocation56_spill] sm:$0xff] %v3557_v53  ;;  %2212 = vmatmul.mubr.f32.gmra.mrb[66].mxu0 %v1724_v40  ;;  %v3583_v8 = vpop.eup %2700  ;;  %v982_v39 = vmul.f32 0.7978846, %v3506_v35  ;;  %v1238_v10 = vadd.f32 1.0, %v1110_v48  ;;  %v729_v56 = vmul.f32 %v3564_v27, %v3564_v27  ;;  %v3592_v40 = vadd.f32 %v3328_v62, %v3183_v44 }
 0x176   :  { %v3566_v37 = vpop.f32.mrb[36].mxu0  ;;  %v1364_v63 = vmul.f32 %v1236_v3, %v980_v25  ;;  %1987 = vmatmul.mubr.f32.gmra.mrb[66].mxu1 %v1722_v21  ;;  %v1599_v25 = vadd.f32 1.0, %v3388_v1  ;;  %v1601_v21 = vadd.f32 1.0, %v3398_v19  ;;  %v3598_v24 = vadd.f32 %v3332_v52, %v3185_v45 }
 0x177   :  { %4875 = vst [vmem:[#allocation57_spill] sm:$0xff] %v3566_v37  ;;  %v3572_v2 = vpop.f32.mrb[36].mxu1  ;;  %v3574_v5 = vpop.f32.mrb[37].mxu0  ;;  %v1598_v16 = vadd.f32 1.0, %v3358_v0  ;;  %v1111_v19 = vmul.f32 0.044715, %v727_v54  ;;  %v1366_v54 = vmul.f32 %v1238_v10, %v982_v39 }
 0x178   :  { %4876 = vst [vmem:[#allocation58_spill] sm:$0xff] %v3572_v2  ;;  %4877 = vst [vmem:[#allocation59_spill] sm:$0xff] %v3574_v5  ;;  %v3581_v58 = vpop.f32.mrb[37].mxu1  ;;  %v1112_v5 = vmul.f32 0.044715, %v728_v17  ;;  %v3605_v1 = vpop.eup %2702  ;;  %v1727_v62 = vmul.f32 %v1599_v25, %v3262_v36  ;;  %v4882_v2 = vld [vmem:[#allocation14_spill] sm:$0xff]  ;;  %2710 = vtanh.f32 %v1364_v63 }
 0x179   :  { %4878 = vst [vmem:[#allocation60_spill] sm:$0xff] %v3581_v58  ;;  %v1365_v58 = vmul.f32 %v1237_v38, %v981_v22  ;;  %v1729_v37 = vmul.f32 %v1601_v21, %v4882_v2  ;;  %v730_v38 = vmul.f32 %v3592_v40, %v3592_v40  ;;  %v3614_v52 = vmul.f32 0.5, %v3494_v23  ;;  %v3623_v25 = vpop.eup %2704  ;;  %v4885_v63 = vld [vmem:[#allocation12_spill] sm:$0xff] }
 0x17a   :  { %v3594_v3 = vpop.f32.mrb[38].mxu0  ;;  %v3617_v0 = vmul.f32 0.5, %v3506_v35  ;;  %v3619_v22 = vmul.f32 0.5, %v552_v14  ;;  %2712 = vtanh.f32 %v1363_v12  ;;  %v1113_v36 = vmul.f32 0.044715, %v729_v56  ;;  %1991 = vmatprep.mubr.f32.mxu1 %v1727_v62 }
 0x17b   :  { %4879 = vst [vmem:[#allocation61_spill] sm:$0xff] %v3594_v3  ;;  %v3601_v48 = vpop.f32.mrb[38].mxu1  ;;  %v3603_v49 = vpop.f32.mrb[39].mxu0  ;;  %2216 = vmatprep.mubr.f32.mxu0 %v1729_v37  ;;  %v1240_v21 = vadd.f32 1.0, %v1112_v5  ;;  %v732_v23 = vmul.f32 %v3598_v24, %v3598_v24  ;;  %v1600_v35 = vadd.f32 1.0, %v3368_v51  ;;  %2714 = vtanh.f32 %v1365_v58  ;;  %v4888_v37 = vld [vmem:[#allocation17_spill] sm:$0xff] }
 0x17c   :  { %4880 = vst [vmem:[#allocation62_spill] sm:$0xff] %v3601_v48  ;;  %4881 = vst [vmem:[#allocation63_spill] sm:$0xff] %v3603_v49  ;;  %v3611_v17 = vpop.f32.mrb[39].mxu1  ;;  %v984_v49 = vmul.f32 0.7978846, %v552_v14  ;;  %v1239_v14 = vadd.f32 1.0, %v1111_v19  ;;  %v3635_v10 = vadd.f32 %v4888_v37, %v3187_v46  ;;  %2716 = vtanh.f32 %v1366_v54 }
 0x17d   :  { %4883 = vst [vmem:[#allocation14_spill] sm:$0xff] %v3611_v17  ;;  %v1726_v17 = vmul.f32 %v1598_v16, %v4885_v63  ;;  %v1114_v39 = vmul.f32 0.044715, %v730_v38  ;;  %v4890_v5 = vld [vmem:[#allocation13_spill] sm:$0xff]  ;;  %v4891_v16 = vld [vmem:[#allocation18_spill] sm:$0xff]  ;;  %v1603_v51 = vadd.f32 1.0, %v3437_v13  ;;  %v3646_v58 = vpop.eup %2706 }
 0x17e   :  { %v3621_v2 = vpop.f32.mrb[40].mxu0  ;;  %v1728_v62 = vmul.f32 %v1600_v35, %v4890_v5  ;;  %v3642_v63 = vadd.f32 %v4891_v16, %v3189_v47  ;;  %v3649_v19 = vmul.f32 0.5, %v3555_v28  ;;  %v983_v38 = vmul.f32 0.7978846, %v3555_v28  ;;  %v3657_v5 = vpop.eup %2708  ;;  %v4894_v3 = vld [vmem:[#allocation19_spill] sm:$0xff] }
 0x17f   :  { %4884 = vst [vmem:[#allocation64_spill] sm:$0xff] %v3621_v2  ;;  %v3629_v48 = vpop.f32.mrb[40].mxu1  ;;  %v3631_v12 = vpop.f32.mrb[41].mxu0  ;;  %1992 = vmatmul.mubr.f32.gmra.mrb[68].mxu1 %v1726_v17  ;;  %v3653_v37 = vmul.f32 0.5, %v3564_v27  ;;  %v1241_v17 = vadd.f32 1.0, %v1113_v36  ;;  %v1368_v16 = vmul.f32 %v1240_v21, %v984_v49  ;;  %v1242_v2 = vadd.f32 1.0, %v1114_v39 }
 0x180   :  { %4886 = vst [vmem:[#allocation12_spill] sm:$0xff] %v3629_v48  ;;  %4887 = vst [vmem:[#allocation65_spill] sm:$0xff] %v3631_v12  ;;  %v3637_v56 = vpop.f32.mrb[41].mxu1  ;;  %v1605_v12 = vadd.f32 1.0, %v3451_v26  ;;  %v985_v13 = vmul.f32 0.7978846, %v3564_v27  ;;  %2217 = vmatmul.mubr.f32.gmra.mrb[68].mxu0 %v1728_v62  ;;  %v1367_v48 = vmul.f32 %v1239_v14, %v983_v38  ;;  %v731_v28 = vmul.f32 %v3635_v10, %v3635_v10 }
 0x181   :  { %4889 = vst [vmem:[#allocation17_spill] sm:$0xff] %v3637_v56  ;;  %v1116_v26 = vmul.f32 0.044715, %v732_v23  ;;  %v1731_v53 = vmul.f32 %v1603_v51, %v4894_v3  ;;  %v986_v54 = vmul.f32 0.7978846, %v3592_v40  ;;  %v733_v27 = vmul.f32 %v3642_v63, %v3642_v63  ;;  %v4897_v49 = vld [vmem:[#allocation20_spill] sm:$0xff] }
 0x182   :  { %v3655_v35 = vpop.f32.mrb[42].mxu0  ;;  %v1733_v21 = vmul.f32 %v1605_v12, %v4897_v49  ;;  %v4898_v23 = vld [vmem:[#allocation21_spill] sm:$0xff]  ;;  %v1369_v39 = vmul.f32 %v1241_v17, %v985_v13  ;;  %v4899_v62 = vld [vmem:[#allocation22_spill] sm:$0xff]  ;;  %v1602_v51 = vadd.f32 1.0, %v3416_v18  ;;  %v1604_v38 = vadd.f32 1.0, %v3432_v32 }
 0x183   :  { %4892 = vst [vmem:[#allocation13_spill] sm:$0xff] %v3655_v35  ;;  %v3660_v56 = vpop.f32.mrb[42].mxu1  ;;  %v3665_v36 = vpop.f32.mrb[43].mxu0  ;;  %v3675_v14 = vadd.f32 %v4898_v23, %v3183_v44  ;;  %1996 = vmatprep.mubr.f32.mxu1 %v1731_v53  ;;  %v3679_v3 = vadd.f32 %v4899_v62, %v3185_v45  ;;  %2718 = vtanh.f32 %v1368_v16  ;;  %v3688_v12 = vmul.f32 0.5, %v3592_v40 }
 0x184   :  { %4893 = vst [vmem:[#allocation18_spill] sm:$0xff] %v3660_v56  ;;  %4895 = vst [vmem:[#allocation19_spill] sm:$0xff] %v3665_v36  ;;  %v3667_v35 = vpop.f32.mrb[43].mxu1  ;;  %v3685_v36 = vpop.eup %2710  ;;  %v3691_v49 = vmul.f32 0.5, %v3598_v24  ;;  %v1244_v53 = vadd.f32 1.0, %v1116_v26  ;;  %2221 = vmatprep.mubr.f32.mxu0 %v1733_v21  ;;  %2720 = vtanh.f32 %v1367_v48  ;;  %v1370_v32 = vmul.f32 %v1242_v2, %v986_v54  ;;  %v4906_v56 = vld [vmem:[#allocation15_spill] sm:$0xff] }
 0x185   :  { %4896 = vst [vmem:[#allocation66_spill] sm:$0xff] %v3667_v35  ;;  %4901 = vst [vmem:[#allocation21_spill] sm:$0xff] %v3688_v12  ;;  %v3697_v18 = vpop.eup %2712  ;;  %v988_v23 = vmul.f32 0.7978846, %v3598_v24  ;;  %v1115_v62 = vmul.f32 0.044715, %v731_v28  ;;  %v1730_v26 = vmul.f32 %v1602_v51, %v4906_v56  ;;  %2722 = vtanh.f32 %v1369_v39 }
 0x186   :  { %v3683_v35 = vpop.f32.mrb[44].mxu0  ;;  %4902 = vst [vmem:[#allocation22_spill] sm:$0xff] %v3691_v49  ;;  %v1117_v40 = vmul.f32 0.044715, %v733_v27  ;;  %v4907_v21 = vld [vmem:[#allocation16_spill] sm:$0xff]  ;;  %v736_v48 = vmul.f32 %v3679_v3, %v3679_v3  ;;  %v4908_v2 = vld [vmem:[#allocation23_spill] sm:$0xff]  ;;  %2724 = vtanh.f32 %v1370_v32  ;;  %v3738_v49 = vadd.f32 %v4914_v60, %v3183_v44 }
 0x187   :  { %4900 = vst [vmem:[#allocation20_spill] sm:$0xff] %v3683_v35  ;;  %v3693_v17 = vpop.f32.mrb[44].mxu1  ;;  %v3695_v13 = vpop.f32.mrb[45].mxu0  ;;  %v734_v35 = vmul.f32 %v3675_v14, %v3675_v14  ;;  %v1732_v43 = vmul.f32 %v1604_v38, %v4907_v21  ;;  %v309_v24 = vadd.f32 %v4908_v2, %v3187_v46  ;;  %v4909_v28 = vld [vmem:[#allocation25_spill] sm:$0xff]  ;;  %v3719_v56 = vmul.f32 0.5, %v3635_v10  ;;  %1997 = vmatmul.mubr.f32.gmra.mrb[70].mxu1 %v1730_v26  ;;  %v4915_v32 = vld [vmem:[#allocation28_spill] sm:$0xff] }
 0x188   :  { %4903 = vst [vmem:[#allocation67_spill] sm:$0xff] %v3693_v17  ;;  %4904 = vst [vmem:[#allocation68_spill] sm:$0xff] %v3695_v13  ;;  %v3700_v16 = vpop.f32.mrb[45].mxu1  ;;  %v3706_v17 = vpop.eup %2714  ;;  %v3714_v54 = vadd.f32 %v4909_v28, %v3189_v47  ;;  %v1607_v39 = vadd.f32 1.0, %v3501_v4  ;;  %v1609_v51 = vadd.f32 1.0, %v3508_v59  ;;  %v1243_v2 = vadd.f32 1.0, %v1115_v62 }
 0x189   :  { %4905 = vst [vmem:[#allocation69_spill] sm:$0xff] %v3700_v16  ;;  %v1372_v16 = vmul.f32 %v1244_v53, %v988_v23  ;;  %2222 = vmatmul.mubr.f32.gmra.mrb[70].mxu0 %v1732_v43  ;;  %v987_v21 = vmul.f32 0.7978846, %v3635_v10  ;;  %v3727_v28 = vmul.f32 0.5, %v3642_v63  ;;  %v735_v13 = vmul.f32 %v309_v24, %v309_v24 }
 0x18a   :  { %v3716_v27 = vpop.f32.mrb[46].mxu0  ;;  %v989_v53 = vmul.f32 0.7978846, %v3642_v63  ;;  %v1245_v23 = vadd.f32 1.0, %v1117_v40  ;;  %v1118_v43 = vmul.f32 0.044715, %v734_v35  ;;  %v737_v4 = vmul.f32 %v3714_v54, %v3714_v54 }
 0x18b   :  { %4910 = vst [vmem:[#allocation15_spill] sm:$0xff] %v3716_v27  ;;  %v3723_v38 = vpop.f32.mrb[46].mxu1  ;;  %4912 = vst [vmem:[#allocation23_spill] sm:$0xff] %v3727_v28  ;;  %v3729_v27 = vpop.eup %2716  ;;  %v1120_v26 = vmul.f32 0.044715, %v736_v48  ;;  %v1735_v59 = vmul.f32 %v1607_v39, %v3384_v41  ;;  %2726 = vtanh.f32 %v1372_v16  ;;  %v3742_v12 = vadd.f32 %v4915_v32, %v3185_v45 }
 0x18c   :  { %4911 = vst [vmem:[#allocation16_spill] sm:$0xff] %v3723_v38  ;;  %v4913_v38 = vld [vmem:[#allocation31_spill] sm:$0xff]  ;;  %v1119_v62 = vmul.f32 0.044715, %v735_v13  ;;  %v1371_v63 = vmul.f32 %v1243_v2, %v987_v21  ;;  %v3745_v35 = vmul.f32 0.5, %v3675_v14  ;;  %v1606_v41 = vadd.f32 1.0, %v3472_v57 }
 0x18d   :  { %v1737_v10 = vmul.f32 %v1609_v51, %v4913_v38  ;;  %2001 = vmatprep.mubr.f32.mxu1 %v1735_v59  ;;  %v1608_v40 = vadd.f32 1.0, %v3476_v33  ;;  %v3749_v16 = vpop.f32.mrb[47].mxu0  ;;  %v3751_v13 = vpop.f32.mrb[47].mxu1  ;;  %v990_v48 = vmul.f32 0.7978846, %v3675_v14  ;;  %v1246_v39 = vadd.f32 1.0, %v1118_v43 }
 0x18e   :  { %4916 = vst [vmem:[#allocation25_spill] sm:$0xff] %v3745_v35  ;;  %4917 = vst [vmem:[#allocation31_spill] sm:$0xff] %v3749_v16  ;;  %v3753_v60 = vpop.eup %2718  ;;  %v3757_v51 = vmul.f32 0.5, %v3679_v3  ;;  %v738_v38 = vmul.f32 %v3738_v49, %v3738_v49  ;;  %v1373_v57 = vmul.f32 %v1245_v23, %v989_v53  ;;  %v992_v33 = vmul.f32 0.7978846, %v3679_v3  ;;  %v4921_v43 = vld [vmem:[#allocation27_spill] sm:$0xff] }
 0x18f   :  { %2226 = vmatprep.mubr.f32.mxu0 %v1737_v10  ;;  %4918 = vst [vmem:[#allocation26_spill] sm:$0xff] %v3751_v13  ;;  %v3761_v21 = vpop.eup %2720  ;;  %v1248_v2 = vadd.f32 1.0, %v1120_v26  ;;  %v1121_v59 = vmul.f32 0.044715, %v737_v4  ;;  %v1247_v10 = vadd.f32 1.0, %v1119_v62  ;;  %v740_v32 = vmul.f32 %v3742_v12, %v3742_v12  ;;  %v4920_v13 = vld [vmem:[#allocation24_spill] sm:$0xff] }
 0x190   :  { %4919 = vst [vmem:[#allocation28_spill] sm:$0xff] %v3757_v51  ;;  %v1734_v14 = vmul.f32 %v1606_v41, %v4920_v13  ;;  %v1736_v16 = vmul.f32 %v1608_v40, %v4921_v43  ;;  %v3768_v35 = vpop.f32.mrb[48].mxu0  ;;  %v3770_v51 = vpop.f32.mrb[48].mxu1  ;;  %2728 = vtanh.f32 %v1371_v63  ;;  %v991_v53 = vmul.f32 0.7978846, %v309_v24  ;;  %v4924_v3 = vld [vmem:[#allocation29_spill] sm:$0xff] }
 0x191   :  { %4922 = vst [vmem:[#allocation24_spill] sm:$0xff] %v3768_v35  ;;  %4923 = vst [vmem:[#allocation27_spill] sm:$0xff] %v3770_v51  ;;  %v3772_v28 = vpop.eup %2722  ;;  %v1122_v23 = vmul.f32 0.044715, %v738_v38  ;;  %v315_v26 = vadd.f32 %v4924_v3, %v3187_v46  ;;  %v1374_v4 = vmul.f32 %v1246_v39, %v990_v48  ;;  %v4925_v62 = vld [vmem:[#allocation30_spill] sm:$0xff]  ;;  %v1611_v40 = vadd.f32 1.0, %v3568_v29 }
 0x192   :  { %2002 = vmatmul.mubr.f32.gmra.mrb[72].mxu1 %v1734_v14  ;;  %2227 = vmatmul.mubr.f32.gmra.mrb[72].mxu0 %v1736_v16  ;;  %v572_v41 = vadd.f32 %v4925_v62, %v3189_v47  ;;  %v1613_v13 = vadd.f32 1.0, %v3576_v61  ;;  %2730 = vtanh.f32 %v1373_v57  ;;  %v3780_v43 = vmul.f32 0.5, %v309_v24  ;;  %v3785_v51 = vpop.eup %2724 }
 0x193   :  { %v3783_v63 = vmul.f32 0.5, %v3714_v54  ;;  %v1249_v38 = vadd.f32 1.0, %v1121_v59  ;;  %v1376_v3 = vmul.f32 %v1248_v2, %v992_v33  ;;  %v1375_v48 = vmul.f32 %v1247_v10, %v991_v53  ;;  %v4927_v59 = vld [vmem:[#allocation32_spill] sm:$0xff]  ;;  %v3801_v10 = vpop.f32.mrb[49].mxu0 }
 0x194   :  { %v993_v16 = vmul.f32 0.7978846, %v3714_v54  ;;  %v1124_v39 = vmul.f32 0.044715, %v740_v32  ;;  %v1250_v14 = vadd.f32 1.0, %v1122_v23  ;;  %v739_v62 = vmul.f32 %v315_v26, %v315_v26  ;;  %v4928_v54 = vld [vmem:[#allocation33_spill] sm:$0xff] }
 0x195   :  { %4926 = vst [vmem:[#allocation29_spill] sm:$0xff] %v3783_v63  ;;  %v1739_v29 = vmul.f32 %v1611_v40, %v3424_v55  ;;  %v1741_v61 = vmul.f32 %v1613_v13, %v3454_v15  ;;  %v3790_v57 = vpop.eup %2726  ;;  %2732 = vtanh.f32 %v1374_v4  ;;  %v994_v24 = vmul.f32 0.7978846, %v3738_v49  ;;  %4929 = vst [vmem:[#allocation30_spill] sm:$0xff] %v3801_v10  ;;  %v3803_v32 = vpop.f32.mrb[49].mxu1 }
 0x196   :  { %v741_v35 = vmul.f32 %v572_v41, %v572_v41  ;;  %v319_v63 = vadd.f32 %v4927_v59, %v3183_v44  ;;  %v1377_v33 = vmul.f32 %v1249_v38, %v993_v16  ;;  %v3797_v2 = vadd.f32 %v4928_v54, %v3185_v45  ;;  %4930 = vst [vmem:[#allocation32_spill] sm:$0xff] %v3803_v32  ;;  %v3814_v54 = vpop.f32.mrb[50].mxu0 }
 0x197   :  { %2006 = vmatprep.mubr.f32.mxu1 %v1739_v29  ;;  %2231 = vmatprep.mubr.f32.mxu0 %v1741_v61  ;;  %v1610_v55 = vadd.f32 1.0, %v3538_v11  ;;  %v1612_v15 = vadd.f32 1.0, %v3550_v20  ;;  %2734 = vtanh.f32 %v1376_v3  ;;  %v3806_v53 = vmul.f32 0.5, %v3738_v49  ;;  %v4931_v20 = vld [vmem:[#allocation36_spill] sm:$0xff]  ;;  %v4932_v61 = vld [vmem:[#allocation37_spill] sm:$0xff]  ;;  %4933 = vst [vmem:[#allocation33_spill] sm:$0xff] %v3814_v54 }
 0x198   :  { %v3809_v23 = vmul.f32 0.5, %v3742_v12  ;;  %v1252_v4 = vadd.f32 1.0, %v1124_v39  ;;  %2736 = vtanh.f32 %v1375_v48  ;;  %v1378_v40 = vmul.f32 %v1250_v14, %v994_v24  ;;  %v3816_v3 = vpop.f32.mrb[50].mxu1  ;;  %v4935_v39 = vld [vmem:[#allocation34_spill] sm:$0xff] }
 0x199   :  { %v996_v13 = vmul.f32 0.7978846, %v3742_v12  ;;  %v1123_v38 = vmul.f32 0.044715, %v739_v62  ;;  %v1125_v11 = vmul.f32 0.044715, %v741_v35  ;;  %v742_v16 = vmul.f32 %v319_v63, %v319_v63 }
 0x19a   :  { %v1738_v29 = vmul.f32 %v1610_v55, %v4931_v20  ;;  %v1740_v59 = vmul.f32 %v1612_v15, %v4932_v61  ;;  %4934 = vst [vmem:[#allocation36_spill] sm:$0xff] %v3816_v3  ;;  %v3818_v49 = vpop.eup %2728  ;;  %2738 = vtanh.f32 %v1377_v33  ;;  %v744_v48 = vmul.f32 %v3797_v2, %v3797_v2  ;;  %v4936_v35 = vld [vmem:[#allocation35_spill] sm:$0xff] }
 0x19b   :  { %v321_v12 = vadd.f32 %v4935_v39, %v3187_v46  ;;  %v3826_v14 = vadd.f32 %v4936_v35, %v3189_v47  ;;  %v1380_v62 = vmul.f32 %v1252_v4, %v996_v13  ;;  %v3828_v24 = vmul.f32 0.5, %v315_v26 }
 0x19c   :  { %2007 = vmatmul.mubr.f32.gmra.mrb[74].mxu1 %v1738_v29  ;;  %2232 = vmatmul.mubr.f32.gmra.mrb[74].mxu0 %v1740_v59  ;;  %v1615_v55 = vadd.f32 1.0, %v3623_v25  ;;  %v1617_v15 = vadd.f32 1.0, %v3646_v58  ;;  %v3832_v33 = vpop.eup %2730  ;;  %v995_v20 = vmul.f32 0.7978846, %v315_v26  ;;  %v1251_v61 = vadd.f32 1.0, %v1123_v38  ;;  %v4937_v38 = vld [vmem:[#allocation38_spill] sm:$0xff] }
 0x19d   :  { %v3834_v3 = vmul.f32 0.5, %v572_v41  ;;  %v743_v39 = vmul.f32 %v321_v12, %v321_v12  ;;  %2740 = vtanh.f32 %v1378_v40  ;;  %v997_v54 = vmul.f32 0.7978846, %v572_v41  ;;  %v4938_v41 = vld [vmem:[#allocation39_spill] sm:$0xff] }
 0x19e   :  { %v1253_v35 = vadd.f32 1.0, %v1125_v11  ;;  %v1126_v32 = vmul.f32 0.044715, %v742_v16  ;;  %v1128_v4 = vmul.f32 0.044715, %v744_v48  ;;  %v745_v13 = vmul.f32 %v3826_v14, %v3826_v14  ;;  %v3854_v48 = vpop.f32.mrb[51].mxu0 }
 0x19f   :  { %v1743_v29 = vmul.f32 %v1615_v55, %v3514_v34  ;;  %v1745_v25 = vmul.f32 %v1617_v15, %v3517_v9  ;;  %v3840_v58 = vpop.eup %2732  ;;  %2742 = vtanh.f32 %v1380_v62  ;;  %v1127_v26 = vmul.f32 0.044715, %v743_v39  ;;  %4940 = vst [vmem:[#allocation34_spill] sm:$0xff] %v3854_v48  ;;  %v3856_v62 = vpop.f32.mrb[51].mxu1 }
 0x1a0   :  { %v3844_v59 = vadd.f32 %v4937_v38, %v3183_v44  ;;  %v3848_v40 = vadd.f32 %v4938_v41, %v3185_v45  ;;  %v1379_v11 = vmul.f32 %v1251_v61, %v995_v20  ;;  %v3850_v16 = vmul.f32 0.5, %v319_v63  ;;  %4941 = vst [vmem:[#allocation35_spill] sm:$0xff] %v3856_v62  ;;  %v3872_v48 = vpop.f32.mrb[52].mxu0  ;;  %v3874_v10 = vpop.f32.mrb[52].mxu1 }
 0x1a1   :  { %2011 = vmatprep.mubr.f32.mxu1 %v1743_v29  ;;  %2236 = vmatprep.mubr.f32.mxu0 %v1745_v25  ;;  %v1614_v34 = vadd.f32 1.0, %v3583_v8  ;;  %v1616_v9 = vadd.f32 1.0, %v3605_v1  ;;  %v3858_v55 = vpop.eup %2734  ;;  %v998_v15 = vmul.f32 0.7978846, %v319_v63  ;;  %v1254_v39 = vadd.f32 1.0, %v1126_v32  ;;  %4943 = vst [vmem:[#allocation39_spill] sm:$0xff] %v3872_v48 }
 0x1a2   :  { %4939 = vst [vmem:[#allocation37_spill] sm:$0xff] %v3850_v16  ;;  %v3861_v38 = vmul.f32 0.5, %v3797_v2  ;;  %v746_v20 = vmul.f32 %v3844_v59, %v3844_v59  ;;  %v3865_v61 = vpop.eup %2736  ;;  %v1381_v29 = vmul.f32 %v1253_v35, %v997_v54  ;;  %v1000_v8 = vmul.f32 0.7978846, %v3797_v2  ;;  %4944 = vst [vmem:[#allocation70_spill] sm:$0xff] %v3874_v10  ;;  %v4945_v2 = vld [vmem:[#allocation40_spill] sm:$0xff] }
 0x1a3   :  { %v1256_v1 = vadd.f32 1.0, %v1128_v4  ;;  %v1129_v25 = vmul.f32 0.044715, %v745_v13  ;;  %v1255_v41 = vadd.f32 1.0, %v1127_v26  ;;  %v748_v62 = vmul.f32 %v3848_v40, %v3848_v40  ;;  %v4946_v26 = vld [vmem:[#allocation41_spill] sm:$0xff] }
 0x1a4   :  { %4942 = vst [vmem:[#allocation38_spill] sm:$0xff] %v3861_v38  ;;  %v1742_v63 = vmul.f32 %v1614_v34, %v3462_v7  ;;  %v1744_v32 = vmul.f32 %v1616_v9, %v3479_v50  ;;  %v3876_v38 = vpop.eup %2738  ;;  %2744 = vtanh.f32 %v1379_v11  ;;  %v999_v54 = vmul.f32 0.7978846, %v321_v12 }
 0x1a5   :  { %v1130_v35 = vmul.f32 0.044715, %v746_v20  ;;  %v327_v4 = vadd.f32 %v4945_v2, %v3187_v46  ;;  %v1382_v13 = vmul.f32 %v1254_v39, %v998_v15  ;;  %v584_v7 = vadd.f32 %v4946_v26, %v3189_v47 }
 0x1a6   :  { %2012 = vmatmul.mubr.f32.gmra.mrb[76].mxu1 %v1742_v63  ;;  %2237 = vmatmul.mubr.f32.gmra.mrb[76].mxu0 %v1744_v32  ;;  %v1619_v50 = vadd.f32 1.0, %v3697_v18  ;;  %v1621_v34 = vadd.f32 1.0, %v3706_v17  ;;  %2746 = vtanh.f32 %v1381_v29  ;;  %v3884_v9 = vmul.f32 0.5, %v321_v12 }
 0x1a7   :  { %v3887_v11 = vmul.f32 0.5, %v3826_v14  ;;  %v1257_v20 = vadd.f32 1.0, %v1129_v25  ;;  %v3889_v10 = vpop.eup %2740  ;;  %v1384_v2 = vmul.f32 %v1256_v1, %v1000_v8  ;;  %v1383_v15 = vmul.f32 %v1255_v41, %v999_v54  ;;  %v4947_v25 = vld [vmem:[#allocation42_spill] sm:$0xff]  ;;  %v3905_v1 = vpop.f32.mrb[53].mxu0 }
 0x1a8   :  { %v1001_v39 = vmul.f32 0.7978846, %v3826_v14  ;;  %v1132_v63 = vmul.f32 0.044715, %v748_v62  ;;  %v1258_v32 = vadd.f32 1.0, %v1130_v35  ;;  %v747_v26 = vmul.f32 %v327_v4, %v327_v4  ;;  %v4948_v14 = vld [vmem:[#allocation43_spill] sm:$0xff] }
 0x1a9   :  { %v1747_v18 = vmul.f32 %v1619_v50, %v3570_v31  ;;  %v1749_v17 = vmul.f32 %v1621_v34, %v3614_v52  ;;  %v3894_v29 = vpop.eup %2742  ;;  %2748 = vtanh.f32 %v1382_v13  ;;  %v1002_v12 = vmul.f32 0.7978846, %v3844_v59  ;;  %4949 = vst [vmem:[#allocation40_spill] sm:$0xff] %v3905_v1  ;;  %v3907_v41 = vpop.f32.mrb[53].mxu1 }
 0x1aa   :  { %v749_v48 = vmul.f32 %v584_v7, %v584_v7  ;;  %v331_v16 = vadd.f32 %v4947_v25, %v3183_v44  ;;  %v1385_v8 = vmul.f32 %v1257_v20, %v1001_v39  ;;  %v3901_v62 = vadd.f32 %v4948_v14, %v3185_v45  ;;  %4950 = vst [vmem:[#allocation41_spill] sm:$0xff] %v3907_v41 }
 0x1ab   :  { %2016 = vmatprep.mubr.f32.mxu1 %v1747_v18  ;;  %2241 = vmatprep.mubr.f32.mxu0 %v1749_v17  ;;  %v1618_v31 = vadd.f32 1.0, %v3657_v5  ;;  %v1620_v52 = vadd.f32 1.0, %v3685_v36  ;;  %2750 = vtanh.f32 %v1384_v2  ;;  %v3910_v54 = vmul.f32 0.5, %v3844_v59  ;;  %v3918_v17 = vpop.f32.mrb[54].mxu0  ;;  %v3920_v2 = vpop.f32.mrb[54].mxu1 }
 0x1ac   :  { %v3913_v35 = vmul.f32 0.5, %v3848_v40  ;;  %v1260_v13 = vadd.f32 1.0, %v1132_v63  ;;  %2752 = vtanh.f32 %v1383_v15  ;;  %v1386_v50 = vmul.f32 %v1258_v32, %v1002_v12  ;;  %4951 = vst [vmem:[#allocation42_spill] sm:$0xff] %v3918_v17  ;;  %4952 = vst [vmem:[#allocation43_spill] sm:$0xff] %v3920_v2  ;;  %v4953_v63 = vld [vmem:[#allocation44_spill] sm:$0xff] }
 0x1ad   :  { %v1004_v34 = vmul.f32 0.7978846, %v3848_v40  ;;  %v1131_v20 = vmul.f32 0.044715, %v747_v26  ;;  %v1133_v5 = vmul.f32 0.044715, %v749_v48  ;;  %v750_v39 = vmul.f32 %v331_v16, %v331_v16 }
 0x1ae   :  { %v1746_v36 = vmul.f32 %v1618_v31, %v3533_v30  ;;  %v1748_v18 = vmul.f32 %v1620_v52, %v3541_v6  ;;  %v3922_v59 = vpop.eup %2744  ;;  %2754 = vtanh.f32 %v1385_v8  ;;  %v752_v15 = vmul.f32 %v3901_v62, %v3901_v62 }
 0x1af   :  { %v333_v40 = vadd.f32 %v4953_v63, %v3187_v46  ;;  %v3930_v48 = vadd.f32 %v3470_v42, %v3189_v47  ;;  %v1388_v30 = vmul.f32 %v1260_v13, %v1004_v34  ;;  %v3932_v32 = vmul.f32 0.5, %v327_v4 }
 0x1b0   :  { %2017 = vmatmul.mubr.f32.gmra.mrb[78].mxu1 %v1746_v36  ;;  %2242 = vmatmul.mubr.f32.gmra.mrb[78].mxu0 %v1748_v18  ;;  %v1623_v6 = vadd.f32 1.0, %v3761_v21  ;;  %v1625_v26 = vadd.f32 1.0, %v3772_v28  ;;  %v3936_v12 = vpop.eup %2746  ;;  %v1003_v25 = vmul.f32 0.7978846, %v327_v4  ;;  %v1259_v8 = vadd.f32 1.0, %v1131_v20  ;;  %v4954_v20 = vld [vmem:[#allocation45_spill] sm:$0xff] }
 0x1b1   :  { %v3938_v14 = vmul.f32 0.5, %v584_v7  ;;  %v751_v31 = vmul.f32 %v333_v40, %v333_v40  ;;  %2756 = vtanh.f32 %v1386_v50  ;;  %v1005_v52 = vmul.f32 0.7978846, %v584_v7  ;;  %v4955_v7 = vld [vmem:[#allocation46_spill] sm:$0xff] }
 0x1b2   :  { %v1261_v42 = vadd.f32 1.0, %v1133_v5  ;;  %v1134_v63 = vmul.f32 0.044715, %v750_v39  ;;  %v1136_v13 = vmul.f32 0.044715, %v752_v15  ;;  %v753_v34 = vmul.f32 %v3930_v48, %v3930_v48  ;;  %v3958_v15 = vpop.f32.mrb[55].mxu0 }
 0x1b3   :  { %v1751_v36 = vmul.f32 %v1623_v6, %v3649_v19  ;;  %v1753_v21 = vmul.f32 %v1625_v26, %v3653_v37  ;;  %v3944_v28 = vpop.eup %2748  ;;  %2758 = vtanh.f32 %v1388_v30  ;;  %v1135_v4 = vmul.f32 0.044715, %v751_v31  ;;  %4956 = vst [vmem:[#allocation44_spill] sm:$0xff] %v3958_v15  ;;  %v3960_v30 = vpop.f32.mrb[55].mxu1 }
 0x1b4   :  { %v3948_v18 = vadd.f32 %v4954_v20, %v3183_v44  ;;  %v3952_v50 = vadd.f32 %v4955_v7, %v3185_v45  ;;  %v1387_v5 = vmul.f32 %v1259_v8, %v1003_v25  ;;  %v3954_v39 = vmul.f32 0.5, %v331_v16  ;;  %4957 = vst [vmem:[#allocation45_spill] sm:$0xff] %v3960_v30  ;;  %v3976_v15 = vpop.f32.mrb[56].mxu0  ;;  %v3978_v2 = vpop.f32.mrb[56].mxu1 }
 0x1b5   :  { %2021 = vmatprep.mubr.f32.mxu1 %v1751_v36  ;;  %2246 = vmatprep.mubr.f32.mxu0 %v1753_v21  ;;  %v1622_v19 = vadd.f32 1.0, %v3729_v27  ;;  %v1624_v37 = vadd.f32 1.0, %v3753_v60  ;;  %v3962_v6 = vpop.eup %2750  ;;  %v1006_v26 = vmul.f32 0.7978846, %v331_v16  ;;  %v1262_v31 = vadd.f32 1.0, %v1134_v63  ;;  %4958 = vst [vmem:[#allocation46_spill] sm:$0xff] %v3976_v15 }
 0x1b6   :  { %v3965_v20 = vmul.f32 0.5, %v3901_v62  ;;  %v754_v25 = vmul.f32 %v3948_v18, %v3948_v18  ;;  %v3969_v8 = vpop.eup %2752  ;;  %v1389_v36 = vmul.f32 %v1261_v42, %v1005_v52  ;;  %v1008_v27 = vmul.f32 0.7978846, %v3901_v62  ;;  %4959 = vst [vmem:[#allocation71_spill] sm:$0xff] %v3978_v2  ;;  %v4960_v62 = vld [vmem:[#allocation47_spill] sm:$0xff] }
 0x1b7   :  { %v1264_v60 = vadd.f32 1.0, %v1136_v13  ;;  %v1137_v21 = vmul.f32 0.044715, %v753_v34  ;;  %v1263_v7 = vadd.f32 1.0, %v1135_v4  ;;  %v756_v30 = vmul.f32 %v3952_v50, %v3952_v50  ;;  %v4961_v4 = vld [vmem:[#allocation48_spill] sm:$0xff]  ;;  %v4962_v15 = vld [vmem:[#allocation23_spill] sm:$0xff] }
 0x1b8   :  { %v1750_v16 = vmul.f32 %v1622_v19, %v3617_v0  ;;  %v1752_v63 = vmul.f32 %v1624_v37, %v3619_v22  ;;  %v3980_v17 = vpop.eup %2754  ;;  %2760 = vtanh.f32 %v1387_v5  ;;  %v1007_v52 = vmul.f32 0.7978846, %v333_v40 }
 0x1b9   :  { %v1138_v42 = vmul.f32 0.044715, %v754_v25  ;;  %v339_v13 = vadd.f32 %v4960_v62, %v3187_v46  ;;  %v1390_v34 = vmul.f32 %v1262_v31, %v1006_v26  ;;  %v596_v0 = vadd.f32 %v4961_v4, %v3189_v47 }
 0x1ba   :  { %2022 = vmatmul.mubr.f32.gmra.mrb[80].mxu1 %v1750_v16  ;;  %2247 = vmatmul.mubr.f32.gmra.mrb[80].mxu0 %v1752_v63  ;;  %v1627_v22 = vadd.f32 1.0, %v3818_v49  ;;  %v1629_v19 = vadd.f32 1.0, %v3832_v33  ;;  %2762 = vtanh.f32 %v1389_v36  ;;  %v3988_v37 = vmul.f32 0.5, %v333_v40 }
 0x1bb   :  { %v3991_v5 = vmul.f32 0.5, %v3930_v48  ;;  %v1265_v25 = vadd.f32 1.0, %v1137_v21  ;;  %v3993_v2 = vpop.eup %2756  ;;  %v1392_v62 = vmul.f32 %v1264_v60, %v1008_v27  ;;  %v1391_v26 = vmul.f32 %v1263_v7, %v1007_v52  ;;  %v4963_v21 = vld [vmem:[#allocation49_spill] sm:$0xff]  ;;  %v4009_v60 = vpop.f32.mrb[57].mxu0 }
 0x1bc   :  { %v1009_v31 = vmul.f32 0.7978846, %v3930_v48  ;;  %v1140_v16 = vmul.f32 0.044715, %v756_v30  ;;  %v1266_v63 = vadd.f32 1.0, %v1138_v42  ;;  %v755_v4 = vmul.f32 %v339_v13, %v339_v13  ;;  %v4964_v48 = vld [vmem:[#allocation50_spill] sm:$0xff] }
 0x1bd   :  { %v1755_v49 = vmul.f32 %v1627_v22, %v3719_v56  ;;  %v1757_v33 = vmul.f32 %v1629_v19, %v4962_v15  ;;  %v3998_v36 = vpop.eup %2758  ;;  %2764 = vtanh.f32 %v1390_v34  ;;  %v1010_v40 = vmul.f32 0.7978846, %v3948_v18  ;;  %4965 = vst [vmem:[#allocation47_spill] sm:$0xff] %v4009_v60  ;;  %v4011_v7 = vpop.f32.mrb[57].mxu1 }
 0x1be   :  { %v757_v41 = vmul.f32 %v596_v0, %v596_v0  ;;  %v343_v1 = vadd.f32 %v4963_v21, %v3183_v44  ;;  %v1393_v27 = vmul.f32 %v1265_v25, %v1009_v31  ;;  %v4005_v30 = vadd.f32 %v4964_v48, %v3185_v45  ;;  %4966 = vst [vmem:[#allocation48_spill] sm:$0xff] %v4011_v7  ;;  %v4022_v48 = vpop.f32.mrb[58].mxu0 }
 0x1bf   :  { %2026 = vmatprep.mubr.f32.mxu1 %v1755_v49  ;;  %2251 = vmatprep.mubr.f32.mxu0 %v1757_v33  ;;  %v1626_v56 = vadd.f32 1.0, %v3785_v51  ;;  %v1628_v15 = vadd.f32 1.0, %v3790_v57  ;;  %2766 = vtanh.f32 %v1392_v62  ;;  %v4014_v52 = vmul.f32 0.5, %v3948_v18  ;;  %v4969_v57 = vld [vmem:[#allocation21_spill] sm:$0xff]  ;;  %v4970_v33 = vld [vmem:[#allocation22_spill] sm:$0xff]  ;;  %4971 = vst [vmem:[#allocation50_spill] sm:$0xff] %v4022_v48 }
 0x1c0   :  { %v4017_v42 = vmul.f32 0.5, %v3952_v50  ;;  %v1268_v34 = vadd.f32 1.0, %v1140_v16  ;;  %2768 = vtanh.f32 %v1391_v26  ;;  %v1394_v22 = vmul.f32 %v1266_v63, %v1010_v40  ;;  %v4024_v62 = vpop.f32.mrb[58].mxu1  ;;  %v4973_v16 = vld [vmem:[#allocation51_spill] sm:$0xff] }
 0x1c1   :  { %4967 = vst [vmem:[#allocation23_spill] sm:$0xff] %v4014_v52  ;;  %v1012_v19 = vmul.f32 0.7978846, %v3952_v50  ;;  %v1139_v25 = vmul.f32 0.044715, %v755_v4  ;;  %v758_v31 = vmul.f32 %v343_v1, %v343_v1  ;;  %v1754_v49 = vmul.f32 %v1626_v56, %v4969_v57  ;;  %4972 = vst [vmem:[#allocation21_spill] sm:$0xff] %v4024_v62 }
 0x1c2   :  { %4968 = vst [vmem:[#allocation49_spill] sm:$0xff] %v4017_v42  ;;  %v1141_v51 = vmul.f32 0.044715, %v757_v41  ;;  %v1756_v21 = vmul.f32 %v1628_v15, %v4970_v33  ;;  %v4026_v18 = vpop.eup %2760  ;;  %2770 = vtanh.f32 %v1393_v27  ;;  %v760_v26 = vmul.f32 %v4005_v30, %v4005_v30  ;;  %v4974_v41 = vld [vmem:[#allocation52_spill] sm:$0xff] }
 0x1c3   :  { %v345_v50 = vadd.f32 %v4973_v16, %v3187_v46  ;;  %v4034_v63 = vadd.f32 %v4974_v41, %v3189_v47  ;;  %v1396_v4 = vmul.f32 %v1268_v34, %v1012_v19  ;;  %v4036_v40 = vmul.f32 0.5, %v339_v13  ;;  %2027 = vmatmul.mubr.f32.gmra.mrb[82].mxu1 %v1754_v49 }
 0x1c4   :  { %2252 = vmatmul.mubr.f32.gmra.mrb[82].mxu0 %v1756_v21  ;;  %v1631_v56 = vadd.f32 1.0, %v3865_v61  ;;  %v1633_v15 = vadd.f32 1.0, %v3876_v38  ;;  %v4040_v27 = vpop.eup %2762  ;;  %v1011_v57 = vmul.f32 0.7978846, %v339_v13  ;;  %v1267_v33 = vadd.f32 1.0, %v1139_v25  ;;  %v4975_v61 = vld [vmem:[#allocation29_spill] sm:$0xff] }
 0x1c5   :  { %v4042_v62 = vmul.f32 0.5, %v596_v0  ;;  %v759_v16 = vmul.f32 %v345_v50, %v345_v50  ;;  %2772 = vtanh.f32 %v1394_v22  ;;  %v1013_v48 = vmul.f32 0.7978846, %v596_v0  ;;  %v4976_v25 = vld [vmem:[#allocation53_spill] sm:$0xff]  ;;  %v4977_v0 = vld [vmem:[#allocation54_spill] sm:$0xff] }
 0x1c6   :  { %v1269_v41 = vadd.f32 1.0, %v1141_v51  ;;  %v1142_v7 = vmul.f32 0.044715, %v758_v31  ;;  %v1144_v34 = vmul.f32 0.044715, %v760_v26  ;;  %v761_v19 = vmul.f32 %v4034_v63, %v4034_v63 }
 0x1c7   :  { %v1759_v49 = vmul.f32 %v1631_v56, %v3780_v43  ;;  %v1761_v21 = vmul.f32 %v1633_v15, %v4975_v61  ;;  %v4048_v38 = vpop.eup %2764  ;;  %2774 = vtanh.f32 %v1396_v4  ;;  %v1143_v13 = vmul.f32 0.044715, %v759_v16  ;;  %v4062_v56 = vpop.f32.mrb[59].mxu0 }
 0x1c8   :  { %v4052_v60 = vadd.f32 %v4976_v25, %v3183_v44  ;;  %v4056_v22 = vadd.f32 %v4977_v0, %v3185_v45  ;;  %v1395_v51 = vmul.f32 %v1267_v33, %v1011_v57  ;;  %v4058_v31 = vmul.f32 0.5, %v343_v1  ;;  %4979 = vst [vmem:[#allocation51_spill] sm:$0xff] %v4062_v56  ;;  %v4064_v4 = vpop.f32.mrb[59].mxu1  ;;  %v4982_v56 = vld [vmem:[#allocation25_spill] sm:$0xff]  ;;  %v4080_v42 = vpop.f32.mrb[60].mxu0 }
 0x1c9   :  { %2031 = vmatprep.mubr.f32.mxu1 %v1759_v49  ;;  %2256 = vmatprep.mubr.f32.mxu0 %v1761_v21  ;;  %v1630_v43 = vadd.f32 1.0, %v3840_v58  ;;  %v1632_v26 = vadd.f32 1.0, %v3858_v55  ;;  %4980 = vst [vmem:[#allocation52_spill] sm:$0xff] %v4064_v4  ;;  %v4066_v15 = vpop.eup %2766  ;;  %v1014_v16 = vmul.f32 0.7978846, %v343_v1  ;;  %v1270_v61 = vadd.f32 1.0, %v1142_v7 }
 0x1ca   :  { %4978 = vst [vmem:[#allocation22_spill] sm:$0xff] %v4058_v31  ;;  %v4069_v25 = vmul.f32 0.5, %v4005_v30  ;;  %v762_v57 = vmul.f32 %v4052_v60, %v4052_v60  ;;  %v4073_v33 = vpop.eup %2768  ;;  %v1397_v49 = vmul.f32 %v1269_v41, %v1013_v48  ;;  %v1016_v58 = vmul.f32 0.7978846, %v4005_v30  ;;  %v4983_v7 = vld [vmem:[#allocation28_spill] sm:$0xff]  ;;  %4984 = vst [vmem:[#allocation53_spill] sm:$0xff] %v4080_v42 }
 0x1cb   :  { %v1272_v55 = vadd.f32 1.0, %v1144_v34  ;;  %v1145_v21 = vmul.f32 0.044715, %v761_v19  ;;  %v1271_v0 = vadd.f32 1.0, %v1143_v13  ;;  %v764_v4 = vmul.f32 %v4056_v22, %v4056_v22  ;;  %v4986_v30 = vld [vmem:[#allocation55_spill] sm:$0xff]  ;;  %v4987_v13 = vld [vmem:[#allocation56_spill] sm:$0xff] }
 0x1cc   :  { %4981 = vst [vmem:[#allocation29_spill] sm:$0xff] %v4069_v25  ;;  %v1758_v1 = vmul.f32 %v1630_v43, %v4982_v56  ;;  %v1760_v31 = vmul.f32 %v1632_v26, %v4983_v7  ;;  %v4082_v25 = vpop.f32.mrb[60].mxu1  ;;  %v4084_v52 = vpop.eup %2770  ;;  %2776 = vtanh.f32 %v1395_v51  ;;  %v1015_v48 = vmul.f32 0.7978846, %v345_v50 }
 0x1cd   :  { %4985 = vst [vmem:[#allocation54_spill] sm:$0xff] %v4082_v25  ;;  %v1146_v41 = vmul.f32 0.044715, %v762_v57  ;;  %v351_v34 = vadd.f32 %v4986_v30, %v3187_v46  ;;  %v1398_v19 = vmul.f32 %v1270_v61, %v1014_v16  ;;  %v608_v43 = vadd.f32 %v4987_v13, %v3189_v47 }
 0x1ce   :  { %2032 = vmatmul.mubr.f32.gmra.mrb[84].mxu1 %v1758_v1  ;;  %2257 = vmatmul.mubr.f32.gmra.mrb[84].mxu0 %v1760_v31  ;;  %v1635_v26 = vadd.f32 1.0, %v3922_v59  ;;  %v1637_v56 = vadd.f32 1.0, %v3936_v12  ;;  %2778 = vtanh.f32 %v1397_v49  ;;  %v4092_v7 = vmul.f32 0.5, %v345_v50 }
 0x1cf   :  { %v4095_v51 = vmul.f32 0.5, %v4034_v63  ;;  %v1273_v57 = vadd.f32 1.0, %v1145_v21  ;;  %v4097_v25 = vpop.eup %2772  ;;  %v1400_v30 = vmul.f32 %v1272_v55, %v1016_v58  ;;  %v1399_v16 = vmul.f32 %v1271_v0, %v1015_v48  ;;  %v4989_v21 = vld [vmem:[#allocation57_spill] sm:$0xff]  ;;  %v4113_v55 = vpop.f32.mrb[61].mxu0 }
 0x1d0   :  { %v1017_v31 = vmul.f32 0.7978846, %v4034_v63  ;;  %v1148_v61 = vmul.f32 0.044715, %v764_v4  ;;  %v1274_v1 = vadd.f32 1.0, %v1146_v41  ;;  %v763_v13 = vmul.f32 %v351_v34, %v351_v34  ;;  %v4990_v63 = vld [vmem:[#allocation58_spill] sm:$0xff] }
 0x1d1   :  { %4988 = vst [vmem:[#allocation25_spill] sm:$0xff] %v4095_v51  ;;  %v1763_v59 = vmul.f32 %v1635_v26, %v3828_v24  ;;  %v1765_v12 = vmul.f32 %v1637_v56, %v3834_v3  ;;  %v4102_v49 = vpop.eup %2774  ;;  %2780 = vtanh.f32 %v1398_v19  ;;  %v1018_v50 = vmul.f32 0.7978846, %v4052_v60  ;;  %4991 = vst [vmem:[#allocation28_spill] sm:$0xff] %v4113_v55  ;;  %v4115_v0 = vpop.f32.mrb[61].mxu1 }
 0x1d2   :  { %v765_v42 = vmul.f32 %v608_v43, %v608_v43  ;;  %v355_v51 = vadd.f32 %v4989_v21, %v3183_v44  ;;  %v1401_v58 = vmul.f32 %v1273_v57, %v1017_v31  ;;  %v4109_v4 = vadd.f32 %v4990_v63, %v3185_v45  ;;  %4992 = vst [vmem:[#allocation55_spill] sm:$0xff] %v4115_v0  ;;  %v5004_v0 = vld [vmem:[#allocation38_spill] sm:$0xff] }
 0x1d3   :  { %2036 = vmatprep.mubr.f32.mxu1 %v1763_v59  ;;  %2261 = vmatprep.mubr.f32.mxu0 %v1765_v12  ;;  %v1634_v24 = vadd.f32 1.0, %v3889_v10  ;;  %v1636_v3 = vadd.f32 1.0, %v3894_v29  ;;  %2782 = vtanh.f32 %v1400_v30  ;;  %v4118_v48 = vmul.f32 0.5, %v4052_v60  ;;  %v4126_v12 = vpop.f32.mrb[62].mxu0  ;;  %v4128_v30 = vpop.f32.mrb[62].mxu1 }
 0x1d4   :  { %v4121_v41 = vmul.f32 0.5, %v4056_v22  ;;  %v1276_v19 = vadd.f32 1.0, %v1148_v61  ;;  %2784 = vtanh.f32 %v1399_v16  ;;  %v1402_v26 = vmul.f32 %v1274_v1, %v1018_v50  ;;  %4993 = vst [vmem:[#allocation56_spill] sm:$0xff] %v4126_v12  ;;  %4994 = vst [vmem:[#allocation57_spill] sm:$0xff] %v4128_v30  ;;  %v4995_v61 = vld [vmem:[#allocation59_spill] sm:$0xff] }
 0x1d5   :  { %v1020_v56 = vmul.f32 0.7978846, %v4056_v22  ;;  %v1147_v57 = vmul.f32 0.044715, %v763_v13  ;;  %v1149_v10 = vmul.f32 0.044715, %v765_v42  ;;  %v766_v31 = vmul.f32 %v355_v51, %v355_v51 }
 0x1d6   :  { %v1762_v29 = vmul.f32 %v1634_v24, %v3806_v53  ;;  %v1764_v59 = vmul.f32 %v1636_v3, %v3809_v23  ;;  %v4130_v60 = vpop.eup %2776  ;;  %2786 = vtanh.f32 %v1401_v58  ;;  %v768_v16 = vmul.f32 %v4109_v4, %v4109_v4  ;;  %v4996_v42 = vld [vmem:[#allocation60_spill] sm:$0xff] }
 0x1d7   :  { %v357_v22 = vadd.f32 %v4995_v61, %v3187_v46  ;;  %v4138_v1 = vadd.f32 %v4996_v42, %v3189_v47  ;;  %v1404_v53 = vmul.f32 %v1276_v19, %v1020_v56  ;;  %v4140_v13 = vmul.f32 0.5, %v351_v34 }
 0x1d8   :  { %2037 = vmatmul.mubr.f32.gmra.mrb[86].mxu1 %v1762_v29  ;;  %2262 = vmatmul.mubr.f32.gmra.mrb[86].mxu0 %v1764_v59  ;;  %v1639_v23 = vadd.f32 1.0, %v3969_v8  ;;  %v1641_v50 = vadd.f32 1.0, %v3980_v17  ;;  %v4144_v21 = vpop.eup %2778  ;;  %v1019_v58 = vmul.f32 0.7978846, %v351_v34  ;;  %v1275_v63 = vadd.f32 1.0, %v1147_v57  ;;  %v4997_v57 = vld [vmem:[#allocation61_spill] sm:$0xff] }
 0x1d9   :  { %v4146_v24 = vmul.f32 0.5, %v608_v43  ;;  %v767_v3 = vmul.f32 %v357_v22, %v357_v22  ;;  %2788 = vtanh.f32 %v1402_v26  ;;  %v1021_v61 = vmul.f32 0.7978846, %v608_v43  ;;  %v4998_v26 = vld [vmem:[#allocation62_spill] sm:$0xff] }
 0x1da   :  { %v1277_v42 = vadd.f32 1.0, %v1149_v10  ;;  %v1150_v30 = vmul.f32 0.044715, %v766_v31  ;;  %v1152_v19 = vmul.f32 0.044715, %v768_v16  ;;  %v769_v56 = vmul.f32 %v4138_v1, %v4138_v1  ;;  %v4164_v16 = vpop.f32.mrb[63].mxu0 }
 0x1db   :  { %v1767_v29 = vmul.f32 %v1639_v23, %v3884_v9  ;;  %v1769_v8 = vmul.f32 %v1641_v50, %v3887_v11  ;;  %v4152_v17 = vpop.eup %2780  ;;  %2790 = vtanh.f32 %v1404_v53  ;;  %v1151_v34 = vmul.f32 0.044715, %v767_v3  ;;  %5000 = vst [vmem:[#allocation59_spill] sm:$0xff] %v4164_v16  ;;  %v4166_v53 = vpop.f32.mrb[63].mxu1 }
 0x1dc   :  { %v361_v59 = vadd.f32 %v4997_v57, %v3183_v44  ;;  %v4158_v43 = vadd.f32 %v4998_v26, %v3185_v45  ;;  %v1403_v10 = vmul.f32 %v1275_v63, %v1019_v58  ;;  %v4160_v31 = vmul.f32 0.5, %v355_v51  ;;  %5001 = vst [vmem:[#allocation60_spill] sm:$0xff] %v4166_v53  ;;  %v5003_v53 = vld [vmem:[#allocation37_spill] sm:$0xff] }
 0x1dd   :  { %2041 = vmatprep.mubr.f32.mxu1 %v1767_v29  ;;  %2266 = vmatprep.mubr.f32.mxu0 %v1769_v8  ;;  %v1638_v9 = vadd.f32 1.0, %v3944_v28  ;;  %v1640_v11 = vadd.f32 1.0, %v3962_v6  ;;  %v4168_v23 = vpop.eup %2782  ;;  %v1022_v50 = vmul.f32 0.7978846, %v355_v51  ;;  %v1278_v3 = vadd.f32 1.0, %v1150_v30 }
 0x1de   :  { %4999 = vst [vmem:[#allocation58_spill] sm:$0xff] %v4160_v31  ;;  %v4171_v57 = vmul.f32 0.5, %v4109_v4  ;;  %v770_v58 = vmul.f32 %v361_v59, %v361_v59  ;;  %v4173_v63 = vpop.eup %2784  ;;  %v1405_v29 = vmul.f32 %v1277_v42, %v1021_v61  ;;  %v1024_v8 = vmul.f32 0.7978846, %v4109_v4  ;;  %v5005_v31 = vld [vmem:[#allocation63_spill] sm:$0xff]  ;;  %v5006_v4 = vld [vmem:[#allocation14_spill] sm:$0xff] }
 0x1df   :  { %v1280_v28 = vadd.f32 1.0, %v1152_v19  ;;  %v1153_v26 = vmul.f32 0.044715, %v769_v56  ;;  %v1279_v6 = vadd.f32 1.0, %v1151_v34  ;;  %v772_v16 = vmul.f32 %v4158_v43, %v4158_v43 }
 0x1e0   :  { %5002 = vst [vmem:[#allocation61_spill] sm:$0xff] %v4171_v57  ;;  %v1766_v12 = vmul.f32 %v1638_v9, %v5003_v53  ;;  %v1768_v51 = vmul.f32 %v1640_v11, %v5004_v0  ;;  %v4180_v30 = vpop.eup %2786  ;;  %2792 = vtanh.f32 %v1403_v10  ;;  %v1023_v55 = vmul.f32 0.7978846, %v357_v22 }
 0x1e1   :  { %v1154_v57 = vmul.f32 0.044715, %v770_v58  ;;  %v363_v61 = vadd.f32 %v5005_v31, %v3187_v46  ;;  %v1406_v42 = vmul.f32 %v1278_v3, %v1022_v50  ;;  %v620_v19 = vadd.f32 %v5006_v4, %v3189_v47 }
 0x1e2   :  { %2042 = vmatmul.mubr.f32.gmra.mrb[88].mxu1 %v1766_v12  ;;  %2267 = vmatmul.mubr.f32.gmra.mrb[88].mxu0 %v1768_v51  ;;  %v1643_v56 = vadd.f32 1.0, %v4026_v18  ;;  %v1645_v34 = vadd.f32 1.0, %v4040_v27  ;;  %2794 = vtanh.f32 %v1405_v29  ;;  %v4188_v0 = vmul.f32 0.5, %v357_v22 }
 0x1e3   :  { %v4191_v10 = vmul.f32 0.5, %v4138_v1  ;;  %v1281_v9 = vadd.f32 1.0, %v1153_v26  ;;  %v4193_v11 = vpop.eup %2788  ;;  %v1408_v31 = vmul.f32 %v1280_v28, %v1024_v8  ;;  %v1407_v53 = vmul.f32 %v1279_v6, %v1023_v55  ;;  %v5008_v26 = vld [vmem:[#allocation64_spill] sm:$0xff] }
 0x1e4   :  { %v1025_v12 = vmul.f32 0.7978846, %v4138_v1  ;;  %v1156_v50 = vmul.f32 0.044715, %v772_v16  ;;  %v1282_v3 = vadd.f32 1.0, %v1154_v57  ;;  %v771_v58 = vmul.f32 %v363_v61, %v363_v61  ;;  %v5009_v55 = vld [vmem:[#allocation12_spill] sm:$0xff] }
 0x1e5   :  { %5007 = vst [vmem:[#allocation62_spill] sm:$0xff] %v4191_v10  ;;  %v1771_v18 = vmul.f32 %v1643_v56, %v3932_v32  ;;  %v1773_v27 = vmul.f32 %v1645_v34, %v3938_v14  ;;  %v4198_v29 = vpop.eup %2790  ;;  %2796 = vtanh.f32 %v1406_v42  ;;  %v1026_v22 = vmul.f32 0.7978846, %v361_v59 }
 0x1e6   :  { %v773_v51 = vmul.f32 %v620_v19, %v620_v19  ;;  %v367_v4 = vadd.f32 %v5008_v26, %v3183_v44  ;;  %v1409_v10 = vmul.f32 %v1281_v9, %v1025_v12  ;;  %v624_v1 = vadd.f32 %v5009_v55, %v3185_v45 }
 0x1e7   :  { %2046 = vmatprep.mubr.f32.mxu1 %v1771_v18  ;;  %2271 = vmatprep.mubr.f32.mxu0 %v1773_v27  ;;  %v1642_v16 = vadd.f32 1.0, %v3993_v2  ;;  %v1644_v32 = vadd.f32 1.0, %v3998_v36  ;;  %2798 = vtanh.f32 %v1408_v31  ;;  %v4206_v14 = vmul.f32 0.5, %v361_v59  ;;  %v5010_v59 = vld [vmem:[#allocation65_spill] sm:$0xff] }
 0x1e8   :  { %v4209_v57 = vmul.f32 0.5, %v4158_v43  ;;  %v1284_v8 = vadd.f32 1.0, %v1156_v50  ;;  %2800 = vtanh.f32 %v1407_v53  ;;  %v1410_v28 = vmul.f32 %v1282_v3, %v1026_v22  ;;  %v5011_v50 = vld [vmem:[#allocation17_spill] sm:$0xff] }
 0x1e9   :  { %v1028_v6 = vmul.f32 0.7978846, %v4158_v43  ;;  %v1155_v42 = vmul.f32 0.044715, %v771_v58  ;;  %v1157_v56 = vmul.f32 0.044715, %v773_v51  ;;  %v774_v34 = vmul.f32 %v367_v4, %v367_v4 }
 0x1ea   :  { %v1770_v9 = vmul.f32 %v1642_v16, %v3910_v54  ;;  %v1772_v2 = vmul.f32 %v1644_v32, %v3913_v35  ;;  %v4214_v12 = vpop.eup %2792  ;;  %2802 = vtanh.f32 %v1409_v10  ;;  %v776_v36 = vmul.f32 %v624_v1, %v624_v1 }
 0x1eb   :  { %v369_v31 = vadd.f32 %v5010_v59, %v3187_v46  ;;  %v4220_v53 = vadd.f32 %v5011_v50, %v3189_v47  ;;  %v1412_v3 = vmul.f32 %v1284_v8, %v1028_v6  ;;  %v4222_v43 = vmul.f32 0.5, %v363_v61  ;;  %v5012_v6 = vld [vmem:[#allocation13_spill] sm:$0xff] }
 0x1ec   :  { %2047 = vmatmul.mubr.f32.gmra.mrb[90].mxu1 %v1770_v9  ;;  %2272 = vmatmul.mubr.f32.gmra.mrb[90].mxu0 %v1772_v2  ;;  %v1647_v54 = vadd.f32 1.0, %v4073_v33  ;;  %v1649_v35 = vadd.f32 1.0, %v4084_v52  ;;  %v4226_v58 = vpop.eup %2794  ;;  %v1027_v10 = vmul.f32 0.7978846, %v363_v61  ;;  %v1283_v18 = vadd.f32 1.0, %v1155_v42 }
 0x1ed   :  { %v4228_v27 = vmul.f32 0.5, %v620_v19  ;;  %v775_v22 = vmul.f32 %v369_v31, %v369_v31  ;;  %2804 = vtanh.f32 %v1410_v28  ;;  %v1029_v51 = vmul.f32 0.7978846, %v620_v19  ;;  %v5013_v28 = vld [vmem:[#allocation18_spill] sm:$0xff] }
 0x1ee   :  { %v1285_v26 = vadd.f32 1.0, %v1157_v56  ;;  %v1158_v55 = vmul.f32 0.044715, %v774_v34  ;;  %v1160_v16 = vmul.f32 0.044715, %v776_v36  ;;  %v777_v32 = vmul.f32 %v4220_v53, %v4220_v53 }
 0x1ef   :  { %v1775_v8 = vmul.f32 %v1647_v54, %v3988_v37  ;;  %v1777_v33 = vmul.f32 %v1649_v35, %v3991_v5  ;;  %v4234_v52 = vpop.eup %2796  ;;  %2806 = vtanh.f32 %v1412_v3  ;;  %v1159_v61 = vmul.f32 0.044715, %v775_v22 }
 0x1f0   :  { %v373_v42 = vadd.f32 %v5012_v6, %v3183_v44  ;;  %v630_v19 = vadd.f32 %v5013_v28, %v3185_v45  ;;  %v1411_v56 = vmul.f32 %v1283_v18, %v1027_v10  ;;  %v4240_v34 = vmul.f32 0.5, %v367_v4  ;;  %v5015_v6 = vld [vmem:[#allocation19_spill] sm:$0xff] }
 0x1f1   :  { %2051 = vmatprep.mubr.f32.mxu1 %v1775_v8  ;;  %2276 = vmatprep.mubr.f32.mxu0 %v1777_v33  ;;  %v1646_v9 = vadd.f32 1.0, %v4048_v38  ;;  %v1648_v37 = vadd.f32 1.0, %v4066_v15  ;;  %v4244_v5 = vpop.eup %2798  ;;  %v1030_v2 = vmul.f32 0.7978846, %v367_v4  ;;  %v1286_v36 = vadd.f32 1.0, %v1158_v55 }
 0x1f2   :  { %v4246_v59 = vmul.f32 0.5, %v624_v1  ;;  %v778_v50 = vmul.f32 %v373_v42, %v373_v42  ;;  %v4248_v3 = vpop.eup %2800  ;;  %v1413_v54 = vmul.f32 %v1285_v26, %v1029_v51  ;;  %v1032_v35 = vmul.f32 0.7978846, %v624_v1  ;;  %v5016_v1 = vld [vmem:[#allocation66_spill] sm:$0xff] }
 0x1f3   :  { %v1288_v10 = vadd.f32 1.0, %v1160_v16  ;;  %v1161_v18 = vmul.f32 0.044715, %v777_v32  ;;  %v1287_v22 = vadd.f32 1.0, %v1159_v61  ;;  %v780_v8 = vmul.f32 %v630_v19, %v630_v19 }
 0x1f4   :  { %5014 = vst [vmem:[#allocation37_spill] sm:$0xff] %v4246_v59  ;;  %v1774_v33 = vmul.f32 %v1646_v9, %v3954_v39  ;;  %v1776_v38 = vmul.f32 %v1648_v37, %v3965_v20  ;;  %v4252_v15 = vpop.eup %2802  ;;  %2808 = vtanh.f32 %v1411_v56  ;;  %v1031_v4 = vmul.f32 0.7978846, %v369_v31 }
 0x1f5   :  { %v1162_v55 = vmul.f32 0.044715, %v778_v50  ;;  %v375_v28 = vadd.f32 %v5015_v6, %v3187_v46  ;;  %v1414_v59 = vmul.f32 %v1286_v36, %v1030_v2  ;;  %v632_v51 = vadd.f32 %v5016_v1, %v3189_v47 }
 0x1f6   :  { %2052 = vmatmul.mubr.f32.gmra.mrb[92].mxu1 %v1774_v33  ;;  %2277 = vmatmul.mubr.f32.gmra.mrb[92].mxu0 %v1776_v38  ;;  %v1651_v26 = vadd.f32 1.0, %v4130_v60  ;;  %v1653_v39 = vadd.f32 1.0, %v4144_v21  ;;  %2810 = vtanh.f32 %v1413_v54  ;;  %v4260_v20 = vmul.f32 0.5, %v369_v31 }
 0x1f7   :  { %v4263_v16 = vmul.f32 0.5, %v4220_v53  ;;  %v1289_v32 = vadd.f32 1.0, %v1161_v18  ;;  %v4265_v61 = vpop.eup %2804  ;;  %v1416_v56 = vmul.f32 %v1288_v10, %v1032_v35  ;;  %v1415_v9 = vmul.f32 %v1287_v22, %v1031_v4  ;;  %v5017_v18 = vld [vmem:[#allocation20_spill] sm:$0xff] }
 0x1f8   :  { %v1033_v37 = vmul.f32 0.7978846, %v4220_v53  ;;  %v1164_v2 = vmul.f32 0.044715, %v780_v8  ;;  %v1290_v36 = vadd.f32 1.0, %v1162_v55  ;;  %v779_v50 = vmul.f32 %v375_v28, %v375_v28  ;;  %v5018_v53 = vld [vmem:[#allocation67_spill] sm:$0xff] }
 0x1f9   :  { %v1779_v60 = vmul.f32 %v1651_v26, %v4036_v40  ;;  %v1781_v21 = vmul.f32 %v1653_v39, %v4042_v62  ;;  %v4270_v54 = vpop.eup %2806  ;;  %2812 = vtanh.f32 %v1414_v59  ;;  %v1034_v31 = vmul.f32 0.7978846, %v373_v42  ;;  %v5021_v39 = vld [vmem:[#allocation23_spill] sm:$0xff] }
 0x1fa   :  { %v781_v33 = vmul.f32 %v632_v51, %v632_v51  ;;  %v379_v38 = vadd.f32 %v5017_v18, %v3183_v44  ;;  %v1417_v6 = vmul.f32 %v1289_v32, %v1033_v37  ;;  %v636_v35 = vadd.f32 %v5018_v53, %v3185_v45  ;;  %v5022_v37 = vld [vmem:[#allocation49_spill] sm:$0xff] }
 0x1fb   :  { %2056 = vmatprep.mubr.f32.mxu1 %v1779_v60  ;;  %2281 = vmatprep.mubr.f32.mxu0 %v1781_v21  ;;  %v1650_v10 = vadd.f32 1.0, %v4097_v25  ;;  %v1652_v40 = vadd.f32 1.0, %v4102_v49  ;;  %2814 = vtanh.f32 %v1416_v56  ;;  %v4278_v62 = vmul.f32 0.5, %v373_v42  ;;  %v5023_v49 = vld [vmem:[#allocation68_spill] sm:$0xff]  ;;  %v5024_v56 = vld [vmem:[#allocation69_spill] sm:$0xff] }
 0x1fc   :  { %v4280_v22 = vmul.f32 0.5, %v630_v19  ;;  %v1292_v59 = vadd.f32 1.0, %v1164_v2  ;;  %2816 = vtanh.f32 %v1415_v9  ;;  %v1418_v8 = vmul.f32 %v1290_v36, %v1034_v31 }
 0x1fd   :  { %5019 = vst [vmem:[#allocation38_spill] sm:$0xff] %v4278_v62  ;;  %v1036_v4 = vmul.f32 0.7978846, %v630_v19  ;;  %v1163_v55 = vmul.f32 0.044715, %v779_v50  ;;  %v782_v26 = vmul.f32 %v379_v38, %v379_v38  ;;  %v1778_v32 = vmul.f32 %v1650_v10, %v5021_v39 }
 0x1fe   :  { %5020 = vst [vmem:[#allocation63_spill] sm:$0xff] %v4280_v22  ;;  %v1165_v1 = vmul.f32 0.044715, %v781_v33  ;;  %v1780_v60 = vmul.f32 %v1652_v40, %v5022_v37  ;;  %v4284_v21 = vpop.eup %2808  ;;  %2818 = vtanh.f32 %v1417_v6  ;;  %v784_v25 = vmul.f32 %v636_v35, %v636_v35 }
 0x1ff   :  { %v381_v42 = vadd.f32 %v5023_v49, %v3187_v46  ;;  %v4290_v2 = vadd.f32 %v5024_v56, %v3189_v47  ;;  %v1420_v9 = vmul.f32 %v1292_v59, %v1036_v4  ;;  %v4292_v19 = vmul.f32 0.5, %v375_v28  ;;  %2057 = vmatmul.mubr.f32.gmra.mrb[94].mxu1 %v1778_v32 }
 0x200   :  { %2282 = vmatmul.mubr.f32.gmra.mrb[94].mxu0 %v1780_v60  ;;  %v1655_v36 = vadd.f32 1.0, %v4173_v63  ;;  %v1657_v50 = vadd.f32 1.0, %v4180_v30  ;;  %v4296_v31 = vpop.eup %2810  ;;  %v1035_v33 = vmul.f32 0.7978846, %v375_v28  ;;  %v1291_v18 = vadd.f32 1.0, %v1163_v55  ;;  %v5026_v63 = vld [vmem:[#allocation25_spill] sm:$0xff] }
 0x201   :  { %v4298_v6 = vmul.f32 0.5, %v632_v51  ;;  %v783_v53 = vmul.f32 %v381_v42, %v381_v42  ;;  %2820 = vtanh.f32 %v1418_v8  ;;  %v1037_v10 = vmul.f32 0.7978846, %v632_v51  ;;  %v5027_v55 = vld [vmem:[#allocation15_spill] sm:$0xff]  ;;  %v5028_v8 = vld [vmem:[#allocation16_spill] sm:$0xff] }
 0x202   :  { %v1293_v40 = vadd.f32 1.0, %v1165_v1  ;;  %v1166_v39 = vmul.f32 0.044715, %v782_v26  ;;  %v1168_v59 = vmul.f32 0.044715, %v784_v25  ;;  %v785_v4 = vmul.f32 %v4290_v2, %v4290_v2 }
 0x203   :  { %5025 = vst [vmem:[#allocation14_spill] sm:$0xff] %v4298_v6  ;;  %v1783_v32 = vmul.f32 %v1655_v36, %v4092_v7  ;;  %v1785_v37 = vmul.f32 %v1657_v50, %v5026_v63  ;;  %v4304_v30 = vpop.eup %2812  ;;  %2822 = vtanh.f32 %v1420_v9  ;;  %v1167_v28 = vmul.f32 0.044715, %v783_v53 }
 0x204   :  { %v385_v60 = vadd.f32 %v5027_v55, %v3183_v44  ;;  %v642_v51 = vadd.f32 %v5028_v8, %v3185_v45  ;;  %v1419_v1 = vmul.f32 %v1291_v18, %v1035_v33  ;;  %v4310_v26 = vmul.f32 0.5, %v379_v38 }
 0x205   :  { %2061 = vmatprep.mubr.f32.mxu1 %v1783_v32  ;;  %2286 = vmatprep.mubr.f32.mxu0 %v1785_v37  ;;  %v1654_v25 = vadd.f32 1.0, %v4152_v17  ;;  %v1656_v7 = vadd.f32 1.0, %v4168_v23  ;;  %v4314_v49 = vpop.eup %2814  ;;  %v1038_v56 = vmul.f32 0.7978846, %v379_v38  ;;  %v1294_v9 = vadd.f32 1.0, %v1166_v39  ;;  %v5031_v37 = vld [vmem:[#allocation22_spill] sm:$0xff] }
 0x206   :  { %5029 = vst [vmem:[#allocation64_spill] sm:$0xff] %v4310_v26  ;;  %v4316_v36 = vmul.f32 0.5, %v636_v35  ;;  %v786_v50 = vmul.f32 %v385_v60, %v385_v60  ;;  %v4318_v53 = vpop.eup %2816  ;;  %v1421_v63 = vmul.f32 %v1293_v40, %v1037_v10  ;;  %v1040_v55 = vmul.f32 0.7978846, %v636_v35  ;;  %v5032_v17 = vld [vmem:[#allocation29_spill] sm:$0xff]  ;;  %v5034_v35 = vld [vmem:[#allocation26_spill] sm:$0xff] }
 0x207   :  { %v1296_v33 = vadd.f32 1.0, %v1168_v59  ;;  %v1169_v18 = vmul.f32 0.044715, %v785_v4  ;;  %v1295_v8 = vadd.f32 1.0, %v1167_v28  ;;  %v788_v32 = vmul.f32 %v642_v51, %v642_v51 }
 0x208   :  { %5030 = vst [vmem:[#allocation12_spill] sm:$0xff] %v4316_v36  ;;  %v1782_v26 = vmul.f32 %v1654_v25, %v5031_v37  ;;  %v1784_v22 = vmul.f32 %v1656_v7, %v5032_v17  ;;  %v4322_v23 = vpop.eup %2818  ;;  %2824 = vtanh.f32 %v1419_v1  ;;  %v1039_v38 = vmul.f32 0.7978846, %v381_v42  ;;  %v5033_v36 = vld [vmem:[#allocation31_spill] sm:$0xff] }
 0x209   :  { %v1170_v39 = vmul.f32 0.044715, %v786_v50  ;;  %v387_v62 = vadd.f32 %v5033_v36, %v3187_v46  ;;  %v1422_v6 = vmul.f32 %v1294_v9, %v1038_v56  ;;  %v644_v10 = vadd.f32 %v5034_v35, %v3189_v47 }
 0x20a   :  { %2062 = vmatmul.mubr.f32.gmra.mrb[96].mxu1 %v1782_v26  ;;  %2287 = vmatmul.mubr.f32.gmra.mrb[96].mxu0 %v1784_v22  ;;  %v1659_v40 = vadd.f32 1.0, %v4214_v12  ;;  %v1661_v59 = vadd.f32 1.0, %v4226_v58  ;;  %2826 = vtanh.f32 %v1421_v63  ;;  %v4330_v4 = vmul.f32 0.5, %v381_v42 }
 0x20b   :  { %v4333_v28 = vmul.f32 0.5, %v4290_v2  ;;  %v1297_v1 = vadd.f32 1.0, %v1169_v18  ;;  %v4335_v25 = vpop.eup %2820  ;;  %v1424_v7 = vmul.f32 %v1296_v33, %v1040_v55  ;;  %v1423_v56 = vmul.f32 %v1295_v8, %v1039_v38  ;;  %v5035_v18 = vld [vmem:[#allocation24_spill] sm:$0xff] }
 0x20c   :  { %v1041_v22 = vmul.f32 0.7978846, %v4290_v2  ;;  %v1172_v26 = vmul.f32 0.044715, %v788_v32  ;;  %v1298_v9 = vadd.f32 1.0, %v1170_v39  ;;  %v787_v36 = vmul.f32 %v387_v62, %v387_v62  ;;  %v5036_v2 = vld [vmem:[#allocation27_spill] sm:$0xff] }
 0x20d   :  { %v1787_v12 = vmul.f32 %v1659_v40, %v4140_v13  ;;  %v1789_v58 = vmul.f32 %v1661_v59, %v4146_v24  ;;  %v4340_v50 = vpop.eup %2822  ;;  %2828 = vtanh.f32 %v1422_v6  ;;  %v1042_v42 = vmul.f32 0.7978846, %v385_v60 }
 0x20e   :  { %v789_v63 = vmul.f32 %v644_v10, %v644_v10  ;;  %v391_v37 = vadd.f32 %v5035_v18, %v3183_v44  ;;  %v1425_v17 = vmul.f32 %v1297_v1, %v1041_v22  ;;  %v648_v55 = vadd.f32 %v5036_v2, %v3185_v45 }
 0x20f   :  { %2066 = vmatprep.mubr.f32.mxu1 %v1787_v12  ;;  %2291 = vmatprep.mubr.f32.mxu0 %v1789_v58  ;;  %v1658_v33 = vadd.f32 1.0, %v4193_v11  ;;  %v1660_v13 = vadd.f32 1.0, %v4198_v29  ;;  %2830 = vtanh.f32 %v1424_v7  ;;  %v4348_v24 = vmul.f32 0.5, %v385_v60  ;;  %v5038_v29 = vld [vmem:[#allocation30_spill] sm:$0xff]  ;;  %v5039_v7 = vld [vmem:[#allocation32_spill] sm:$0xff] }
 0x210   :  { %v4350_v8 = vmul.f32 0.5, %v642_v51  ;;  %v1300_v6 = vadd.f32 1.0, %v1172_v26  ;;  %2832 = vtanh.f32 %v1423_v56  ;;  %v1426_v32 = vmul.f32 %v1298_v9, %v1042_v42 }
 0x211   :  { %v1044_v38 = vmul.f32 0.7978846, %v642_v51  ;;  %v1171_v39 = vmul.f32 0.044715, %v787_v36  ;;  %v1173_v35 = vmul.f32 0.044715, %v789_v63  ;;  %v790_v40 = vmul.f32 %v391_v37, %v391_v37 }
 0x212   :  { %5037 = vst [vmem:[#allocation65_spill] sm:$0xff] %v4350_v8  ;;  %v1786_v59 = vmul.f32 %v1658_v33, %v4118_v48  ;;  %v1788_v1 = vmul.f32 %v1660_v13, %v4121_v41  ;;  %v4354_v22 = vpop.eup %2824  ;;  %2834 = vtanh.f32 %v1425_v17  ;;  %v792_v11 = vmul.f32 %v648_v55, %v648_v55 }
 0x213   :  { %v393_v60 = vadd.f32 %v5038_v29, %v3187_v46  ;;  %v4360_v26 = vadd.f32 %v5039_v7, %v3189_v47  ;;  %v1428_v56 = vmul.f32 %v1300_v6, %v1044_v38  ;;  %v4362_v51 = vmul.f32 0.5, %v387_v62  ;;  %v5041_v38 = vld [vmem:[#allocation33_spill] sm:$0xff] }
 0x214   :  { %2067 = vmatmul.mubr.f32.gmra.mrb[98].mxu1 %v1786_v59  ;;  %2292 = vmatmul.mubr.f32.gmra.mrb[98].mxu0 %v1788_v1  ;;  %v1663_v48 = vadd.f32 1.0, %v4248_v3  ;;  %v1665_v41 = vadd.f32 1.0, %v4252_v15  ;;  %v4366_v9 = vpop.eup %2826  ;;  %v1043_v36 = vmul.f32 0.7978846, %v387_v62  ;;  %v1299_v12 = vadd.f32 1.0, %v1171_v39  ;;  %v5040_v3 = vld [vmem:[#allocation62_spill] sm:$0xff] }
 0x215   :  { %v4368_v58 = vmul.f32 0.5, %v644_v10  ;;  %v791_v42 = vmul.f32 %v393_v60, %v393_v60  ;;  %2836 = vtanh.f32 %v1426_v32  ;;  %v1045_v63 = vmul.f32 0.7978846, %v644_v10  ;;  %v5042_v32 = vld [vmem:[#allocation36_spill] sm:$0xff] }
 0x216   :  { %v1301_v18 = vadd.f32 1.0, %v1173_v35  ;;  %v1174_v17 = vmul.f32 0.044715, %v790_v40  ;;  %v1176_v2 = vmul.f32 0.044715, %v792_v11  ;;  %v793_v33 = vmul.f32 %v4360_v26, %v4360_v26 }
 0x217   :  { %v1791_v13 = vmul.f32 %v1663_v48, %v4188_v0  ;;  %v1793_v6 = vmul.f32 %v1665_v41, %v5040_v3  ;;  %v4374_v15 = vpop.eup %2828  ;;  %2838 = vtanh.f32 %v1428_v56  ;;  %v1175_v62 = vmul.f32 0.044715, %v791_v42 }
 0x218   :  { %v397_v39 = vadd.f32 %v5041_v38, %v3183_v44  ;;  %v654_v10 = vadd.f32 %v5042_v32, %v3185_v45  ;;  %v1427_v35 = vmul.f32 %v1299_v12, %v1043_v36  ;;  %v4380_v40 = vmul.f32 0.5, %v391_v37 }
 0x219   :  { %2071 = vmatprep.mubr.f32.mxu1 %v1791_v13  ;;  %2296 = vmatprep.mubr.f32.mxu0 %v1793_v6  ;;  %v1662_v59 = vadd.f32 1.0, %v4234_v52  ;;  %v1664_v0 = vadd.f32 1.0, %v4244_v5  ;;  %v4384_v1 = vpop.eup %2830  ;;  %v1046_v11 = vmul.f32 0.7978846, %v391_v37  ;;  %v1302_v29 = vadd.f32 1.0, %v1174_v17  ;;  %v5045_v6 = vld [vmem:[#allocation58_spill] sm:$0xff] }
 0x21a   :  { %5043 = vst [vmem:[#allocation17_spill] sm:$0xff] %v4380_v40  ;;  %v4386_v7 = vmul.f32 0.5, %v648_v55  ;;  %v794_v56 = vmul.f32 %v397_v39, %v397_v39  ;;  %v4388_v48 = vpop.eup %2832  ;;  %v1429_v41 = vmul.f32 %v1301_v18, %v1045_v63  ;;  %v1048_v42 = vmul.f32 0.7978846, %v648_v55  ;;  %v5046_v52 = vld [vmem:[#allocation61_spill] sm:$0xff]  ;;  %v5048_v55 = vld [vmem:[#allocation35_spill] sm:$0xff] }
 0x21b   :  { %v1304_v36 = vadd.f32 1.0, %v1176_v2  ;;  %v1177_v12 = vmul.f32 0.044715, %v793_v33  ;;  %v1303_v3 = vadd.f32 1.0, %v1175_v62  ;;  %v796_v13 = vmul.f32 %v654_v10, %v654_v10 }
 0x21c   :  { %5044 = vst [vmem:[#allocation13_spill] sm:$0xff] %v4386_v7  ;;  %v1790_v38 = vmul.f32 %v1662_v59, %v5045_v6  ;;  %v1792_v32 = vmul.f32 %v1664_v0, %v5046_v52  ;;  %v4392_v5 = vpop.eup %2834  ;;  %2840 = vtanh.f32 %v1427_v35  ;;  %v1047_v37 = vmul.f32 0.7978846, %v393_v60  ;;  %v5047_v7 = vld [vmem:[#allocation34_spill] sm:$0xff] }
 0x21d   :  { %v1178_v17 = vmul.f32 0.044715, %v794_v56  ;;  %v399_v40 = vadd.f32 %v5047_v7, %v3187_v46  ;;  %v1430_v8 = vmul.f32 %v1302_v29, %v1046_v11  ;;  %v656_v63 = vadd.f32 %v5048_v55, %v3189_v47 }
 0x21e   :  { %2072 = vmatmul.mubr.f32.gmra.mrb[100].mxu1 %v1790_v38  ;;  %2297 = vmatmul.mubr.f32.gmra.mrb[100].mxu0 %v1792_v32  ;;  %v1667_v18 = vadd.f32 1.0, %v4284_v21  ;;  %v1669_v2 = vadd.f32 1.0, %v4296_v31  ;;  %2842 = vtanh.f32 %v1429_v41  ;;  %v4400_v33 = vmul.f32 0.5, %v393_v60 }
 0x21f   :  { %v4403_v62 = vmul.f32 0.5, %v4360_v26  ;;  %v1305_v35 = vadd.f32 1.0, %v1177_v12  ;;  %v4405_v59 = vpop.eup %2836  ;;  %v1432_v0 = vmul.f32 %v1304_v36, %v1048_v42  ;;  %v1431_v11 = vmul.f32 %v1303_v3, %v1047_v37  ;;  %v5049_v12 = vld [vmem:[#allocation39_spill] sm:$0xff] }
 0x220   :  { %v1049_v29 = vmul.f32 0.7978846, %v4360_v26  ;;  %v1180_v7 = vmul.f32 0.044715, %v796_v13  ;;  %v1306_v56 = vadd.f32 1.0, %v1178_v17  ;;  %v795_v6 = vmul.f32 %v399_v40, %v399_v40  ;;  %v5050_v26 = vld [vmem:[#allocation70_spill] sm:$0xff] }
 0x221   :  { %v1795_v21 = vmul.f32 %v1667_v18, %v4222_v43  ;;  %v1797_v31 = vmul.f32 %v1669_v2, %v4228_v27  ;;  %v4410_v41 = vpop.eup %2838  ;;  %2844 = vtanh.f32 %v1430_v8  ;;  %v1050_v60 = vmul.f32 0.7978846, %v397_v39 }
 0x222   :  { %v797_v38 = vmul.f32 %v656_v63, %v656_v63  ;;  %v403_v52 = vadd.f32 %v5049_v12, %v3183_v44  ;;  %v1433_v32 = vmul.f32 %v1305_v35, %v1049_v29  ;;  %v660_v42 = vadd.f32 %v5050_v26, %v3185_v45 }
 0x223   :  { %2076 = vmatprep.mubr.f32.mxu1 %v1795_v21  ;;  %2301 = vmatprep.mubr.f32.mxu0 %v1797_v31  ;;  %v1666_v36 = vadd.f32 1.0, %v4265_v61  ;;  %v1668_v43 = vadd.f32 1.0, %v4270_v54  ;;  %2846 = vtanh.f32 %v1432_v0  ;;  %v4418_v27 = vmul.f32 0.5, %v397_v39  ;;  %v5051_v54 = vld [vmem:[#allocation40_spill] sm:$0xff]  ;;  %v5052_v0 = vld [vmem:[#allocation41_spill] sm:$0xff] }
 0x224   :  { %v4420_v3 = vmul.f32 0.5, %v654_v10  ;;  %v1308_v8 = vadd.f32 1.0, %v1180_v7  ;;  %2848 = vtanh.f32 %v1431_v11  ;;  %v1434_v13 = vmul.f32 %v1306_v56, %v1050_v60 }
 0x225   :  { %v1052_v37 = vmul.f32 0.7978846, %v654_v10  ;;  %v1179_v17 = vmul.f32 0.044715, %v795_v6  ;;  %v1181_v55 = vmul.f32 0.044715, %v797_v38  ;;  %v798_v18 = vmul.f32 %v403_v52, %v403_v52 }
 0x226   :  { %v1794_v2 = vmul.f32 %v1666_v36, %v4206_v14  ;;  %v1796_v35 = vmul.f32 %v1668_v43, %v4209_v57  ;;  %v4424_v29 = vpop.eup %2840  ;;  %2850 = vtanh.f32 %v1433_v32  ;;  %v800_v61 = vmul.f32 %v660_v42, %v660_v42 }
 0x227   :  { %v4428_v39 = vadd.f32 %v5051_v54, %v3187_v46  ;;  %v4432_v11 = vadd.f32 %v5052_v0, %v3189_v47  ;;  %v1436_v10 = vmul.f32 %v1308_v8, %v1052_v37  ;;  %v4434_v7 = vmul.f32 0.5, %v399_v40  ;;  %v5053_v8 = vld [vmem:[#allocation42_spill] sm:$0xff] }
 0x228   :  { %2077 = vmatmul.mubr.f32.gmra.mrb[102].mxu1 %v1794_v2  ;;  %2302 = vmatmul.mubr.f32.gmra.mrb[102].mxu0 %v1796_v35  ;;  %v1671_v14 = vadd.f32 1.0, %v4318_v53  ;;  %v1673_v57 = vadd.f32 1.0, %v4322_v23  ;;  %v4438_v56 = vpop.eup %2842  ;;  %v1051_v6 = vmul.f32 0.7978846, %v399_v40  ;;  %v1307_v21 = vadd.f32 1.0, %v1179_v17 }
 0x229   :  { %v4440_v31 = vmul.f32 0.5, %v656_v63  ;;  %v799_v60 = vmul.f32 %v4428_v39, %v4428_v39  ;;  %2852 = vtanh.f32 %v1434_v13  ;;  %v1053_v38 = vmul.f32 0.7978846, %v656_v63  ;;  %v5054_v63 = vld [vmem:[#allocation43_spill] sm:$0xff] }
 0x22a   :  { %v1309_v12 = vadd.f32 1.0, %v1181_v55  ;;  %v1182_v32 = vmul.f32 0.044715, %v798_v18  ;;  %v1184_v26 = vmul.f32 0.044715, %v800_v61  ;;  %v801_v36 = vmul.f32 %v4432_v11, %v4432_v11 }
 0x22b   :  { %v1799_v53 = vmul.f32 %v1671_v14, %v4260_v20  ;;  %v1801_v23 = vmul.f32 %v1673_v57, %v4263_v16  ;;  %v4448_v43 = vpop.eup %2844  ;;  %2854 = vtanh.f32 %v1436_v10  ;;  %v1183_v40 = vmul.f32 0.044715, %v799_v60  ;;  %v5055_v60 = vld [vmem:[#allocation37_spill] sm:$0xff] }
 0x22c   :  { %v4452_v37 = vadd.f32 %v5053_v8, %v3183_v44  ;;  %v4456_v13 = vadd.f32 %v5054_v63, %v3185_v45  ;;  %v1435_v17 = vmul.f32 %v1307_v21, %v1051_v6  ;;  %v4458_v55 = vmul.f32 0.5, %v403_v52 }
 0x22d   :  { %2081 = vmatprep.mubr.f32.mxu1 %v1799_v53  ;;  %2306 = vmatprep.mubr.f32.mxu0 %v1801_v23  ;;  %v1670_v20 = vadd.f32 1.0, %v4304_v30  ;;  %v1672_v16 = vadd.f32 1.0, %v4314_v49  ;;  %v4462_v18 = vpop.eup %2846  ;;  %v1054_v2 = vmul.f32 0.7978846, %v403_v52  ;;  %v1310_v35 = vadd.f32 1.0, %v1182_v32  ;;  %v5056_v23 = vld [vmem:[#allocation44_spill] sm:$0xff] }
 0x22e   :  { %v4464_v61 = vmul.f32 0.5, %v660_v42  ;;  %v802_v54 = vmul.f32 %v4452_v37, %v4452_v37  ;;  %v4468_v0 = vpop.eup %2848  ;;  %v1437_v10 = vmul.f32 %v1309_v12, %v1053_v38  ;;  %v1056_v14 = vmul.f32 0.7978846, %v660_v42  ;;  %v5057_v42 = vld [vmem:[#allocation45_spill] sm:$0xff] }
 0x22f   :  { %v1312_v57 = vadd.f32 1.0, %v1184_v26  ;;  %v1185_v6 = vmul.f32 0.044715, %v801_v36  ;;  %v1311_v21 = vadd.f32 1.0, %v1183_v40  ;;  %v804_v30 = vmul.f32 %v4456_v13, %v4456_v13 }
 0x230   :  { %v1798_v49 = vmul.f32 %v1670_v20, %v4240_v34  ;;  %v1800_v52 = vmul.f32 %v1672_v16, %v5055_v60  ;;  %v4474_v32 = vpop.eup %2850  ;;  %2856 = vtanh.f32 %v1435_v17  ;;  %v1186_v53 = vmul.f32 0.044715, %v802_v54 }
 0x231   :  { %v4478_v8 = vadd.f32 %v5056_v23, %v3187_v46  ;;  %v4482_v38 = vadd.f32 %v5057_v42, %v3189_v47  ;;  %v1438_v12 = vmul.f32 %v1310_v35, %v1054_v2  ;;  %v1055_v26 = vmul.f32 0.7978846, %v4428_v39 }
 0x232   :  { %2082 = vmatmul.mubr.f32.gmra.mrb[104].mxu1 %v1798_v49  ;;  %2307 = vmatmul.mubr.f32.gmra.mrb[104].mxu0 %v1800_v52  ;;  %v1675_v34 = vadd.f32 1.0, %v4354_v22  ;;  %v1677_v36 = vadd.f32 1.0, %v4366_v9  ;;  %2858 = vtanh.f32 %v1437_v10  ;;  %v1440_v40 = vmul.f32 %v1312_v57, %v1056_v14  ;;  %v5058_v9 = vld [vmem:[#allocation14_spill] sm:$0xff] }
 0x233   :  { %v1057_v63 = vmul.f32 0.7978846, %v4432_v11  ;;  %v803_v17 = vmul.f32 %v4478_v8, %v4478_v8  ;;  %v4490_v20 = vpop.eup %2852  ;;  %v1439_v16 = vmul.f32 %v1311_v21, %v1055_v26  ;;  %v1313_v54 = vadd.f32 1.0, %v1185_v6  ;;  %v5059_v52 = vld [vmem:[#allocation46_spill] sm:$0xff]  ;;  %v5060_v6 = vld [vmem:[#allocation71_spill] sm:$0xff] }
 0x234   :  { %v1188_v2 = vmul.f32 0.044715, %v804_v30  ;;  %v805_v35 = vmul.f32 %v4482_v38, %v4482_v38  ;;  %v1314_v49 = vadd.f32 1.0, %v1186_v53  ;;  %v1803_v22 = vmul.f32 %v1675_v34, %v4292_v19 }
 0x235   :  { %v1187_v60 = vmul.f32 0.044715, %v803_v17  ;;  %v1805_v10 = vmul.f32 %v1677_v36, %v5058_v9  ;;  %v4496_v14 = vpop.eup %2854  ;;  %2860 = vtanh.f32 %v1438_v12  ;;  %v4500_v23 = vadd.f32 %v5059_v52, %v3183_v44  ;;  %v5062_v9 = vld [vmem:[#allocation38_spill] sm:$0xff] }
 0x236   :  { %v1189_v57 = vmul.f32 0.044715, %v805_v35  ;;  %v4504_v21 = vadd.f32 %v5060_v6, %v3185_v45  ;;  %2862 = vtanh.f32 %v1440_v40  ;;  %v1058_v30 = vmul.f32 0.7978846, %v4452_v37  ;;  %2086 = vmatprep.mubr.f32.mxu1 %v1803_v22 }
 0x237   :  { %2311 = vmatprep.mubr.f32.mxu0 %v1805_v10  ;;  %v1674_v19 = vadd.f32 1.0, %v4335_v25  ;;  %v1676_v53 = vadd.f32 1.0, %v4340_v50  ;;  %2864 = vtanh.f32 %v1439_v16  ;;  %v1441_v42 = vmul.f32 %v1313_v54, %v1057_v63  ;;  %v5063_v25 = vld [vmem:[#allocation63_spill] sm:$0xff] }
 0x238   :  { %5061 = vst [vmem:[#allocation18_spill] sm:$0xff] %v4504_v21  ;;  %v1060_v12 = vmul.f32 0.7978846, %v4456_v13  ;;  %v806_v26 = vmul.f32 %v4500_v23, %v4500_v23  ;;  %v1442_v34 = vmul.f32 %v1314_v49, %v1058_v30  ;;  %v1316_v36 = vadd.f32 1.0, %v1188_v2  ;;  %v5064_v54 = vld [vmem:[#allocation47_spill] sm:$0xff]  ;;  %v5065_v2 = vld [vmem:[#allocation48_spill] sm:$0xff] }
 0x239   :  { %v1315_v17 = vadd.f32 1.0, %v1187_v60  ;;  %v808_v40 = vmul.f32 %v4504_v21, %v4504_v21  ;;  %v1317_v35 = vadd.f32 1.0, %v1189_v57  ;;  %v1802_v10 = vmul.f32 %v1674_v19, %v5062_v9  ;;  %v4529_v57 = vpop.f32.mrb[64].mxu0 }
 0x23a   :  { %v1190_v22 = vmul.f32 0.044715, %v806_v26  ;;  %v1804_v52 = vmul.f32 %v1676_v53, %v5063_v25  ;;  %v4516_v50 = vpop.eup %2856  ;;  %v1059_v63 = vmul.f32 0.7978846, %v4478_v8  ;;  %v4521_v6 = vadd.f32 %v5064_v54, %v3187_v46  ;;  %5067 = vst [vmem:[#allocation66_spill] sm:$0xff] %v4529_v57 }
 0x23b   :  { %v1192_v16 = vmul.f32 0.044715, %v808_v40  ;;  %v4525_v49 = vadd.f32 %v5065_v2, %v3189_v47  ;;  %2866 = vtanh.f32 %v1441_v42  ;;  %v1061_v30 = vmul.f32 0.7978846, %v4482_v38  ;;  %2087 = vmatmul.mubr.f32.gmra.mrb[106].mxu1 %v1802_v10  ;;  %v2210_v40 = vpop.f32.mrb[65].mxu0 }
 0x23c   :  { %v4527_v60 = vpop.f32.mrb[64].mxu1  ;;  %2312 = vmatmul.mubr.f32.gmra.mrb[106].mxu0 %v1804_v52  ;;  %v1679_v19 = vadd.f32 1.0, %v4388_v48  ;;  %v1681_v53 = vadd.f32 1.0, %v4392_v5  ;;  %v4534_v9 = vpop.eup %2858  ;;  %v4537_v25 = vmul.f32 0.5, %v4428_v39  ;;  %2868 = vtanh.f32 %v1442_v34  ;;  %v5068_v34 = vld [vmem:[#allocation50_spill] sm:$0xff] }
 0x23d   :  { %5066 = vst [vmem:[#allocation19_spill] sm:$0xff] %v4527_v60  ;;  %v1985_v26 = vpop.f32.mrb[65].mxu1  ;;  %v1444_v54 = vmul.f32 %v1316_v36, %v1060_v12  ;;  %v807_v42 = vmul.f32 %v4521_v6, %v4521_v6  ;;  %v1443_v2 = vmul.f32 %v1315_v17, %v1059_v63  ;;  %v1445_v57 = vmul.f32 %v1317_v35, %v1061_v30  ;;  %v5069_v17 = vld [vmem:[#allocation21_spill] sm:$0xff] }
 0x23e   :  { %v1318_v10 = vadd.f32 1.0, %v1190_v22  ;;  %v809_v48 = vmul.f32 %v4525_v49, %v4525_v49  ;;  %v1320_v52 = vadd.f32 1.0, %v1192_v16  ;;  %v1807_v26 = vmul.f32 %v1679_v19, %v4330_v4 }
 0x23f   :  { %v1191_v5 = vmul.f32 0.044715, %v807_v42  ;;  %v1809_v40 = vmul.f32 %v1681_v53, %v4333_v28  ;;  %v4545_v60 = vpop.eup %2860  ;;  %v1062_v39 = vmul.f32 0.7978846, %v4500_v23  ;;  %v4550_v36 = vadd.f32 %v5068_v34, %v3183_v44  ;;  %v5071_v34 = vld [vmem:[#allocation12_spill] sm:$0xff] }
 0x240   :  { %v1193_v12 = vmul.f32 0.044715, %v809_v48  ;;  %v4554_v35 = vadd.f32 %v5069_v17, %v3185_v45  ;;  %v4556_v22 = vpop.eup %2862  ;;  %2870 = vtanh.f32 %v1444_v54  ;;  %v1064_v4 = vmul.f32 0.7978846, %v4504_v21  ;;  %2091 = vmatprep.mubr.f32.mxu1 %v1807_v26 }
 0x241   :  { %2316 = vmatprep.mubr.f32.mxu0 %v1809_v40  ;;  %v1678_v28 = vadd.f32 1.0, %v4374_v15  ;;  %v1680_v63 = vadd.f32 1.0, %v4384_v1  ;;  %v4561_v16 = vpop.eup %2864  ;;  %v4564_v30 = vmul.f32 0.5, %v4432_v11  ;;  %2872 = vtanh.f32 %v1443_v2  ;;  %v5070_v40 = vld [vmem:[#allocation64_spill] sm:$0xff]  ;;  %v5072_v2 = vld [vmem:[#allocation51_spill] sm:$0xff] }
 0x242   :  { %v1446_v19 = vmul.f32 %v1318_v10, %v1062_v39  ;;  %v810_v53 = vmul.f32 %v4550_v36, %v4550_v36  ;;  %2874 = vtanh.f32 %v1445_v57  ;;  %v1448_v54 = vmul.f32 %v1320_v52, %v1064_v4  ;;  %v5073_v57 = vld [vmem:[#allocation52_spill] sm:$0xff] }
 0x243   :  { %v1319_v42 = vadd.f32 1.0, %v1191_v5  ;;  %v812_v48 = vmul.f32 %v4554_v35, %v4554_v35  ;;  %v1321_v26 = vadd.f32 1.0, %v1193_v12  ;;  %v1806_v1 = vmul.f32 %v1678_v28, %v5070_v40 }
 0x244   :  { %v1194_v15 = vmul.f32 0.044715, %v810_v53  ;;  %v1808_v17 = vmul.f32 %v1680_v63, %v5071_v34  ;;  %v1063_v11 = vmul.f32 0.7978846, %v4521_v6  ;;  %v4575_v10 = vadd.f32 %v5072_v2, %v3187_v46 }
 0x245   :  { %v1196_v21 = vmul.f32 0.044715, %v812_v48  ;;  %v4579_v52 = vadd.f32 %v5073_v57, %v3189_v47  ;;  %v4581_v5 = vpop.eup %2866  ;;  %2876 = vtanh.f32 %v1446_v19  ;;  %v1065_v39 = vmul.f32 0.7978846, %v4525_v49  ;;  %2092 = vmatmul.mubr.f32.gmra.mrb[108].mxu1 %v1806_v1 }
 0x246   :  { %2317 = vmatmul.mubr.f32.gmra.mrb[108].mxu0 %v1808_v17  ;;  %v1683_v12 = vadd.f32 1.0, %v4424_v29  ;;  %v1685_v4 = vadd.f32 1.0, %v4438_v56  ;;  %v4586_v28 = vpop.eup %2868  ;;  %v4589_v63 = vmul.f32 0.5, %v4452_v37  ;;  %v4592_v53 = vmul.f32 0.5, %v4456_v13 }
 0x247   :  { %2878 = vtanh.f32 %v1448_v54  ;;  %v811_v19 = vmul.f32 %v4575_v10, %v4575_v10  ;;  %v1447_v48 = vmul.f32 %v1319_v42, %v1063_v11  ;;  %v1449_v40 = vmul.f32 %v1321_v26, %v1065_v39  ;;  %v5077_v26 = vld [vmem:[#allocation53_spill] sm:$0xff]  ;;  %v5079_v11 = vld [vmem:[#allocation54_spill] sm:$0xff] }
 0x248   :  { %5074 = vst [vmem:[#allocation20_spill] sm:$0xff] %v4592_v53  ;;  %v1322_v1 = vadd.f32 1.0, %v1194_v15  ;;  %v813_v29 = vmul.f32 %v4579_v52, %v4579_v52  ;;  %v4600_v56 = vpop.f32.mrb[66].mxu0  ;;  %v1324_v17 = vadd.f32 1.0, %v1196_v21  ;;  %v1811_v2 = vmul.f32 %v1683_v12, %v4362_v51 }
 0x249   :  { %v4598_v34 = vpop.f32.mrb[66].mxu1  ;;  %5076 = vst [vmem:[#allocation23_spill] sm:$0xff] %v4600_v56  ;;  %v1195_v37 = vmul.f32 0.044715, %v811_v19  ;;  %v1813_v13 = vmul.f32 %v1685_v4, %v4368_v58  ;;  %v2215_v57 = vpop.f32.mrb[67].mxu0  ;;  %v4607_v15 = vadd.f32 %v5077_v26, %v3183_v44  ;;  %v4611_v39 = vadd.f32 %v5079_v11, %v3185_v45 }
 0x24a   :  { %5075 = vst [vmem:[#allocation67_spill] sm:$0xff] %v4598_v34  ;;  %v1990_v54 = vpop.f32.mrb[67].mxu1  ;;  %v1066_v53 = vmul.f32 0.7978846, %v4550_v36  ;;  %v1197_v42 = vmul.f32 0.044715, %v813_v29  ;;  %v4613_v56 = vpop.eup %2870  ;;  %2096 = vmatprep.mubr.f32.mxu1 %v1811_v2  ;;  %2880 = vtanh.f32 %v1447_v48 }
 0x24b   :  { %5078 = vst [vmem:[#allocation49_spill] sm:$0xff] %v4607_v15  ;;  %5080 = vst [vmem:[#allocation68_spill] sm:$0xff] %v4611_v39  ;;  %v1068_v21 = vmul.f32 0.7978846, %v4554_v35  ;;  %v1323_v51 = vadd.f32 1.0, %v1195_v37  ;;  %2321 = vmatprep.mubr.f32.mxu0 %v1813_v13  ;;  %v1682_v58 = vadd.f32 1.0, %v4405_v59  ;;  %v4618_v4 = vpop.eup %2872  ;;  %v814_v54 = vmul.f32 %v4607_v15, %v4607_v15 }
 0x24c   :  { %v1684_v12 = vadd.f32 1.0, %v4410_v41  ;;  %v4621_v19 = vmul.f32 0.5, %v4478_v8  ;;  %v1450_v29 = vmul.f32 %v1322_v1, %v1066_v53  ;;  %v4625_v57 = vpop.eup %2874  ;;  %2882 = vtanh.f32 %v1449_v40  ;;  %v5081_v8 = vld [vmem:[#allocation65_spill] sm:$0xff]  ;;  %v5082_v1 = vld [vmem:[#allocation28_spill] sm:$0xff]  ;;  %v5083_v40 = vld [vmem:[#allocation55_spill] sm:$0xff] }
 0x24d   :  { %v1452_v37 = vmul.f32 %v1324_v17, %v1068_v21  ;;  %v1067_v2 = vmul.f32 0.7978846, %v4575_v10  ;;  %v816_v59 = vmul.f32 %v4611_v39, %v4611_v39  ;;  %v1325_v41 = vadd.f32 1.0, %v1197_v42 }
 0x24e   :  { %v1198_v13 = vmul.f32 0.044715, %v814_v54  ;;  %v1810_v26 = vmul.f32 %v1682_v58, %v4348_v24  ;;  %v1812_v11 = vmul.f32 %v1684_v12, %v5081_v8  ;;  %v4634_v34 = vadd.f32 %v5082_v1, %v3187_v46 }
 0x24f   :  { %v1451_v48 = vmul.f32 %v1323_v51, %v1067_v2  ;;  %v1200_v53 = vmul.f32 0.044715, %v816_v59  ;;  %v4638_v17 = vadd.f32 %v5083_v40, %v3189_v47  ;;  %v4640_v21 = vpop.eup %2876  ;;  %2884 = vtanh.f32 %v1450_v29 }
 0x250   :  { %v1069_v42 = vmul.f32 0.7978846, %v4579_v52  ;;  %2097 = vmatmul.mubr.f32.gmra.mrb[110].mxu1 %v1810_v26  ;;  %2322 = vmatmul.mubr.f32.gmra.mrb[110].mxu0 %v1812_v11  ;;  %v1687_v24 = vadd.f32 1.0, %v4468_v0  ;;  %v1689_v51 = vadd.f32 1.0, %v4474_v32  ;;  %2886 = vtanh.f32 %v1452_v37 }
 0x251   :  { %v4645_v58 = vpop.eup %2878  ;;  %v1070_v12 = vmul.f32 0.7978846, %v4607_v15  ;;  %v1326_v54 = vadd.f32 1.0, %v1198_v13  ;;  %v815_v2 = vmul.f32 %v4634_v34, %v4634_v34  ;;  %v1072_v8 = vmul.f32 0.7978846, %v4611_v39 }
 0x252   :  { %v4650_v59 = vpop.f32.mrb[68].mxu1  ;;  %v1453_v29 = vmul.f32 %v1325_v41, %v1069_v42  ;;  %v1328_v26 = vadd.f32 1.0, %v1200_v53  ;;  %v817_v0 = vmul.f32 %v4638_v17, %v4638_v17  ;;  %2888 = vtanh.f32 %v1451_v48  ;;  %v5085_v41 = vld [vmem:[#allocation56_spill] sm:$0xff]  ;;  %v5086_v53 = vld [vmem:[#allocation57_spill] sm:$0xff] }
 0x253   :  { %v1995_v11 = vpop.f32.mrb[69].mxu1  ;;  %v1199_v32 = vmul.f32 0.044715, %v815_v2  ;;  %v1815_v37 = vmul.f32 %v1687_v24, %v4400_v33  ;;  %v1817_v1 = vmul.f32 %v1689_v51, %v4403_v62  ;;  %v4657_v13 = vpop.f32.mrb[68].mxu0  ;;  %v1071_v40 = vmul.f32 0.7978846, %v4634_v34 }
 0x254   :  { %5084 = vst [vmem:[#allocation69_spill] sm:$0xff] %v4657_v13  ;;  %v1201_v15 = vmul.f32 0.044715, %v817_v0  ;;  %v4662_v42 = vadd.f32 %v5085_v41, %v3183_v44  ;;  %v4666_v39 = vadd.f32 %v5086_v53, %v3185_v45  ;;  %v2220_v11 = vpop.f32.mrb[69].mxu0  ;;  %v1454_v48 = vmul.f32 %v1326_v54, %v1070_v12  ;;  %v4670_v24 = vpop.eup %2880  ;;  %v5090_v53 = vld [vmem:[#allocation59_spill] sm:$0xff] }
 0x255   :  { %v1327_v2 = vadd.f32 1.0, %v1199_v32  ;;  %2101 = vmatprep.mubr.f32.mxu1 %v1815_v37  ;;  %2326 = vmatprep.mubr.f32.mxu0 %v1817_v1  ;;  %v1686_v33 = vadd.f32 1.0, %v4448_v43  ;;  %v1688_v62 = vadd.f32 1.0, %v4462_v18  ;;  %v1456_v51 = vmul.f32 %v1328_v26, %v1072_v8  ;;  %v5088_v37 = vld [vmem:[#allocation17_spill] sm:$0xff] }
 0x256   :  { %5087 = vst [vmem:[#allocation25_spill] sm:$0xff] %v4666_v39  ;;  %v1073_v0 = vmul.f32 0.7978846, %v4638_v17  ;;  %v1329_v44 = vadd.f32 1.0, %v1201_v15  ;;  %v818_v41 = vmul.f32 %v4662_v42, %v4662_v42  ;;  %v4675_v45 = vpop.eup %2882  ;;  %v4678_v12 = vmul.f32 0.5, %v4482_v38  ;;  %v5089_v26 = vld [vmem:[#allocation13_spill] sm:$0xff] }
 0x257   :  { %2890 = vtanh.f32 %v1453_v29  ;;  %v1455_v54 = vmul.f32 %v1327_v2, %v1071_v40  ;;  %v820_v43 = vmul.f32 %v4666_v39, %v4666_v39  ;;  %v1814_v8 = vmul.f32 %v1686_v33, %v5088_v37  ;;  %v5091_v38 = vld [vmem:[#allocation60_spill] sm:$0xff] }
 0x258   :  { %v1457_v18 = vmul.f32 %v1329_v44, %v1073_v0  ;;  %v1202_v32 = vmul.f32 0.044715, %v818_v41  ;;  %v1816_v1 = vmul.f32 %v1688_v62, %v5089_v26  ;;  %2892 = vtanh.f32 %v1454_v48 }
 0x259   :  { %v1204_v15 = vmul.f32 0.044715, %v820_v43  ;;  %v4686_v11 = vadd.f32 %v5090_v53, %v3187_v46  ;;  %v4690_v13 = vadd.f32 %v5091_v38, %v3189_v47  ;;  %v4692_v29 = vpop.eup %2884  ;;  %2894 = vtanh.f32 %v1456_v51  ;;  %2102 = vmatmul.mubr.f32.gmra.mrb[112].mxu1 %v1814_v8 }
 0x25a   :  { %v1330_v40 = vadd.f32 1.0, %v1202_v32  ;;  %2327 = vmatmul.mubr.f32.gmra.mrb[112].mxu0 %v1816_v1  ;;  %v1691_v2 = vadd.f32 1.0, %v4516_v50  ;;  %v1693_v33 = vadd.f32 1.0, %v4534_v9  ;;  %v4696_v48 = vpop.eup %2886  ;;  %2896 = vtanh.f32 %v1455_v54  ;;  %v4701_v0 = vpop.f32.mrb[70].mxu1 }
 0x25b   :  { %v1074_v46 = vmul.f32 0.7978846, %v4662_v42  ;;  %v1332_v62 = vadd.f32 1.0, %v1204_v15  ;;  %v819_v47 = vmul.f32 %v4686_v11, %v4686_v11  ;;  %2898 = vtanh.f32 %v1457_v18  ;;  %v2000_v41 = vpop.f32.mrb[71].mxu1 }
 0x25c   :  { %v4703_v44 = vpop.f32.mrb[70].mxu0  ;;  %v1076_v51 = vmul.f32 0.7978846, %v4666_v39  ;;  %v1075_v50 = vmul.f32 0.7978846, %v4686_v11  ;;  %v821_v9 = vmul.f32 %v4690_v13, %v4690_v13  ;;  %v2889_v43 = vpop.eup %2888  ;;  %v1819_v8 = vmul.f32 %v1691_v2, %v4434_v7 }
 0x25d   :  { %v2225_v54 = vpop.f32.mrb[71].mxu0  ;;  %v1458_v32 = vmul.f32 %v1330_v40, %v1074_v46  ;;  %v1203_v37 = vmul.f32 0.044715, %v819_v47  ;;  %v1821_v26 = vmul.f32 %v1693_v33, %v4440_v31  ;;  %v1077_v1 = vmul.f32 0.7978846, %v4690_v13 }
 0x25e   :  { %v1205_v15 = vmul.f32 0.044715, %v821_v9  ;;  %v1690_v18 = vadd.f32 1.0, %v4490_v20  ;;  %v1692_v53 = vadd.f32 1.0, %v4496_v14  ;;  %v1460_v38 = vmul.f32 %v1332_v62, %v1076_v51  ;;  %2106 = vmatprep.mubr.f32.mxu1 %v1819_v8  ;;  %v5092_v8 = vld [vmem:[#allocation18_spill] sm:$0xff] }
 0x25f   :  { %v1331_v39 = vadd.f32 1.0, %v1203_v37  ;;  %2331 = vmatprep.mubr.f32.mxu0 %v1821_v26  ;;  %v1695_v41 = vadd.f32 1.0, %v4561_v16  ;;  %v1697_v40 = vadd.f32 1.0, %v4581_v5  ;;  %v1694_v2 = vadd.f32 1.0, %v4545_v60 }
 0x260   :  { %v1333_v46 = vadd.f32 1.0, %v1205_v15  ;;  %v1818_v7 = vmul.f32 %v1690_v18, %v4418_v27  ;;  %v1820_v31 = vmul.f32 %v1692_v53, %v4420_v3  ;;  %v1696_v62 = vadd.f32 1.0, %v4556_v22  ;;  %v5093_v15 = vld [vmem:[#allocation20_spill] sm:$0xff] }
 0x261   :  { %v2891_v33 = vpop.eup %2890  ;;  %v1459_v47 = vmul.f32 %v1331_v39, %v1075_v50  ;;  %v1823_v20 = vmul.f32 %v1695_v41, %v4537_v25  ;;  %v1825_v14 = vmul.f32 %v1697_v40, %v4564_v30  ;;  %v1822_v16 = vmul.f32 %v1694_v2, %v4458_v55 }
 0x262   :  { %v1461_v51 = vmul.f32 %v1333_v46, %v1077_v1  ;;  %2107 = vmatmul.mubr.f32.gmra.mrb[114].mxu1 %v1818_v7  ;;  %2332 = vmatmul.mubr.f32.gmra.mrb[114].mxu0 %v1820_v31  ;;  %v1699_v5 = vadd.f32 1.0, %v4618_v4  ;;  %v1701_v27 = vadd.f32 1.0, %v4625_v57  ;;  %v4725_v3 = vpop.eup %2892  ;;  %v1824_v60 = vmul.f32 %v1696_v62, %v4464_v61 }
 0x263   :  { %2900 = vtanh.f32 %v1459_v47  ;;  %2111 = vmatprep.mubr.f32.mxu1 %v1823_v20  ;;  %2336 = vmatprep.mubr.f32.mxu0 %v1825_v14  ;;  %v1698_v25 = vadd.f32 1.0, %v4586_v28  ;;  %v1700_v22 = vadd.f32 1.0, %v4613_v56  ;;  %v4730_v30 = vpop.eup %2894  ;;  %v1703_v4 = vadd.f32 1.0, %v4670_v24  ;;  %v5095_v47 = vld [vmem:[#allocation67_spill] sm:$0xff]  ;;  %v5096_v14 = vld [vmem:[#allocation66_spill] sm:$0xff] }
 0x264   :  { %2902 = vtanh.f32 %v1461_v51  ;;  %v1827_v55 = vmul.f32 %v1699_v5, %v4621_v19  ;;  %v1829_v39 = vmul.f32 %v1701_v27, %v4678_v12  ;;  %v2897_v57 = vpop.eup %2896  ;;  %v935_v50 = vmul.f32 0.5, %v4521_v6 }
 0x265   :  { %v937_v9 = vmul.f32 0.5, %v4525_v49  ;;  %2904 = vtanh.f32 %v1458_v32  ;;  %v1705_v61 = vadd.f32 1.0, %v4675_v45  ;;  %v2003_v28 = vpop.f32.mrb[72].mxu1  ;;  %v2228_v54 = vpop.f32.mrb[72].mxu0  ;;  %v934_v37 = vmul.f32 0.5, %v4500_v23 }
 0x266   :  { %v2899_v56 = vpop.eup %2898  ;;  %v936_v26 = vmul.f32 0.5, %v5092_v8  ;;  %2906 = vtanh.f32 %v1460_v38  ;;  %2112 = vmatmul.mubr.f32.gmra.mrb[116].mxu1 %v1822_v16  ;;  %2337 = vmatmul.mubr.f32.gmra.mrb[116].mxu0 %v1824_v60  ;;  %v1702_v19 = vadd.f32 1.0, %v4640_v21  ;;  %v2005_v24 = vpop.f32.mrb[73].mxu1  ;;  %v1831_v6 = vmul.f32 %v1703_v4, %v935_v50  ;;  %v4748_v21 = vld [vmem:[%s4824_s4] ss:$0 sm:$0xff]  ;;  %v5098_v4 = vld [vmem:[#allocation69_spill] sm:$0xff] }
 0x267   :  { %v2230_v12 = vpop.f32.mrb[73].mxu0  ;;  %2116 = vmatprep.mubr.f32.mxu1 %v1827_v55  ;;  %2341 = vmatprep.mubr.f32.mxu0 %v1829_v39  ;;  %v1833_v49 = vmul.f32 %v1705_v61, %v937_v9  ;;  %v1707_v32 = vadd.f32 1.0, %v2889_v43  ;;  %v1709_v45 = vadd.f32 1.0, %v2891_v33  ;;  %v1826_v1 = vmul.f32 %v1698_v25, %v4589_v63  ;;  %v5097_v25 = vld [vmem:[#allocation23_spill] sm:$0xff]  ;;  %s3011_s4 = smov [#allocation8]  }
 0x268   :  { %v1828_v18 = vmul.f32 %v1700_v22, %v5093_v15  ;;  %v1704_v23 = vadd.f32 1.0, %v4645_v58  ;;  %v1706_v53 = vadd.f32 1.0, %v4692_v29  ;;  %v938_v38 = vmul.f32 0.5, %v4550_v36  ;;  %v5094_v36 = vld [vmem:[#allocation19_spill] sm:$0xff]  ;;  %s2404_s8 = sshll.u32 %s3011_s4, 4  ;;  %s2405_s8 = int_to_ptr.vmem [resolvable:$true] %s2404_s8 }
 0x269   :  { %v940_v41 = vmul.f32 0.5, %v4554_v35  ;;  %v939_v43 = vmul.f32 0.5, %v4575_v10  ;;  %v941_v40 = vmul.f32 0.5, %v4579_v52  ;;  %v943_v63 = vmul.f32 0.5, %v4634_v34  ;;  %s2974_s9 = scalar_lea.vmem %s2405_s8, 4096  ;;  %p2979_p11 = scmp.lt.s32.totalorder %s2405_s8, %s2405_s8 }
 0x26a   :  { %2117 = vmatmul.mubr.f32.gmra.mrb[118].mxu1 %v1826_v1  ;;  %2342 = vmatmul.mubr.f32.gmra.mrb[118].mxu0 %v1828_v18  ;;  %v1830_v58 = vmul.f32 %v1702_v19, %v934_v37  ;;  %v1711_v46 = vadd.f32 1.0, %v2897_v57  ;;  %v1713_v29 = vadd.f32 1.0, %v2899_v56  ;;  %v945_v7 = vmul.f32 0.5, %v4638_v17  ;;  %v5101_v18 = vld [vmem:[#allocation25_spill] sm:$0xff]  ;;  %p2975_p10 = scmp.ne.s32.totalorder %s2405_s8, %s2974_s9  ;;  %p2980_p12 = scmp.lt.s32.totalorder %s2974_s9, %s2974_s9 }
 0x26b   :  { %2121 = vmatprep.mubr.f32.mxu1 %v1831_v6  ;;  %2346 = vmatprep.mubr.f32.mxu0 %v1833_v49  ;;  %v1835_v31 = vmul.f32 %v1707_v32, %v939_v43  ;;  %v1837_v2 = vmul.f32 %v1709_v45, %v941_v40  ;;  %v1984_v35 = vadd.f32 %v4748_v21, %v5094_v36  ;;  %v1708_v52 = vadd.f32 1.0, %v4696_v48  ;;  %v5100_v6 = vld [vmem:[#allocation68_spill] sm:$0xff] }
 0x26c   :  { %v1832_v33 = vmul.f32 %v1704_v23, %v936_v26  ;;  %v1834_v10 = vmul.f32 %v1706_v53, %v938_v38  ;;  %v1989_v34 = vadd.f32 %v4748_v21, %v5095_v47  ;;  %v1994_v17 = vadd.f32 %v4748_v21, %v4650_v59  ;;  %p2981_p13 = por %p2980_p12, %p2979_p11 }
 0x26d   :  { %v2901_v20 = vpop.eup %2900  ;;  %v2209_v62 = vadd.f32 %v5096_v14, %v1984_v35  ;;  %v1999_v51 = vadd.f32 %v4748_v21, %v4701_v0  ;;  %v2004_v16 = vadd.f32 %v4748_v21, %v2003_v28  ;;  %v1839_v27 = vmul.f32 %v1711_v46, %v943_v63 }
 0x26e   :  { %v2903_v5 = vpop.eup %2902  ;;  %2122 = vmatmul.mubr.f32.gmra.mrb[120].mxu1 %v1830_v58  ;;  %2347 = vmatmul.mubr.f32.gmra.mrb[120].mxu0 %v1832_v33  ;;  %v1841_v60 = vmul.f32 %v1713_v29, %v945_v7  ;;  %v1715_v48 = vadd.f32 1.0, %v2901_v20  ;;  %v2214_v22 = vadd.f32 %v5097_v25, %v1989_v34  ;;  %v2219_v59 = vadd.f32 %v5098_v4, %v1994_v17  ;;  %p2982_p0 = pnand %p2981_p13, %p2975_p10 }
 0x26f   :  { %v2905_v55 = vpop.eup %2904  ;;  %2126 = vmatprep.mubr.f32.mxu1 %v1835_v31  ;;  %2351 = vmatprep.mubr.f32.mxu0 %v1837_v2  ;;  %v1717_v39 = vadd.f32 1.0, %v2903_v5  ;;  %2367 = vst [vmem:[#allocation8] sm:$0xff] %v2209_v62  ;;  %v2224_v57 = vadd.f32 %v4703_v44, %v1999_v51  ;;  %v2229_v0 = vadd.f32 %v2228_v54, %v2004_v16  ;;  %v2008_v50 = vpop.f32.mrb[74].mxu1  ;;  %v1710_v56 = vadd.f32 1.0, %v4725_v3  ;;  %v5099_v44 = vld [vmem:[#allocation49_spill] sm:$0xff] }
 0x270   :  { %v2233_v9 = vpop.f32.mrb[74].mxu0  ;;  %v2907_v61 = vpop.eup %2906  ;;  %v1836_v28 = vmul.f32 %v1708_v52, %v940_v41  ;;  %v1712_v37 = vadd.f32 1.0, %v4730_v30  ;;  %2368 = vst [vmem:[#allocation8 + $0x8] sm:$0xff] %v2214_v22  ;;  %v2009_v8 = vadd.f32 %v4748_v21, %v2008_v50  ;;  %v947_v24 = vmul.f32 0.5, %v4686_v11  ;;  %2369 = vst [vmem:[#allocation8 + $0x10] sm:$0xff] %v2219_v59 }
 0x271   :  { %v2010_v26 = vpop.f32.mrb[75].mxu1  ;;  %v2235_v19 = vpop.f32.mrb[75].mxu0  ;;  %v949_v12 = vmul.f32 0.5, %v4690_v13  ;;  %2370 = vst [vmem:[#allocation8 + $0x18] sm:$0xff] %v2224_v57  ;;  %2371 = vst [vmem:[#allocation8 + $0x20] sm:$0xff] %v2229_v0  ;;  %v942_v54 = vmul.f32 0.5, %v5099_v44 }
 0x272   :  { %v944_v49 = vmul.f32 0.5, %v5100_v6  ;;  %2127 = vmatmul.mubr.f32.gmra.mrb[122].mxu1 %v1834_v10  ;;  %2352 = vmatmul.mubr.f32.gmra.mrb[122].mxu0 %v1836_v28  ;;  %v2234_v3 = vadd.f32 %v2233_v9, %v2009_v8  ;;  %v1843_v30 = vmul.f32 %v1715_v48, %v947_v24  ;;  %v1714_v15 = vadd.f32 1.0, %v2905_v55 }
 0x273   :  { %2131 = vmatprep.mubr.f32.mxu1 %v1839_v27  ;;  %2356 = vmatprep.mubr.f32.mxu0 %v1841_v60  ;;  %v1845_v32 = vmul.f32 %v1717_v39, %v949_v12  ;;  %v1838_v45 = vmul.f32 %v1710_v56, %v942_v54  ;;  %v1716_v11 = vadd.f32 1.0, %v2907_v61  ;;  %v946_v13 = vmul.f32 0.5, %v4662_v42 }
 0x274   :  { %v1840_v1 = vmul.f32 %v1712_v37, %v944_v49  ;;  %2372 = vst [vmem:[#allocation8 + $0x28] sm:$0xff] %v2234_v3  ;;  %v948_v23 = vmul.f32 0.5, %v5101_v18 }
 0x275   :  { %v1842_v53 = vmul.f32 %v1714_v15, %v946_v13 }
 0x276   :  { %2132 = vmatmul.mubr.f32.gmra.mrb[124].mxu1 %v1838_v45  ;;  %2357 = vmatmul.mubr.f32.gmra.mrb[124].mxu0 %v1840_v1  ;;  %v1844_v38 = vmul.f32 %v1716_v11, %v948_v23 }
 0x277   :  { %2136 = vmatprep.mubr.f32.mxu1 %v1843_v30  ;;  %2361 = vmatprep.mubr.f32.mxu0 %v1845_v32 }
 0x279   :  { %v2013_v41 = vpop.f32.mrb[76].mxu1  ;;  %v2238_v43 = vpop.f32.mrb[76].mxu0 }
 0x27a   :  { %2137 = vmatmul.mubr.f32.gmra.mrb[126].mxu1 %v1842_v53  ;;  %2362 = vmatmul.mubr.f32.gmra.mrb[126].mxu0 %v1844_v38  ;;  %v2014_v40 = vadd.f32 %v4748_v21, %v2013_v41  ;;  %v2015_v63 = vpop.f32.mrb[77].mxu1  ;;  %v2240_v58 = vpop.f32.mrb[77].mxu0 }
 0x27c   :  { %v2239_v46 = vadd.f32 %v2238_v43, %v2014_v40 }
 0x27e   :  { %2373 = vst [vmem:[#allocation8 + $0x30] sm:$0xff] %v2239_v46 }
 0x283   :  { %v2018_v29 = vpop.f32.mrb[78].mxu1  ;;  %v2243_v42 = vpop.f32.mrb[78].mxu0 }
 0x284   :  { %v2019_v7 = vadd.f32 %v4748_v21, %v2018_v29  ;;  %v2020_v31 = vpop.f32.mrb[79].mxu1  ;;  %v2245_v2 = vpop.f32.mrb[79].mxu0 }
 0x286   :  { %v2244_v36 = vadd.f32 %v2243_v42, %v2019_v7 }
 0x288   :  { %2374 = vst [vmem:[#allocation8 + $0x38] sm:$0xff] %v2244_v36 }
 0x28d   :  { %v2023_v35 = vpop.f32.mrb[80].mxu1  ;;  %v2248_v33 = vpop.f32.mrb[80].mxu0 }
 0x28e   :  { %v2024_v10 = vadd.f32 %v4748_v21, %v2023_v35  ;;  %v2025_v52 = vpop.f32.mrb[81].mxu1  ;;  %v2250_v47 = vpop.f32.mrb[81].mxu0 }
 0x290   :  { %v2249_v34 = vadd.f32 %v2248_v33, %v2024_v10 }
 0x292   :  { %2375 = vst [vmem:[#allocation8 + $0x40] sm:$0xff] %v2249_v34 }
 0x296   :  { %v2028_v20 = vpop.f32.mrb[82].mxu1 }
 0x297   :  { %v2253_v14 = vpop.f32.mrb[82].mxu0  ;;  %v2029_v62 = vadd.f32 %v4748_v21, %v2028_v20  ;;  %v2030_v17 = vpop.f32.mrb[83].mxu1 }
 0x298   :  { %v2255_v51 = vpop.f32.mrb[83].mxu0 }
 0x299   :  { %v2254_v16 = vadd.f32 %v2253_v14, %v2029_v62 }
 0x29b   :  { %2376 = vst [vmem:[#allocation8 + $0x48] sm:$0xff] %v2254_v16 }
 0x2a1   :  { %v2033_v5 = vpop.f32.mrb[84].mxu1  ;;  %v2258_v27 = vpop.f32.mrb[84].mxu0 }
 0x2a2   :  { %v2034_v60 = vadd.f32 %v4748_v21, %v2033_v5  ;;  %v2035_v48 = vpop.f32.mrb[85].mxu1  ;;  %v2260_v25 = vpop.f32.mrb[85].mxu0 }
 0x2a4   :  { %v2259_v22 = vadd.f32 %v2258_v27, %v2034_v60 }
 0x2a6   :  { %2377 = vst [vmem:[#allocation8 + $0x50] sm:$0xff] %v2259_v22 }
 0x2ab   :  { %v2038_v55 = vpop.f32.mrb[86].mxu1  ;;  %v2263_v39 = vpop.f32.mrb[86].mxu0 }
 0x2ac   :  { %v2039_v4 = vadd.f32 %v4748_v21, %v2038_v55  ;;  %v2040_v59 = vpop.f32.mrb[87].mxu1  ;;  %v2265_v57 = vpop.f32.mrb[87].mxu0 }
 0x2ae   :  { %v2264_v0 = vadd.f32 %v2263_v39, %v2039_v4 }
 0x2b0   :  { %2378 = vst [vmem:[#allocation8 + $0x58] sm:$0xff] %v2264_v0 }
 0x2b5   :  { %v2043_v50 = vpop.f32.mrb[88].mxu1  ;;  %v2268_v9 = vpop.f32.mrb[88].mxu0 }
 0x2b6   :  { %v2044_v61 = vadd.f32 %v4748_v21, %v2043_v50  ;;  %v2045_v28 = vpop.f32.mrb[89].mxu1  ;;  %v2270_v56 = vpop.f32.mrb[89].mxu0 }
 0x2b8   :  { %v2269_v37 = vadd.f32 %v2268_v9, %v2044_v61 }
 0x2ba   :  { %2379 = vst [vmem:[#allocation8 + $0x60] sm:$0xff] %v2269_v37 }
 0x2bf   :  { %v2048_v8 = vpop.f32.mrb[90].mxu1  ;;  %v2273_v26 = vpop.f32.mrb[90].mxu0 }
 0x2c0   :  { %v2049_v19 = vadd.f32 %v4748_v21, %v2048_v8  ;;  %v2050_v24 = vpop.f32.mrb[91].mxu1  ;;  %v2275_v12 = vpop.f32.mrb[91].mxu0 }
 0x2c2   :  { %v2274_v44 = vadd.f32 %v2273_v26, %v2049_v19 }
 0x2c4   :  { %2380 = vst [vmem:[#allocation8 + $0x68] sm:$0xff] %v2274_v44 }
 0x2c9   :  { %v2053_v54 = vpop.f32.mrb[92].mxu1  ;;  %v2278_v6 = vpop.f32.mrb[92].mxu0 }
 0x2ca   :  { %v2054_v49 = vadd.f32 %v4748_v21, %v2053_v54  ;;  %v2055_v3 = vpop.f32.mrb[93].mxu1  ;;  %v2280_v30 = vpop.f32.mrb[93].mxu0 }
 0x2cc   :  { %v2279_v32 = vadd.f32 %v2278_v6, %v2054_v49 }
 0x2ce   :  { %2381 = vst [vmem:[#allocation8 + $0x70] sm:$0xff] %v2279_v32 }
 0x2d2   :  { %v2058_v45 = vpop.f32.mrb[94].mxu1 }
 0x2d3   :  { %v2283_v1 = vpop.f32.mrb[94].mxu0  ;;  %v2059_v15 = vadd.f32 %v4748_v21, %v2058_v45  ;;  %v2060_v11 = vpop.f32.mrb[95].mxu1 }
 0x2d4   :  { %v2285_v13 = vpop.f32.mrb[95].mxu0 }
 0x2d5   :  { %v2284_v18 = vadd.f32 %v2283_v1, %v2059_v15 }
 0x2d7   :  { %2382 = vst [vmem:[#allocation8 + $0x78] sm:$0xff] %v2284_v18 }
 0x2dd   :  { %v2063_v23 = vpop.f32.mrb[96].mxu1  ;;  %v2288_v53 = vpop.f32.mrb[96].mxu0 }
 0x2de   :  { %v2064_v38 = vadd.f32 %v4748_v21, %v2063_v23  ;;  %v2065_v41 = vpop.f32.mrb[97].mxu1  ;;  %v2290_v43 = vpop.f32.mrb[97].mxu0 }
 0x2e0   :  { %v2289_v40 = vadd.f32 %v2288_v53, %v2064_v38 }
 0x2e2   :  { %2383 = vst [vmem:[#allocation8 + $0x80] sm:$0xff] %v2289_v40 }
 0x2e7   :  { %v2068_v63 = vpop.f32.mrb[98].mxu1  ;;  %v2293_v58 = vpop.f32.mrb[98].mxu0 }
 0x2e8   :  { %v2069_v46 = vadd.f32 %v4748_v21, %v2068_v63  ;;  %v2070_v29 = vpop.f32.mrb[99].mxu1  ;;  %v2295_v42 = vpop.f32.mrb[99].mxu0 }
 0x2ea   :  { %v2294_v7 = vadd.f32 %v2293_v58, %v2069_v46 }
 0x2ec   :  { %2384 = vst [vmem:[#allocation8 + $0x88] sm:$0xff] %v2294_v7 }
 0x2f1   :  { %v2073_v31 = vpop.f32.mrb[100].mxu1  ;;  %v2298_v2 = vpop.f32.mrb[100].mxu0 }
 0x2f2   :  { %v2074_v36 = vadd.f32 %v4748_v21, %v2073_v31  ;;  %v2075_v35 = vpop.f32.mrb[101].mxu1  ;;  %v2300_v33 = vpop.f32.mrb[101].mxu0 }
 0x2f4   :  { %v2299_v10 = vadd.f32 %v2298_v2, %v2074_v36 }
 0x2f6   :  { %2385 = vst [vmem:[#allocation8 + $0x90] sm:$0xff] %v2299_v10 }
 0x2fb   :  { %v2078_v52 = vpop.f32.mrb[102].mxu1  ;;  %v2303_v47 = vpop.f32.mrb[102].mxu0 }
 0x2fc   :  { %v2079_v34 = vadd.f32 %v4748_v21, %v2078_v52  ;;  %v2080_v20 = vpop.f32.mrb[103].mxu1  ;;  %v2305_v14 = vpop.f32.mrb[103].mxu0 }
 0x2fe   :  { %v2304_v62 = vadd.f32 %v2303_v47, %v2079_v34 }
 0x300   :  { %2386 = vst [vmem:[#allocation8 + $0x98] sm:$0xff] %v2304_v62 }
 0x305   :  { %v2083_v17 = vpop.f32.mrb[104].mxu1  ;;  %v2308_v51 = vpop.f32.mrb[104].mxu0 }
 0x306   :  { %v2084_v16 = vadd.f32 %v4748_v21, %v2083_v17  ;;  %v2085_v5 = vpop.f32.mrb[105].mxu1  ;;  %v2310_v27 = vpop.f32.mrb[105].mxu0 }
 0x308   :  { %v2309_v60 = vadd.f32 %v2308_v51, %v2084_v16 }
 0x30a   :  { %2387 = vst [vmem:[#allocation8 + $0xa0] sm:$0xff] %v2309_v60 }
 0x30e   :  { %v2088_v48 = vpop.f32.mrb[106].mxu1 }
 0x30f   :  { %v2313_v25 = vpop.f32.mrb[106].mxu0  ;;  %v2089_v22 = vadd.f32 %v4748_v21, %v2088_v48  ;;  %v2090_v55 = vpop.f32.mrb[107].mxu1 }
 0x310   :  { %v2315_v39 = vpop.f32.mrb[107].mxu0 }
 0x311   :  { %v2314_v4 = vadd.f32 %v2313_v25, %v2089_v22 }
 0x313   :  { %2388 = vst [vmem:[#allocation8 + $0xa8] sm:$0xff] %v2314_v4 }
 0x318   :  { %v2093_v59 = vpop.f32.mrb[108].mxu1 }
 0x319   :  { %v2318_v57 = vpop.f32.mrb[108].mxu0  ;;  %v2094_v0 = vadd.f32 %v4748_v21, %v2093_v59  ;;  %v2095_v50 = vpop.f32.mrb[109].mxu1 }
 0x31a   :  { %v2320_v9 = vpop.f32.mrb[109].mxu0 }
 0x31b   :  { %v2319_v61 = vadd.f32 %v2318_v57, %v2094_v0 }
 0x31d   :  { %2389 = vst [vmem:[#allocation8 + $0xb0] sm:$0xff] %v2319_v61 }
 0x323   :  { %v2098_v28 = vpop.f32.mrb[110].mxu1  ;;  %v2323_v56 = vpop.f32.mrb[110].mxu0 }
 0x324   :  { %v2099_v37 = vadd.f32 %v4748_v21, %v2098_v28  ;;  %v2100_v8 = vpop.f32.mrb[111].mxu1  ;;  %v2325_v26 = vpop.f32.mrb[111].mxu0 }
 0x326   :  { %v2324_v19 = vadd.f32 %v2323_v56, %v2099_v37 }
 0x328   :  { %2390 = vst [vmem:[#allocation8 + $0xb8] sm:$0xff] %v2324_v19 }
 0x32c   :  { %v2103_v24 = vpop.f32.mrb[112].mxu1 }
 0x32d   :  { %v2328_v12 = vpop.f32.mrb[112].mxu0  ;;  %v2104_v44 = vadd.f32 %v4748_v21, %v2103_v24  ;;  %v2105_v54 = vpop.f32.mrb[113].mxu1 }
 0x32e   :  { %v2330_v6 = vpop.f32.mrb[113].mxu0 }
 0x32f   :  { %v2329_v49 = vadd.f32 %v2328_v12, %v2104_v44 }
 0x331   :  { %2391 = vst [vmem:[#allocation8 + $0xc0] sm:$0xff] %v2329_v49 }
 0x335   :  { %v2108_v3 = vpop.f32.mrb[114].mxu1  ;;  %v2333_v30 = vpop.f32.mrb[114].mxu0 }
 0x336   :  { %v2109_v32 = vadd.f32 %v4748_v21, %v2108_v3  ;;  %v2110_v45 = vpop.f32.mrb[115].mxu1  ;;  %v2335_v1 = vpop.f32.mrb[115].mxu0 }
 0x338   :  { %v2334_v15 = vadd.f32 %v2333_v30, %v2109_v32 }
 0x339   :  { %v2113_v11 = vpop.f32.mrb[116].mxu1  ;;  %v2338_v13 = vpop.f32.mrb[116].mxu0 }
 0x33a   :  { %2392 = vst [vmem:[#allocation8 + $0xc8] sm:$0xff] %v2334_v15  ;;  %v2114_v18 = vadd.f32 %v4748_v21, %v2113_v11  ;;  %v2115_v23 = vpop.f32.mrb[117].mxu1  ;;  %v2340_v53 = vpop.f32.mrb[117].mxu0 }
 0x33c   :  { %v2339_v38 = vadd.f32 %v2338_v13, %v2114_v18 }
 0x33d   :  { %v2118_v41 = vpop.f32.mrb[118].mxu1  ;;  %v2343_v43 = vpop.f32.mrb[118].mxu0 }
 0x33e   :  { %2393 = vst [vmem:[#allocation8 + $0xd0] sm:$0xff] %v2339_v38  ;;  %v2119_v40 = vadd.f32 %v4748_v21, %v2118_v41  ;;  %v2120_v63 = vpop.f32.mrb[119].mxu1  ;;  %v2345_v58 = vpop.f32.mrb[119].mxu0 }
 0x340   :  { %v2344_v46 = vadd.f32 %v2343_v43, %v2119_v40 }
 0x341   :  { %v2123_v29 = vpop.f32.mrb[120].mxu1  ;;  %v2348_v42 = vpop.f32.mrb[120].mxu0 }
 0x342   :  { %2394 = vst [vmem:[#allocation8 + $0xd8] sm:$0xff] %v2344_v46  ;;  %v2124_v7 = vadd.f32 %v4748_v21, %v2123_v29  ;;  %v2125_v31 = vpop.f32.mrb[121].mxu1  ;;  %v2350_v2 = vpop.f32.mrb[121].mxu0 }
 0x344   :  { %v2349_v36 = vadd.f32 %v2348_v42, %v2124_v7 }
 0x345   :  { %v2128_v35 = vpop.f32.mrb[122].mxu1  ;;  %v2353_v33 = vpop.f32.mrb[122].mxu0 }
 0x346   :  { %2395 = vst [vmem:[#allocation8 + $0xe0] sm:$0xff] %v2349_v36  ;;  %v2129_v10 = vadd.f32 %v4748_v21, %v2128_v35  ;;  %v2130_v52 = vpop.f32.mrb[123].mxu1  ;;  %v2355_v47 = vpop.f32.mrb[123].mxu0 }
 0x348   :  { %v2354_v34 = vadd.f32 %v2353_v33, %v2129_v10 }
 0x349   :  { %v2133_v20 = vpop.f32.mrb[124].mxu1  ;;  %v2358_v14 = vpop.f32.mrb[124].mxu0 }
 0x34a   :  { %2396 = vst [vmem:[#allocation8 + $0xe8] sm:$0xff] %v2354_v34  ;;  %v2134_v62 = vadd.f32 %v4748_v21, %v2133_v20  ;;  %v2135_v17 = vpop.f32.mrb[125].mxu1  ;;  %v2360_v51 = vpop.f32.mrb[125].mxu0 }
 0x34c   :  { %v2359_v16 = vadd.f32 %v2358_v14, %v2134_v62 }
 0x34d   :  { %v2138_v5 = vpop.f32.mrb[126].mxu1  ;;  %v2363_v27 = vpop.f32.mrb[126].mxu0 }
 0x34e   :  { %2397 = vst [vmem:[#allocation8 + $0xf0] sm:$0xff] %v2359_v16  ;;  %v2139_v60 = vadd.f32 %v4748_v21, %v2138_v5  ;;  %v2140_v48 = vpop.f32.mrb[127].mxu1  ;;  %v2365_v25 = vpop.f32.mrb[127].mxu0 }
 0x350   :  { %v2364_v22 = vadd.f32 %v2363_v27, %v2139_v60 }
 0x352   :  { %2398 = vst [vmem:[#allocation8 + $0xf8] sm:$0xff] %v2364_v22 }
 0x353   :  { %2985 = shalt.err (!%p2982_p0)
}
 0x354   :  { %s2986_s12 = scalar_lea.hbm %s4825_s5, 4096 }
 0x355   :  { %p2987_p1 = scmp.ne.s32.totalorder %s4825_s5, %s2986_s12  ;;  %p2990_p2 = scmp.lt.u32.totalorder %s2986_s12, %s4825_s5 }
 0x357   :  { %p2992_p3 = pnand %p2990_p2, %p2987_p1 }
 0x359   :  { %2995 = shalt.err (!%p2992_p3)
}
 0x35a   :  { %2410 = dma.vmem_to_hbm [thread:$0]  %s2405_s8, 4096, %s4825_s5, [#allocation4], %s3006_s1, %s3006_s1, %s3007_s17  }
 0x35b   :  { %3000 = dma.done.wait [#allocation4], 4096  }
 0x35c   :  { %3001 = vsyncadd [#allocation4], 4294963200 }
 0x35d   :  { %2414 = vsyncpa [#allocation3], 1 }
 0x35e   :  { %2415 = vsyncpa [#allocation6], 1 }
 0x35f   :  { %2416 = vsyncpa [#allocation4], 1 }

</bundles_post_ra>
